<compile_context>
chip_gen: v7x
topology: tpu7x:2x2x1
jax: 0.10.0
libtpu: 0.0.40
codegen_flags: <defaults>
</compile_context>

<pallas_src>
import functools

import jax
import jax.numpy as jnp
from jax.experimental import pallas as pl
from jax.experimental.pallas import tpu as pltpu

NEG_SLOPE = 0.2
BN_EPS = 1e-5
_VMEM_LIMIT = 32 * 1024 * 1024        # scoped VMEM limit (safe on v5e/v6e/v7x)
_TILE_BUDGET = 16 * 1024 * 1024       # bytes of double-buffered blocks per step
_MAX_NODE_TILE = 1024
_HEAD_SINGLE_LIMIT = 8 * 1024 * 1024  # single-step head if x slab <= this


def _round_up(x, m):
    return ((x + m - 1) // m) * m


def _node_tile(n, per_row_bytes):
    """Shared node tile: multiple of 16, fits the VMEM block budget,
    prefers >= 2 grid steps (megacore), minimal padding."""
    cap = (_TILE_BUDGET // max(per_row_bytes, 1)) // 16 * 16
    cap = max(16, min(_MAX_NODE_TILE, cap))
    t = min(cap, max(16, _round_up(-(-n // 2), 16)))
    g = -(-n // t)
    t = _round_up(-(-n // g), 16)          # shrink tile to minimize padding
    return t, g


# ---------------------------------------------------------------------------
# Pallas kernels
# ---------------------------------------------------------------------------
def _transform_kernel(*refs, offsets):
    """t = sum_i x_i @ Wd_i + b ;  s = sum_i x_i @ Wb_i   (per-node linear).

    refs: x_0..x_{m-1} (TN, Ci) bf16, wd (Cin, Cout) bf16, wb (Cin, Cout) bf16,
          b (1, Cout) f32, t_out (TN, Cout) bf16, s_out (TN, Cout) bf16.
    offsets: static row offsets of each x_i inside wd/wb.
    """
    n_in = len(offsets) - 1
    x_refs = refs[:n_in]
    wd_ref, wb_ref, b_ref, t_ref, s_ref = refs[n_in:]
    acc_t = None
    acc_s = None
    for i in range(n_in):
        x = x_refs[i][...]
        lo, sz = offsets[i], offsets[i + 1] - offsets[i]
        dt = jnp.dot(x, wd_ref[pl.ds(lo, sz), :],
                     preferred_element_type=jnp.float32)
        ds_ = jnp.dot(x, wb_ref[pl.ds(lo, sz), :],
                      preferred_element_type=jnp.float32)
        acc_t = dt if acc_t is None else acc_t + dt
        acc_s = ds_ if acc_s is None else acc_s + ds_
    t_ref[...] = (acc_t + b_ref[...]).astype(t_ref.dtype)
    s_ref[...] = acc_s.astype(s_ref.dtype)


def _neighbour_max(sg_ref, k):
    m = sg_ref[0]
    for j in range(1, k):
        m = jnp.maximum(m, sg_ref[j])          # element-wise VPU max over K
    return m


def _combine_kernel(t_ref, sg_ref, h_ref, *, k):
    """h_i = leaky(t_i + max_j s_j)  (leaky is monotone -> max commutes)."""
    m = _neighbour_max(sg_ref, k)
    h = t_ref[...].astype(jnp.float32) + m.astype(jnp.float32)
    h_ref[...] = jnp.maximum(h, NEG_SLOPE * h).astype(h_ref.dtype)


def _combine_transform_kernel(t_ref, sg_ref, wd_ref, wb_ref, b_ref,
                              h_ref, tn_ref, sn_ref, *, k):
    """Combine for layer L fused with layer L+1's per-node matmuls."""
    m = _neighbour_max(sg_ref, k)
    h = t_ref[...].astype(jnp.float32) + m.astype(jnp.float32)
    h = jnp.maximum(h, NEG_SLOPE * h)
    hb = h.astype(jnp.bfloat16)
    h_ref[...] = hb
    tn_ref[...] = (jnp.dot(hb, wd_ref[...], preferred_element_type=jnp.float32)
                   + b_ref[...]).astype(tn_ref.dtype)
    sn_ref[...] = jnp.dot(hb, wb_ref[...],
                          preferred_element_type=jnp.float32).astype(sn_ref.dtype)


def _head_mlp(xmax, xmean, w1m_ref, w1a_ref, b1_ref, w2_ref, b2_ref,
              w3_ref, b3_ref):
    h = (jnp.dot(xmax.astype(jnp.bfloat16), w1m_ref[...],
                 preferred_element_type=jnp.float32)
         + jnp.dot(xmean.astype(jnp.bfloat16), w1a_ref[...],
                   preferred_element_type=jnp.float32)
         + b1_ref[...])
    h = jnp.maximum(h, NEG_SLOPE * h)
    h = jnp.dot(h.astype(jnp.bfloat16), w2_ref[...],
                preferred_element_type=jnp.float32) + b2_ref[...]
    h = jnp.maximum(h, NEG_SLOPE * h)
    return jnp.dot(h.astype(jnp.bfloat16), w3_ref[...],
                   preferred_element_type=jnp.float32) + b3_ref[...]


def _head_single_kernel(x_ref, w1m, w1a, b1, w2, b2, w3, b3, o_ref, *, inv_p):
    """Single-step head: global max/mean pool + 3-layer MLP, no accumulators."""
    x = x_ref[...].astype(jnp.float32)
    xmax = jnp.max(x, axis=1)
    xmean = jnp.sum(x, axis=1) * inv_p
    o_ref[...] = _head_mlp(xmax, xmean, w1m, w1a, b1, w2, b2, w3, b3)


def _head_tiled_kernel(x_ref, w1m, w1a, b1, w2, b2, w3, b3, o_ref,
                       max_acc, sum_acc, *, inv_p):
    """Tiled head: accumulate pools over point tiles, finalize on last step."""
    p = pl.program_id(0)
    x = x_ref[...].astype(jnp.float32)

    @pl.when(p == 0)
    def _():
        max_acc[...] = jnp.full_like(max_acc, -jnp.inf)
        sum_acc[...] = jnp.zeros_like(sum_acc)

    max_acc[...] = jnp.maximum(max_acc[...], jnp.max(x, axis=1))
    sum_acc[...] = sum_acc[...] + jnp.sum(x, axis=1)

    @pl.when(p == pl.num_programs(0) - 1)
    def _():
        o_ref[...] = _head_mlp(max_acc[...], sum_acc[...] * inv_p,
                               w1m, w1a, b1, w2, b2, w3, b3)


# ---------------------------------------------------------------------------
# pallas_call wrappers
# ---------------------------------------------------------------------------
def _compiler_params(sem):
    return pltpu.CompilerParams(dimension_semantics=sem,
                                vmem_limit_bytes=_VMEM_LIMIT)


def node_transform(xs, wd, wb, b, tile_n, widths):
    Np = xs[0].shape[0]
    cout = wd.shape[1]
    offsets = [0]
    for w in widths:
        offsets.append(offsets[-1] + w)
    kernel = functools.partial(_transform_kernel, offsets=tuple(offsets))
    in_specs = [pl.BlockSpec((tile_n, w), lambda i: (i, 0)) for w in widths]
    in_specs += [pl.BlockSpec(wd.shape, lambda i: (0, 0)),
                 pl.BlockSpec(wb.shape, lambda i: (0, 0)),
                 pl.BlockSpec(b.shape, lambda i: (0, 0))]
    return pl.pallas_call(
        kernel,
        out_shape=(jax.ShapeDtypeStruct((Np, cout), jnp.bfloat16),
                   jax.ShapeDtypeStruct((Np, cout), jnp.bfloat16)),
        grid=(Np // tile_n,),
        in_specs=in_specs,
        out_specs=(pl.BlockSpec((tile_n, cout), lambda i: (i, 0)),
                   pl.BlockSpec((tile_n, cout), lambda i: (i, 0))),
        compiler_params=_compiler_params(("parallel",)),
    )(*xs, wd, wb, b)


def edge_combine(t, s_nb, tile_n):
    Np, cout = t.shape
    k = s_nb.shape[0]
    return pl.pallas_call(
        functools.partial(_combine_kernel, k=k),
        out_shape=jax.ShapeDtypeStruct((Np, cout), jnp.bfloat16),
        grid=(Np // tile_n,),
        in_specs=[pl.BlockSpec((tile_n, cout), lambda i: (i, 0)),
                  pl.BlockSpec((k, tile_n, cout), lambda i: (0, i, 0))],
        out_specs=pl.BlockSpec((tile_n, cout), lambda i: (i, 0)),
        compiler_params=_compiler_params(("parallel",)),
    )(t, s_nb)


def edge_combine_transform(t, s_nb, wd_next, wb_next, b_next, tile_n):
    Np, cout = t.shape
    k = s_nb.shape[0]
    cnext = wd_next.shape[1]
    return pl.pallas_call(
        functools.partial(_combine_transform_kernel, k=k),
        out_shape=(jax.ShapeDtypeStruct((Np, cout), jnp.bfloat16),
                   jax.ShapeDtypeStruct((Np, cnext), jnp.bfloat16),
                   jax.ShapeDtypeStruct((Np, cnext), jnp.bfloat16)),
        grid=(Np // tile_n,),
        in_specs=[pl.BlockSpec((tile_n, cout), lambda i: (i, 0)),
                  pl.BlockSpec((k, tile_n, cout), lambda i: (0, i, 0)),
                  pl.BlockSpec(wd_next.shape, lambda i: (0, 0)),
                  pl.BlockSpec(wb_next.shape, lambda i: (0, 0)),
                  pl.BlockSpec(b_next.shape, lambda i: (0, 0))],
        out_specs=(pl.BlockSpec((tile_n, cout), lambda i: (i, 0)),
                   pl.BlockSpec((tile_n, cnext), lambda i: (i, 0)),
                   pl.BlockSpec((tile_n, cnext), lambda i: (i, 0))),
        compiler_params=_compiler_params(("parallel",)),
    )(t, s_nb, wd_next, wb_next, b_next)


def _head_point_tile(p, b, h):
    cap = max(8, _TILE_BUDGET // max(b * h * 4, 1))
    for t in range(min(p, cap), 7, -1):
        if p % t == 0 and t % 8 == 0:
            return t
    return p


def head(x_bph, w1m, w1a, b1, w2, b2, w3p, b3p, num_classes):
    B, P, H = x_bph.shape
    CPAD = w3p.shape[1]
    weights = (w1m, w1a, b1, w2, b2, w3p, b3p)
    w_specs = [pl.BlockSpec(a.shape, lambda p: (0, 0)) for a in weights]
    if B * P * H * 2 <= _HEAD_SINGLE_LIMIT:
        out = pl.pallas_call(
            functools.partial(_head_single_kernel, inv_p=1.0 / P),
            out_shape=jax.ShapeDtypeStruct((B, CPAD), jnp.float32),
            grid=(1,),
            in_specs=[pl.BlockSpec((B, P, H), lambda p: (0, 0, 0))] + w_specs,
            out_specs=pl.BlockSpec((B, CPAD), lambda p: (0, 0)),
            compiler_params=_compiler_params(("arbitrary",)),
        )(x_bph, *weights)
    else:
        TP = _head_point_tile(P, B, H)
        out = pl.pallas_call(
            functools.partial(_head_tiled_kernel, inv_p=1.0 / P),
            out_shape=jax.ShapeDtypeStruct((B, CPAD), jnp.float32),
            grid=(P // TP,),
            in_specs=[pl.BlockSpec((B, TP, H), lambda p: (0, p, 0))] + w_specs,
            out_specs=pl.BlockSpec((B, CPAD), lambda p: (0, 0)),
            scratch_shapes=[pltpu.VMEM((B, H), jnp.float32),
                            pltpu.VMEM((B, H), jnp.float32)],
            compiler_params=_compiler_params(("arbitrary",)),
        )(x_bph, *weights)
    return out[:, :num_classes]


# ---------------------------------------------------------------------------
# Plain-JAX glue: knn graph, parameter construction, model forward
# ---------------------------------------------------------------------------
def knn_indices(pos, B, P, k):
    """knn_graph(pos, k, batch, loop=True); batch = repeat(arange(B), P).
    Distance via ||p_i||^2 + ||p_j||^2 - 2 p@p^T (batched MXU matmul)."""
    p = pos.reshape(B, P, -1)
    sq = jnp.sum(p * p, axis=-1)
    d = sq[:, :, None] + sq[:, None, :] - 2.0 * jnp.einsum("bid,bjd->bij", p, p)
    _, idx = jax.lax.top_k(-d, k)                 # self included (distance ~0)
    idx = idx + jnp.arange(B)[:, None, None] * P
    return idx.reshape(B * P, k)


def fold_bn_into_linear(w, b, gamma, beta, mean, var, eps=BN_EPS):
    scale = gamma / jnp.sqrt(var + eps)
    w_f = w * scale[None, :]
    b0 = jnp.zeros((w.shape[1],), jnp.float32) if b is None else b
    b_f = (b0 - mean) * scale + beta
    return w_f, b_f.reshape(1, -1)


def init_linear(key, fan_in, fan_out, bias=True):
    kw, kb = jax.random.split(key)
    bound = 1.0 / jnp.sqrt(jnp.float32(fan_in))
    w = jax.random.uniform(kw, (fan_in, fan_out), jnp.float32, -bound, bound)
    b = (jax.random.uniform(kb, (fan_out,), jnp.float32, -bound, bound)
         if bias else None)
    return w, b


def _bn_identity(c):
    return (jnp.ones(c), jnp.zeros(c), jnp.zeros(c), jnp.ones(c))


def make_edge_conv_params(key, c_in, c_out, c_in_pad=None):
    """Linear(2*c_in, c_out)+BN folded; split into Wd = Wa - Wb and Wb so that
    concat([x_i, x_j - x_i]) @ W + b == x_i @ Wd + b  +  x_j @ Wb."""
    w, b = init_linear(key, 2 * c_in, c_out)
    w_f, b_f = fold_bn_into_linear(w, b, *_bn_identity(c_out))
    wa, wb = w_f[:c_in], w_f[c_in:]
    wd = wa - wb
    if c_in_pad is not None and c_in_pad > c_in:
        pad = ((0, c_in_pad - c_in), (0, 0))
        wd = jnp.pad(wd, pad)
        wb = jnp.pad(wb, pad)
    return wd.astype(jnp.bfloat16), wb.astype(jnp.bfloat16), b_f


def make_params(key, num_features, nhid, num_classes):
    keys = jax.random.split(key, 8)
    cin0 = _round_up(num_features, 16)            # bf16 sublane alignment
    params = {}
    dims = [(num_features, 64), (64, 64), (64, 128), (128, 256), (512, nhid)]
    for i, (ci, co) in enumerate(dims):
        params[f"ec{i + 1}"] = make_edge_conv_params(
            keys[i], ci, co, cin0 if i == 0 else None)

    # Head: Linear(2*nhid,512,no bias)+BN6, Linear(512,256)+BN7, Linear(256,nc)
    w1, _ = init_linear(keys[5], nhid * 2, 512, bias=False)
    w1f, b1f = fold_bn_into_linear(w1, None, *_bn_identity(512))
    params["w1_max"] = w1f[:nhid].astype(jnp.bfloat16)     # max-pool half
    params["w1_mean"] = w1f[nhid:].astype(jnp.bfloat16)    # mean-pool half
    params["b1"] = b1f

    w2, b2 = init_linear(keys[6], 512, 256)
    w2f, b2f = fold_bn_into_linear(w2, b2, *_bn_identity(256))
    params["w2"] = w2f.astype(jnp.bfloat16)
    params["b2"] = b2f

    w3, b3 = init_linear(keys[7], 256, num_classes)
    cpad = _round_up(num_classes, 128)                      # lane-dense output
    params["w3"] = jnp.pad(w3, ((0, 0), (0, cpad - num_classes))
                           ).astype(jnp.bfloat16)
    params["b3"] = jnp.pad(b3.reshape(1, -1),
                           ((0, 0), (0, cpad - num_classes)))
    return params


def edge_conv_model_forward(pos, params, *, B, P, k, num_classes):
    N = B * P
    F = pos.shape[1]
    cin0 = _round_up(F, 16)
    nhid = params["ec5"][0].shape[1]

    # Shared node tile sized from the heaviest per-row VMEM footprint.
    per_row = max(
        4 * (cin0 + 2 * 64),                 # ec1 transform
        4 * (64 * (k + 2) + 2 * 64),         # combine1 + transform2
        4 * (64 * (k + 2) + 2 * 128),        # combine2 + transform3
        4 * (128 * (k + 2) + 2 * 256),       # combine3 + transform4
        4 * (256 * (k + 2)),                 # combine4
        4 * (512 + 2 * nhid),                # ec5 transform (4 inputs)
        4 * (nhid * (k + 2)),                # combine5
    )
    TN, G = _node_tile(N, per_row)
    Np = TN * G

    idx = knn_indices(pos, B, P, k)                               # (N, k)
    idx_t = jnp.pad(idx, ((0, Np - N), (0, 0))).T                 # (k, Np)
    x0 = jnp.pad(pos.astype(jnp.bfloat16), ((0, Np - N), (0, cin0 - F)))

    # ec1 per-node matmul -> (t1, s1)
    wd, wb, b = params["ec1"]
    t, s = node_transform([x0], wd, wb, b, TN, (cin0,))

    # layers 1-3: fused [combine -> next-layer matmul]
    hs = []
    for i in (2, 3, 4):
        # TODO(synk): neighbour row gather stays in XLA; a Pallas in-kernel
        # gather (scalar per-row dynamic loads / tiny DMAs) measured slower
        # than the HBM-bound XLA gather, so only the layout was optimized.
        sg = jnp.take(s, idx_t, axis=0)                           # (k, Np, C)
        wd, wb, b = params[f"ec{i}"]
        h, t, s = edge_combine_transform(t, sg, wd, wb, b, TN)
        hs.append(h)

    # layer 4 combine -> x4
    sg = jnp.take(s, idx_t, axis=0)
    hs.append(edge_combine(t, sg, TN))

    # ec5 transform directly from x1..x4 (no concat materialization)
    wd, wb, b = params["ec5"]
    t5, s5 = node_transform(hs, wd, wb, b, TN, (64, 64, 128, 256))
    sg5 = jnp.take(s5, idx_t, axis=0)
    x5 = edge_combine(t5, sg5, TN)                                # (Np, nhid)

    # Dropout layers are identity in eval mode; SAGPooling is unused in forward().
    x = x5[:N].reshape(B, P, nhid)
    return head(x, params["w1_max"], params["w1_mean"], params["b1"],
                params["w2"], params["b2"], params["w3"], params["b3"],
                num_classes)


if __name__ == "__main__":
    B, P, F, K = 2, 32, 3, 8          # 2 graphs, 32 points each, 3-D pos, k=8
    NHID, NUM_CLASSES = 64, 4
    key = jax.random.PRNGKey(0)
    k_pos, k_par = jax.random.split(key)
    pos = jax.random.normal(k_pos, (B * P, F), jnp.float32)
    params = make_params(k_par, F, NHID, NUM_CLASSES)

    fwd = jax.jit(functools.partial(edge_conv_model_forward,
                                    B=B, P=P, k=K, num_classes=NUM_CLASSES))
    out = fwd(pos, params)
    jax.block_until_ready(out)
    assert out.shape == (B, NUM_CLASSES) and out.dtype == jnp.float32
    assert bool(jnp.all(jnp.isfinite(out)))
    print("KERNEL_OK")
</pallas_src>

<mosaic_0001>
module attributes {stable_mosaic.version = 11 : i64} {
  func.func @_transform_kernel(%arg0: i32, %arg1: memref<32x16xbf16, #tpu.memory_space<vmem>>, %arg2: memref<16x64xbf16, #tpu.memory_space<vmem>>, %arg3: memref<16x64xbf16, #tpu.memory_space<vmem>>, %arg4: memref<1x64xf32, #tpu.memory_space<vmem>>, %arg5: memref<32x64xbf16, #tpu.memory_space<vmem>>, %arg6: memref<32x64xbf16, #tpu.memory_space<vmem>>) attributes {dimension_semantics = [#tpu.dimension_semantics<parallel>], iteration_bounds = array<i64: 2>, scalar_prefetch = 0 : i64, scratch_operands = 0 : i64, tpu.core_type = #tpu.core_type<tc>, window_params = [{transform_indices = @transform_0, window_bounds = array<i64: 32, 16>}, {pipeline_mode = #tpu.pipeline_mode<synchronous>, transform_indices = @transform_1, window_bounds = array<i64: 16, 64>}, {pipeline_mode = #tpu.pipeline_mode<synchronous>, transform_indices = @transform_2, window_bounds = array<i64: 16, 64>}, {pipeline_mode = #tpu.pipeline_mode<synchronous>, transform_indices = @transform_3, window_bounds = array<i64: 1, 64>}, {transform_indices = @transform_4, window_bounds = array<i64: 32, 64>}, {transform_indices = @transform_5, window_bounds = array<i64: 32, 64>}]} {
    %c0 = arith.constant 0 : index
    %c0_0 = arith.constant 0 : index
    %0 = vector.load %arg1[%c0, %c0_0] : memref<32x16xbf16, #tpu.memory_space<vmem>>, vector<32x16xbf16>
    %c0_1 = arith.constant 0 : index
    %c0_2 = arith.constant 0 : index
    %1 = vector.load %arg2[%c0_1, %c0_2] : memref<16x64xbf16, #tpu.memory_space<vmem>>, vector<16x64xbf16>
    %cst = arith.constant dense<0.000000e+00> : vector<32x64xf32>
    %2 = tpu.matmul %0, %1, %cst {dimension_numbers = #tpu.dot_dimension_numbers<[1], [0], [0], [1], [0, 0, 1, 1], [], []>} : vector<32x16xbf16>, vector<16x64xbf16>, vector<32x64xf32> -> vector<32x64xf32>
    %c0_3 = arith.constant 0 : index
    %c0_4 = arith.constant 0 : index
    %3 = vector.load %arg3[%c0_3, %c0_4] : memref<16x64xbf16, #tpu.memory_space<vmem>>, vector<16x64xbf16>
    %cst_5 = arith.constant dense<0.000000e+00> : vector<32x64xf32>
    %4 = tpu.matmul %0, %3, %cst_5 {dimension_numbers = #tpu.dot_dimension_numbers<[1], [0], [0], [1], [0, 0, 1, 1], [], []>} : vector<32x16xbf16>, vector<16x64xbf16>, vector<32x64xf32> -> vector<32x64xf32>
    %c0_6 = arith.constant 0 : index
    %c0_7 = arith.constant 0 : index
    %5 = vector.load %arg4[%c0_6, %c0_7] : memref<1x64xf32, #tpu.memory_space<vmem>>, vector<1x64xf32>
    %6 = vector.broadcast %5 : vector<1x64xf32> to vector<32x64xf32>
    %7 = arith.addf %2, %6 : vector<32x64xf32>
    %8 = arith.truncf %7 : vector<32x64xf32> to vector<32x64xbf16>
    %c0_8 = arith.constant 0 : index
    %c0_9 = arith.constant 0 : index
    %9 = vector.load %arg5[%c0_8, %c0_9] : memref<32x64xbf16, #tpu.memory_space<vmem>>, vector<32x64xbf16>
    tpu.vector_store %arg5[%c0_8, %c0_9], %8 {strides = array<i32>} : memref<32x64xbf16, #tpu.memory_space<vmem>>, vector<32x64xbf16>,
    %10 = arith.truncf %4 : vector<32x64xf32> to vector<32x64xbf16>
    %c0_10 = arith.constant 0 : index
    %c0_11 = arith.constant 0 : index
    %11 = vector.load %arg6[%c0_10, %c0_11] : memref<32x64xbf16, #tpu.memory_space<vmem>>, vector<32x64xbf16>
    tpu.vector_store %arg6[%c0_10, %c0_11], %10 {strides = array<i32>} : memref<32x64xbf16, #tpu.memory_space<vmem>>, vector<32x64xbf16>,
    return
  }
  func.func @transform_0(%arg0: i32) -> (i32, i32) {
    %c0_i32 = arith.constant 0 : i32
    %c0_i32_0 = arith.constant 0 : i32
    return %arg0, %c0_i32 : i32, i32
  }
  func.func @transform_1(%arg0: i32) -> (i32, i32) {
    %c0_i32 = arith.constant 0 : i32
    %c0_i32_0 = arith.constant 0 : i32
    %c0_i32_1 = arith.constant 0 : i32
    return %c0_i32, %c0_i32_0 : i32, i32
  }
  func.func @transform_2(%arg0: i32) -> (i32, i32) {
    %c0_i32 = arith.constant 0 : i32
    %c0_i32_0 = arith.constant 0 : i32
    %c0_i32_1 = arith.constant 0 : i32
    return %c0_i32, %c0_i32_0 : i32, i32
  }
  func.func @transform_3(%arg0: i32) -> (i32, i32) {
    %c0_i32 = arith.constant 0 : i32
    %c0_i32_0 = arith.constant 0 : i32
    %c0_i32_1 = arith.constant 0 : i32
    return %c0_i32, %c0_i32_0 : i32, i32
  }
  func.func @transform_4(%arg0: i32) -> (i32, i32) {
    %c0_i32 = arith.constant 0 : i32
    %c0_i32_0 = arith.constant 0 : i32
    return %arg0, %c0_i32 : i32, i32
  }
  func.func @transform_5(%arg0: i32) -> (i32, i32) {
    %c0_i32 = arith.constant 0 : i32
    %c0_i32_0 = arith.constant 0 : i32
    return %arg0, %c0_i32 : i32, i32
  }
}

module attributes {stable_mosaic.version = 11 : i64} {
  func.func @_combine_transform_kernel(%arg0: i32, %arg1: memref<32x64xbf16, #tpu.memory_space<vmem>>, %arg2: memref<8x32x64xbf16, #tpu.memory_space<vmem>>, %arg3: memref<64x64xbf16, #tpu.memory_space<vmem>>, %arg4: memref<64x64xbf16, #tpu.memory_space<vmem>>, %arg5: memref<1x64xf32, #tpu.memory_space<vmem>>, %arg6: memref<32x64xbf16, #tpu.memory_space<vmem>>, %arg7: memref<32x64xbf16, #tpu.memory_space<vmem>>, %arg8: memref<32x64xbf16, #tpu.memory_space<vmem>>) attributes {dimension_semantics = [#tpu.dimension_semantics<parallel>], iteration_bounds = array<i64: 2>, scalar_prefetch = 0 : i64, scratch_operands = 0 : i64, tpu.core_type = #tpu.core_type<tc>, window_params = [{transform_indices = @transform_0, window_bounds = array<i64: 32, 64>}, {transform_indices = @transform_1, window_bounds = array<i64: 8, 32, 64>}, {pipeline_mode = #tpu.pipeline_mode<synchronous>, transform_indices = @transform_2, window_bounds = array<i64: 64, 64>}, {pipeline_mode = #tpu.pipeline_mode<synchronous>, transform_indices = @transform_3, window_bounds = array<i64: 64, 64>}, {pipeline_mode = #tpu.pipeline_mode<synchronous>, transform_indices = @transform_4, window_bounds = array<i64: 1, 64>}, {transform_indices = @transform_5, window_bounds = array<i64: 32, 64>}, {transform_indices = @transform_6, window_bounds = array<i64: 32, 64>}, {transform_indices = @transform_7, window_bounds = array<i64: 32, 64>}]} {
    %c0 = arith.constant 0 : index
    %c0_0 = arith.constant 0 : index
    %c0_1 = arith.constant 0 : index
    %0 = vector.load %arg2[%c0, %c0_0, %c0_1] : memref<8x32x64xbf16, #tpu.memory_space<vmem>>, vector<1x32x64xbf16>
    %1 = vector.shape_cast %0 : vector<1x32x64xbf16> to vector<32x64xbf16>
    %c1 = arith.constant 1 : index
    %c0_2 = arith.constant 0 : index
    %c0_3 = arith.constant 0 : index
    %2 = vector.load %arg2[%c1, %c0_2, %c0_3] : memref<8x32x64xbf16, #tpu.memory_space<vmem>>, vector<1x32x64xbf16>
    %3 = vector.shape_cast %2 : vector<1x32x64xbf16> to vector<32x64xbf16>
    %4 = arith.maximumf %1, %3 : vector<32x64xbf16>
    %c2 = arith.constant 2 : index
    %c0_4 = arith.constant 0 : index
    %c0_5 = arith.constant 0 : index
    %5 = vector.load %arg2[%c2, %c0_4, %c0_5] : memref<8x32x64xbf16, #tpu.memory_space<vmem>>, vector<1x32x64xbf16>
    %6 = vector.shape_cast %5 : vector<1x32x64xbf16> to vector<32x64xbf16>
    %7 = arith.maximumf %4, %6 : vector<32x64xbf16>
    %c3 = arith.constant 3 : index
    %c0_6 = arith.constant 0 : index
    %c0_7 = arith.constant 0 : index
    %8 = vector.load %arg2[%c3, %c0_6, %c0_7] : memref<8x32x64xbf16, #tpu.memory_space<vmem>>, vector<1x32x64xbf16>
    %9 = vector.shape_cast %8 : vector<1x32x64xbf16> to vector<32x64xbf16>
    %10 = arith.maximumf %7, %9 : vector<32x64xbf16>
    %c4 = arith.constant 4 : index
    %c0_8 = arith.constant 0 : index
    %c0_9 = arith.constant 0 : index
    %11 = vector.load %arg2[%c4, %c0_8, %c0_9] : memref<8x32x64xbf16, #tpu.memory_space<vmem>>, vector<1x32x64xbf16>
    %12 = vector.shape_cast %11 : vector<1x32x64xbf16> to vector<32x64xbf16>
    %13 = arith.maximumf %10, %12 : vector<32x64xbf16>
    %c5 = arith.constant 5 : index
    %c0_10 = arith.constant 0 : index
    %c0_11 = arith.constant 0 : index
    %14 = vector.load %arg2[%c5, %c0_10, %c0_11] : memref<8x32x64xbf16, #tpu.memory_space<vmem>>, vector<1x32x64xbf16>
    %15 = vector.shape_cast %14 : vector<1x32x64xbf16> to vector<32x64xbf16>
    %16 = arith.maximumf %13, %15 : vector<32x64xbf16>
    %c6 = arith.constant 6 : index
    %c0_12 = arith.constant 0 : index
    %c0_13 = arith.constant 0 : index
    %17 = vector.load %arg2[%c6, %c0_12, %c0_13] : memref<8x32x64xbf16, #tpu.memory_space<vmem>>, vector<1x32x64xbf16>
    %18 = vector.shape_cast %17 : vector<1x32x64xbf16> to vector<32x64xbf16>
    %19 = arith.maximumf %16, %18 : vector<32x64xbf16>
    %c7 = arith.constant 7 : index
    %c0_14 = arith.constant 0 : index
    %c0_15 = arith.constant 0 : index
    %20 = vector.load %arg2[%c7, %c0_14, %c0_15] : memref<8x32x64xbf16, #tpu.memory_space<vmem>>, vector<1x32x64xbf16>
    %21 = vector.shape_cast %20 : vector<1x32x64xbf16> to vector<32x64xbf16>
    %22 = arith.maximumf %19, %21 : vector<32x64xbf16>
    %c0_16 = arith.constant 0 : index
    %c0_17 = arith.constant 0 : index
    %23 = vector.load %arg1[%c0_16, %c0_17] : memref<32x64xbf16, #tpu.memory_space<vmem>>, vector<32x64xbf16>
    %24 = arith.extf %23 : vector<32x64xbf16> to vector<32x64xf32>
    %25 = arith.extf %22 : vector<32x64xbf16> to vector<32x64xf32>
    %26 = arith.addf %24, %25 : vector<32x64xf32>
    %cst = arith.constant 2.000000e-01 : f32
    %27 = vector.broadcast %cst : f32 to vector<32x64xf32>
    %28 = arith.mulf %27, %26 : vector<32x64xf32>
    %29 = arith.maximumf %26, %28 : vector<32x64xf32>
    %30 = arith.truncf %29 : vector<32x64xf32> to vector<32x64xbf16>
    %c0_18 = arith.constant 0 : index
    %c0_19 = arith.constant 0 : index
    %31 = vector.load %arg6[%c0_18, %c0_19] : memref<32x64xbf16, #tpu.memory_space<vmem>>, vector<32x64xbf16>
    tpu.vector_store %arg6[%c0_18, %c0_19], %30 {strides = array<i32>} : memref<32x64xbf16, #tpu.memory_space<vmem>>, vector<32x64xbf16>,
    %c0_20 = arith.constant 0 : index
    %c0_21 = arith.constant 0 : index
    %32 = vector.load %arg3[%c0_20, %c0_21] : memref<64x64xbf16, #tpu.memory_space<vmem>>, vector<64x64xbf16>
    %cst_22 = arith.constant dense<0.000000e+00> : vector<32x64xf32>
    %33 = tpu.matmul %30, %32, %cst_22 {dimension_numbers = #tpu.dot_dimension_numbers<[1], [0], [0], [1], [0, 0, 1, 1], [], []>} : vector<32x64xbf16>, vector<64x64xbf16>, vector<32x64xf32> -> vector<32x64xf32>
    %c0_23 = arith.constant 0 : index
    %c0_24 = arith.constant 0 : index
    %34 = vector.load %arg5[%c0_23, %c0_24] : memref<1x64xf32, #tpu.memory_space<vmem>>, vector<1x64xf32>
    %35 = vector.broadcast %34 : vector<1x64xf32> to vector<32x64xf32>
    %36 = arith.addf %33, %35 : vector<32x64xf32>
    %37 = arith.truncf %36 : vector<32x64xf32> to vector<32x64xbf16>
    %c0_25 = arith.constant 0 : index
    %c0_26 = arith.constant 0 : index
    %38 = vector.load %arg7[%c0_25, %c0_26] : memref<32x64xbf16, #tpu.memory_space<vmem>>, vector<32x64xbf16>
    tpu.vector_store %arg7[%c0_25, %c0_26], %37 {strides = array<i32>} : memref<32x64xbf16, #tpu.memory_space<vmem>>, vector<32x64xbf16>,
    %c0_27 = arith.constant 0 : index
    %c0_28 = arith.constant 0 : index
    %39 = vector.load %arg4[%c0_27, %c0_28] : memref<64x64xbf16, #tpu.memory_space<vmem>>, vector<64x64xbf16>
    %cst_29 = arith.constant dense<0.000000e+00> : vector<32x64xf32>
    %40 = tpu.matmul %30, %39, %cst_29 {dimension_numbers = #tpu.dot_dimension_numbers<[1], [0], [0], [1], [0, 0, 1, 1], [], []>} : vector<32x64xbf16>, vector<64x64xbf16>, vector<32x64xf32> -> vector<32x64xf32>
    %41 = arith.truncf %40 : vector<32x64xf32> to vector<32x64xbf16>
    %c0_30 = arith.constant 0 : index
    %c0_31 = arith.constant 0 : index
    %42 = vector.load %arg8[%c0_30, %c0_31] : memref<32x64xbf16, #tpu.memory_space<vmem>>, vector<32x64xbf16>
    tpu.vector_store %arg8[%c0_30, %c0_31], %41 {strides = array<i32>} : memref<32x64xbf16, #tpu.memory_space<vmem>>, vector<32x64xbf16>,
    return
  }
  func.func @transform_0(%arg0: i32) -> (i32, i32) {
    %c0_i32 = arith.constant 0 : i32
    %c0_i32_0 = arith.constant 0 : i32
    return %arg0, %c0_i32 : i32, i32
  }
  func.func @transform_1(%arg0: i32) -> (i32, i32, i32) {
    %c0_i32 = arith.constant 0 : i32
    %c0_i32_0 = arith.constant 0 : i32
    %c0_i32_1 = arith.constant 0 : i32
    return %c0_i32, %arg0, %c0_i32_0 : i32, i32, i32
  }
  func.func @transform_2(%arg0: i32) -> (i32, i32) {
    %c0_i32 = arith.constant 0 : i32
    %c0_i32_0 = arith.constant 0 : i32
    %c0_i32_1 = arith.constant 0 : i32
    return %c0_i32, %c0_i32_0 : i32, i32
  }
  func.func @transform_3(%arg0: i32) -> (i32, i32) {
    %c0_i32 = arith.constant 0 : i32
    %c0_i32_0 = arith.constant 0 : i32
    %c0_i32_1 = arith.constant 0 : i32
    return %c0_i32, %c0_i32_0 : i32, i32
  }
  func.func @transform_4(%arg0: i32) -> (i32, i32) {
    %c0_i32 = arith.constant 0 : i32
    %c0_i32_0 = arith.constant 0 : i32
    %c0_i32_1 = arith.constant 0 : i32
    return %c0_i32, %c0_i32_0 : i32, i32
  }
  func.func @transform_5(%arg0: i32) -> (i32, i32) {
    %c0_i32 = arith.constant 0 : i32
    %c0_i32_0 = arith.constant 0 : i32
    return %arg0, %c0_i32 : i32, i32
  }
  func.func @transform_6(%arg0: i32) -> (i32, i32) {
    %c0_i32 = arith.constant 0 : i32
    %c0_i32_0 = arith.constant 0 : i32
    return %arg0, %c0_i32 : i32, i32
  }
  func.func @transform_7(%arg0: i32) -> (i32, i32) {
    %c0_i32 = arith.constant 0 : i32
    %c0_i32_0 = arith.constant 0 : i32
    return %arg0, %c0_i32 : i32, i32
  }
}

module attributes {stable_mosaic.version = 11 : i64} {
  func.func @_combine_transform_kernel(%arg0: i32, %arg1: memref<32x64xbf16, #tpu.memory_space<vmem>>, %arg2: memref<8x32x64xbf16, #tpu.memory_space<vmem>>, %arg3: memref<64x128xbf16, #tpu.memory_space<vmem>>, %arg4: memref<64x128xbf16, #tpu.memory_space<vmem>>, %arg5: memref<1x128xf32, #tpu.memory_space<vmem>>, %arg6: memref<32x64xbf16, #tpu.memory_space<vmem>>, %arg7: memref<32x128xbf16, #tpu.memory_space<vmem>>, %arg8: memref<32x128xbf16, #tpu.memory_space<vmem>>) attributes {dimension_semantics = [#tpu.dimension_semantics<parallel>], iteration_bounds = array<i64: 2>, scalar_prefetch = 0 : i64, scratch_operands = 0 : i64, tpu.core_type = #tpu.core_type<tc>, window_params = [{transform_indices = @transform_0, window_bounds = array<i64: 32, 64>}, {transform_indices = @transform_1, window_bounds = array<i64: 8, 32, 64>}, {pipeline_mode = #tpu.pipeline_mode<synchronous>, transform_indices = @transform_2, window_bounds = array<i64: 64, 128>}, {pipeline_mode = #tpu.pipeline_mode<synchronous>, transform_indices = @transform_3, window_bounds = array<i64: 64, 128>}, {pipeline_mode = #tpu.pipeline_mode<synchronous>, transform_indices = @transform_4, window_bounds = array<i64: 1, 128>}, {transform_indices = @transform_5, window_bounds = array<i64: 32, 64>}, {transform_indices = @transform_6, window_bounds = array<i64: 32, 128>}, {transform_indices = @transform_7, window_bounds = array<i64: 32, 128>}]} {
    %c0 = arith.constant 0 : index
    %c0_0 = arith.constant 0 : index
    %c0_1 = arith.constant 0 : index
    %0 = vector.load %arg2[%c0, %c0_0, %c0_1] : memref<8x32x64xbf16, #tpu.memory_space<vmem>>, vector<1x32x64xbf16>
    %1 = vector.shape_cast %0 : vector<1x32x64xbf16> to vector<32x64xbf16>
    %c1 = arith.constant 1 : index
    %c0_2 = arith.constant 0 : index
    %c0_3 = arith.constant 0 : index
    %2 = vector.load %arg2[%c1, %c0_2, %c0_3] : memref<8x32x64xbf16, #tpu.memory_space<vmem>>, vector<1x32x64xbf16>
    %3 = vector.shape_cast %2 : vector<1x32x64xbf16> to vector<32x64xbf16>
    %4 = arith.maximumf %1, %3 : vector<32x64xbf16>
    %c2 = arith.constant 2 : index
    %c0_4 = arith.constant 0 : index
    %c0_5 = arith.constant 0 : index
    %5 = vector.load %arg2[%c2, %c0_4, %c0_5] : memref<8x32x64xbf16, #tpu.memory_space<vmem>>, vector<1x32x64xbf16>
    %6 = vector.shape_cast %5 : vector<1x32x64xbf16> to vector<32x64xbf16>
    %7 = arith.maximumf %4, %6 : vector<32x64xbf16>
    %c3 = arith.constant 3 : index
    %c0_6 = arith.constant 0 : index
    %c0_7 = arith.constant 0 : index
    %8 = vector.load %arg2[%c3, %c0_6, %c0_7] : memref<8x32x64xbf16, #tpu.memory_space<vmem>>, vector<1x32x64xbf16>
    %9 = vector.shape_cast %8 : vector<1x32x64xbf16> to vector<32x64xbf16>
    %10 = arith.maximumf %7, %9 : vector<32x64xbf16>
    %c4 = arith.constant 4 : index
    %c0_8 = arith.constant 0 : index
    %c0_9 = arith.constant 0 : index
    %11 = vector.load %arg2[%c4, %c0_8, %c0_9] : memref<8x32x64xbf16, #tpu.memory_space<vmem>>, vector<1x32x64xbf16>
    %12 = vector.shape_cast %11 : vector<1x32x64xbf16> to vector<32x64xbf16>
    %13 = arith.maximumf %10, %12 : vector<32x64xbf16>
    %c5 = arith.constant 5 : index
    %c0_10 = arith.constant 0 : index
    %c0_11 = arith.constant 0 : index
    %14 = vector.load %arg2[%c5, %c0_10, %c0_11] : memref<8x32x64xbf16, #tpu.memory_space<vmem>>, vector<1x32x64xbf16>
    %15 = vector.shape_cast %14 : vector<1x32x64xbf16> to vector<32x64xbf16>
    %16 = arith.maximumf %13, %15 : vector<32x64xbf16>
    %c6 = arith.constant 6 : index
    %c0_12 = arith.constant 0 : index
    %c0_13 = arith.constant 0 : index
    %17 = vector.load %arg2[%c6, %c0_12, %c0_13] : memref<8x32x64xbf16, #tpu.memory_space<vmem>>, vector<1x32x64xbf16>
    %18 = vector.shape_cast %17 : vector<1x32x64xbf16> to vector<32x64xbf16>
    %19 = arith.maximumf %16, %18 : vector<32x64xbf16>
    %c7 = arith.constant 7 : index
    %c0_14 = arith.constant 0 : index
    %c0_15 = arith.constant 0 : index
    %20 = vector.load %arg2[%c7, %c0_14, %c0_15] : memref<8x32x64xbf16, #tpu.memory_space<vmem>>, vector<1x32x64xbf16>
    %21 = vector.shape_cast %20 : vector<1x32x64xbf16> to vector<32x64xbf16>
    %22 = arith.maximumf %19, %21 : vector<32x64xbf16>
    %c0_16 = arith.constant 0 : index
    %c0_17 = arith.constant 0 : index
    %23 = vector.load %arg1[%c0_16, %c0_17] : memref<32x64xbf16, #tpu.memory_space<vmem>>, vector<32x64xbf16>
    %24 = arith.extf %23 : vector<32x64xbf16> to vector<32x64xf32>
    %25 = arith.extf %22 : vector<32x64xbf16> to vector<32x64xf32>
    %26 = arith.addf %24, %25 : vector<32x64xf32>
    %cst = arith.constant 2.000000e-01 : f32
    %27 = vector.broadcast %cst : f32 to vector<32x64xf32>
    %28 = arith.mulf %27, %26 : vector<32x64xf32>
    %29 = arith.maximumf %26, %28 : vector<32x64xf32>
    %30 = arith.truncf %29 : vector<32x64xf32> to vector<32x64xbf16>
    %c0_18 = arith.constant 0 : index
    %c0_19 = arith.constant 0 : index
    %31 = vector.load %arg6[%c0_18, %c0_19] : memref<32x64xbf16, #tpu.memory_space<vmem>>, vector<32x64xbf16>
    tpu.vector_store %arg6[%c0_18, %c0_19], %30 {strides = array<i32>} : memref<32x64xbf16, #tpu.memory_space<vmem>>, vector<32x64xbf16>,
    %c0_20 = arith.constant 0 : index
    %c0_21 = arith.constant 0 : index
    %32 = vector.load %arg3[%c0_20, %c0_21] : memref<64x128xbf16, #tpu.memory_space<vmem>>, vector<64x128xbf16>
    %cst_22 = arith.constant dense<0.000000e+00> : vector<32x128xf32>
    %33 = tpu.matmul %30, %32, %cst_22 {dimension_numbers = #tpu.dot_dimension_numbers<[1], [0], [0], [1], [0, 0, 1, 1], [], []>} : vector<32x64xbf16>, vector<64x128xbf16>, vector<32x128xf32> -> vector<32x128xf32>
    %c0_23 = arith.constant 0 : index
    %c0_24 = arith.constant 0 : index
    %34 = vector.load %arg5[%c0_23, %c0_24] : memref<1x128xf32, #tpu.memory_space<vmem>>, vector<1x128xf32>
    %35 = vector.broadcast %34 : vector<1x128xf32> to vector<32x128xf32>
    %36 = arith.addf %33, %35 : vector<32x128xf32>
    %37 = arith.truncf %36 : vector<32x128xf32> to vector<32x128xbf16>
    %c0_25 = arith.constant 0 : index
    %c0_26 = arith.constant 0 : index
    %38 = vector.load %arg7[%c0_25, %c0_26] : memref<32x128xbf16, #tpu.memory_space<vmem>>, vector<32x128xbf16>
    tpu.vector_store %arg7[%c0_25, %c0_26], %37 {strides = array<i32>} : memref<32x128xbf16, #tpu.memory_space<vmem>>, vector<32x128xbf16>,
    %c0_27 = arith.constant 0 : index
    %c0_28 = arith.constant 0 : index
    %39 = vector.load %arg4[%c0_27, %c0_28] : memref<64x128xbf16, #tpu.memory_space<vmem>>, vector<64x128xbf16>
    %cst_29 = arith.constant dense<0.000000e+00> : vector<32x128xf32>
    %40 = tpu.matmul %30, %39, %cst_29 {dimension_numbers = #tpu.dot_dimension_numbers<[1], [0], [0], [1], [0, 0, 1, 1], [], []>} : vector<32x64xbf16>, vector<64x128xbf16>, vector<32x128xf32> -> vector<32x128xf32>
    %41 = arith.truncf %40 : vector<32x128xf32> to vector<32x128xbf16>
    %c0_30 = arith.constant 0 : index
    %c0_31 = arith.constant 0 : index
    %42 = vector.load %arg8[%c0_30, %c0_31] : memref<32x128xbf16, #tpu.memory_space<vmem>>, vector<32x128xbf16>
    tpu.vector_store %arg8[%c0_30, %c0_31], %41 {strides = array<i32>} : memref<32x128xbf16, #tpu.memory_space<vmem>>, vector<32x128xbf16>,
    return
  }
  func.func @transform_0(%arg0: i32) -> (i32, i32) {
    %c0_i32 = arith.constant 0 : i32
    %c0_i32_0 = arith.constant 0 : i32
    return %arg0, %c0_i32 : i32, i32
  }
  func.func @transform_1(%arg0: i32) -> (i32, i32, i32) {
    %c0_i32 = arith.constant 0 : i32
    %c0_i32_0 = arith.constant 0 : i32
    %c0_i32_1 = arith.constant 0 : i32
    return %c0_i32, %arg0, %c0_i32_0 : i32, i32, i32
  }
  func.func @transform_2(%arg0: i32) -> (i32, i32) {
    %c0_i32 = arith.constant 0 : i32
    %c0_i32_0 = arith.constant 0 : i32
    %c0_i32_1 = arith.constant 0 : i32
    return %c0_i32, %c0_i32_0 : i32, i32
  }
  func.func @transform_3(%arg0: i32) -> (i32, i32) {
    %c0_i32 = arith.constant 0 : i32
    %c0_i32_0 = arith.constant 0 : i32
    %c0_i32_1 = arith.constant 0 : i32
    return %c0_i32, %c0_i32_0 : i32, i32
  }
  func.func @transform_4(%arg0: i32) -> (i32, i32) {
    %c0_i32 = arith.constant 0 : i32
    %c0_i32_0 = arith.constant 0 : i32
    %c0_i32_1 = arith.constant 0 : i32
    return %c0_i32, %c0_i32_0 : i32, i32
  }
  func.func @transform_5(%arg0: i32) -> (i32, i32) {
    %c0_i32 = arith.constant 0 : i32
    %c0_i32_0 = arith.constant 0 : i32
    return %arg0, %c0_i32 : i32, i32
  }
  func.func @transform_6(%arg0: i32) -> (i32, i32) {
    %c0_i32 = arith.constant 0 : i32
    %c0_i32_0 = arith.constant 0 : i32
    return %arg0, %c0_i32 : i32, i32
  }
  func.func @transform_7(%arg0: i32) -> (i32, i32) {
    %c0_i32 = arith.constant 0 : i32
    %c0_i32_0 = arith.constant 0 : i32
    return %arg0, %c0_i32 : i32, i32
  }
}

module attributes {stable_mosaic.version = 11 : i64} {
  func.func @_combine_transform_kernel(%arg0: i32, %arg1: memref<32x128xbf16, #tpu.memory_space<vmem>>, %arg2: memref<8x32x128xbf16, #tpu.memory_space<vmem>>, %arg3: memref<128x256xbf16, #tpu.memory_space<vmem>>, %arg4: memref<128x256xbf16, #tpu.memory_space<vmem>>, %arg5: memref<1x256xf32, #tpu.memory_space<vmem>>, %arg6: memref<32x128xbf16, #tpu.memory_space<vmem>>, %arg7: memref<32x256xbf16, #tpu.memory_space<vmem>>, %arg8: memref<32x256xbf16, #tpu.memory_space<vmem>>) attributes {dimension_semantics = [#tpu.dimension_semantics<parallel>], iteration_bounds = array<i64: 2>, scalar_prefetch = 0 : i64, scratch_operands = 0 : i64, tpu.core_type = #tpu.core_type<tc>, window_params = [{transform_indices = @transform_0, window_bounds = array<i64: 32, 128>}, {transform_indices = @transform_1, window_bounds = array<i64: 8, 32, 128>}, {pipeline_mode = #tpu.pipeline_mode<synchronous>, transform_indices = @transform_2, window_bounds = array<i64: 128, 256>}, {pipeline_mode = #tpu.pipeline_mode<synchronous>, transform_indices = @transform_3, window_bounds = array<i64: 128, 256>}, {pipeline_mode = #tpu.pipeline_mode<synchronous>, transform_indices = @transform_4, window_bounds = array<i64: 1, 256>}, {transform_indices = @transform_5, window_bounds = array<i64: 32, 128>}, {transform_indices = @transform_6, window_bounds = array<i64: 32, 256>}, {transform_indices = @transform_7, window_bounds = array<i64: 32, 256>}]} {
    %c0 = arith.constant 0 : index
    %c0_0 = arith.constant 0 : index
    %c0_1 = arith.constant 0 : index
    %0 = vector.load %arg2[%c0, %c0_0, %c0_1] : memref<8x32x128xbf16, #tpu.memory_space<vmem>>, vector<1x32x128xbf16>
    %1 = vector.shape_cast %0 : vector<1x32x128xbf16> to vector<32x128xbf16>
    %c1 = arith.constant 1 : index
    %c0_2 = arith.constant 0 : index
    %c0_3 = arith.constant 0 : index
    %2 = vector.load %arg2[%c1, %c0_2, %c0_3] : memref<8x32x128xbf16, #tpu.memory_space<vmem>>, vector<1x32x128xbf16>
    %3 = vector.shape_cast %2 : vector<1x32x128xbf16> to vector<32x128xbf16>
    %4 = arith.maximumf %1, %3 : vector<32x128xbf16>
    %c2 = arith.constant 2 : index
    %c0_4 = arith.constant 0 : index
    %c0_5 = arith.constant 0 : index
    %5 = vector.load %arg2[%c2, %c0_4, %c0_5] : memref<8x32x128xbf16, #tpu.memory_space<vmem>>, vector<1x32x128xbf16>
    %6 = vector.shape_cast %5 : vector<1x32x128xbf16> to vector<32x128xbf16>
    %7 = arith.maximumf %4, %6 : vector<32x128xbf16>
    %c3 = arith.constant 3 : index
    %c0_6 = arith.constant 0 : index
    %c0_7 = arith.constant 0 : index
    %8 = vector.load %arg2[%c3, %c0_6, %c0_7] : memref<8x32x128xbf16, #tpu.memory_space<vmem>>, vector<1x32x128xbf16>
    %9 = vector.shape_cast %8 : vector<1x32x128xbf16> to vector<32x128xbf16>
    %10 = arith.maximumf %7, %9 : vector<32x128xbf16>
    %c4 = arith.constant 4 : index
    %c0_8 = arith.constant 0 : index
    %c0_9 = arith.constant 0 : index
    %11 = vector.load %arg2[%c4, %c0_8, %c0_9] : memref<8x32x128xbf16, #tpu.memory_space<vmem>>, vector<1x32x128xbf16>
    %12 = vector.shape_cast %11 : vector<1x32x128xbf16> to vector<32x128xbf16>
    %13 = arith.maximumf %10, %12 : vector<32x128xbf16>
    %c5 = arith.constant 5 : index
    %c0_10 = arith.constant 0 : index
    %c0_11 = arith.constant 0 : index
    %14 = vector.load %arg2[%c5, %c0_10, %c0_11] : memref<8x32x128xbf16, #tpu.memory_space<vmem>>, vector<1x32x128xbf16>
    %15 = vector.shape_cast %14 : vector<1x32x128xbf16> to vector<32x128xbf16>
    %16 = arith.maximumf %13, %15 : vector<32x128xbf16>
    %c6 = arith.constant 6 : index
    %c0_12 = arith.constant 0 : index
    %c0_13 = arith.constant 0 : index
    %17 = vector.load %arg2[%c6, %c0_12, %c0_13] : memref<8x32x128xbf16, #tpu.memory_space<vmem>>, vector<1x32x128xbf16>
    %18 = vector.shape_cast %17 : vector<1x32x128xbf16> to vector<32x128xbf16>
    %19 = arith.maximumf %16, %18 : vector<32x128xbf16>
    %c7 = arith.constant 7 : index
    %c0_14 = arith.constant 0 : index
    %c0_15 = arith.constant 0 : index
    %20 = vector.load %arg2[%c7, %c0_14, %c0_15] : memref<8x32x128xbf16, #tpu.memory_space<vmem>>, vector<1x32x128xbf16>
    %21 = vector.shape_cast %20 : vector<1x32x128xbf16> to vector<32x128xbf16>
    %22 = arith.maximumf %19, %21 : vector<32x128xbf16>
    %c0_16 = arith.constant 0 : index
    %c0_17 = arith.constant 0 : index
    %23 = vector.load %arg1[%c0_16, %c0_17] : memref<32x128xbf16, #tpu.memory_space<vmem>>, vector<32x128xbf16>
    %24 = arith.extf %23 : vector<32x128xbf16> to vector<32x128xf32>
    %25 = arith.extf %22 : vector<32x128xbf16> to vector<32x128xf32>
    %26 = arith.addf %24, %25 : vector<32x128xf32>
    %cst = arith.constant 2.000000e-01 : f32
    %27 = vector.broadcast %cst : f32 to vector<32x128xf32>
    %28 = arith.mulf %27, %26 : vector<32x128xf32>
    %29 = arith.maximumf %26, %28 : vector<32x128xf32>
    %30 = arith.truncf %29 : vector<32x128xf32> to vector<32x128xbf16>
    %c0_18 = arith.constant 0 : index
    %c0_19 = arith.constant 0 : index
    %31 = vector.load %arg6[%c0_18, %c0_19] : memref<32x128xbf16, #tpu.memory_space<vmem>>, vector<32x128xbf16>
    tpu.vector_store %arg6[%c0_18, %c0_19], %30 {strides = array<i32>} : memref<32x128xbf16, #tpu.memory_space<vmem>>, vector<32x128xbf16>,
    %c0_20 = arith.constant 0 : index
    %c0_21 = arith.constant 0 : index
    %32 = vector.load %arg3[%c0_20, %c0_21] : memref<128x256xbf16, #tpu.memory_space<vmem>>, vector<128x256xbf16>
    %cst_22 = arith.constant dense<0.000000e+00> : vector<32x256xf32>
    %33 = tpu.matmul %30, %32, %cst_22 {dimension_numbers = #tpu.dot_dimension_numbers<[1], [0], [0], [1], [0, 0, 1, 1], [], []>} : vector<32x128xbf16>, vector<128x256xbf16>, vector<32x256xf32> -> vector<32x256xf32>
    %c0_23 = arith.constant 0 : index
    %c0_24 = arith.constant 0 : index
    %34 = vector.load %arg5[%c0_23, %c0_24] : memref<1x256xf32, #tpu.memory_space<vmem>>, vector<1x256xf32>
    %35 = vector.broadcast %34 : vector<1x256xf32> to vector<32x256xf32>
    %36 = arith.addf %33, %35 : vector<32x256xf32>
    %37 = arith.truncf %36 : vector<32x256xf32> to vector<32x256xbf16>
    %c0_25 = arith.constant 0 : index
    %c0_26 = arith.constant 0 : index
    %38 = vector.load %arg7[%c0_25, %c0_26] : memref<32x256xbf16, #tpu.memory_space<vmem>>, vector<32x256xbf16>
    tpu.vector_store %arg7[%c0_25, %c0_26], %37 {strides = array<i32>} : memref<32x256xbf16, #tpu.memory_space<vmem>>, vector<32x256xbf16>,
    %c0_27 = arith.constant 0 : index
    %c0_28 = arith.constant 0 : index
    %39 = vector.load %arg4[%c0_27, %c0_28] : memref<128x256xbf16, #tpu.memory_space<vmem>>, vector<128x256xbf16>
    %cst_29 = arith.constant dense<0.000000e+00> : vector<32x256xf32>
    %40 = tpu.matmul %30, %39, %cst_29 {dimension_numbers = #tpu.dot_dimension_numbers<[1], [0], [0], [1], [0, 0, 1, 1], [], []>} : vector<32x128xbf16>, vector<128x256xbf16>, vector<32x256xf32> -> vector<32x256xf32>
    %41 = arith.truncf %40 : vector<32x256xf32> to vector<32x256xbf16>
    %c0_30 = arith.constant 0 : index
    %c0_31 = arith.constant 0 : index
    %42 = vector.load %arg8[%c0_30, %c0_31] : memref<32x256xbf16, #tpu.memory_space<vmem>>, vector<32x256xbf16>
    tpu.vector_store %arg8[%c0_30, %c0_31], %41 {strides = array<i32>} : memref<32x256xbf16, #tpu.memory_space<vmem>>, vector<32x256xbf16>,
    return
  }
  func.func @transform_0(%arg0: i32) -> (i32, i32) {
    %c0_i32 = arith.constant 0 : i32
    %c0_i32_0 = arith.constant 0 : i32
    return %arg0, %c0_i32 : i32, i32
  }
  func.func @transform_1(%arg0: i32) -> (i32, i32, i32) {
    %c0_i32 = arith.constant 0 : i32
    %c0_i32_0 = arith.constant 0 : i32
    %c0_i32_1 = arith.constant 0 : i32
    return %c0_i32, %arg0, %c0_i32_0 : i32, i32, i32
  }
  func.func @transform_2(%arg0: i32) -> (i32, i32) {
    %c0_i32 = arith.constant 0 : i32
    %c0_i32_0 = arith.constant 0 : i32
    %c0_i32_1 = arith.constant 0 : i32
    return %c0_i32, %c0_i32_0 : i32, i32
  }
  func.func @transform_3(%arg0: i32) -> (i32, i32) {
    %c0_i32 = arith.constant 0 : i32
    %c0_i32_0 = arith.constant 0 : i32
    %c0_i32_1 = arith.constant 0 : i32
    return %c0_i32, %c0_i32_0 : i32, i32
  }
  func.func @transform_4(%arg0: i32) -> (i32, i32) {
    %c0_i32 = arith.constant 0 : i32
    %c0_i32_0 = arith.constant 0 : i32
    %c0_i32_1 = arith.constant 0 : i32
    return %c0_i32, %c0_i32_0 : i32, i32
  }
  func.func @transform_5(%arg0: i32) -> (i32, i32) {
    %c0_i32 = arith.constant 0 : i32
    %c0_i32_0 = arith.constant 0 : i32
    return %arg0, %c0_i32 : i32, i32
  }
  func.func @transform_6(%arg0: i32) -> (i32, i32) {
    %c0_i32 = arith.constant 0 : i32
    %c0_i32_0 = arith.constant 0 : i32
    return %arg0, %c0_i32 : i32, i32
  }
  func.func @transform_7(%arg0: i32) -> (i32, i32) {
    %c0_i32 = arith.constant 0 : i32
    %c0_i32_0 = arith.constant 0 : i32
    return %arg0, %c0_i32 : i32, i32
  }
}

module attributes {stable_mosaic.version = 11 : i64} {
  func.func @_combine_kernel(%arg0: i32, %arg1: memref<32x256xbf16, #tpu.memory_space<vmem>>, %arg2: memref<8x32x256xbf16, #tpu.memory_space<vmem>>, %arg3: memref<32x256xbf16, #tpu.memory_space<vmem>>) attributes {dimension_semantics = [#tpu.dimension_semantics<parallel>], iteration_bounds = array<i64: 2>, scalar_prefetch = 0 : i64, scratch_operands = 0 : i64, tpu.core_type = #tpu.core_type<tc>, window_params = [{transform_indices = @transform_0, window_bounds = array<i64: 32, 256>}, {transform_indices = @transform_1, window_bounds = array<i64: 8, 32, 256>}, {transform_indices = @transform_2, window_bounds = array<i64: 32, 256>}]} {
    %c0 = arith.constant 0 : index
    %c0_0 = arith.constant 0 : index
    %c0_1 = arith.constant 0 : index
    %0 = vector.load %arg2[%c0, %c0_0, %c0_1] : memref<8x32x256xbf16, #tpu.memory_space<vmem>>, vector<1x32x256xbf16>
    %1 = vector.shape_cast %0 : vector<1x32x256xbf16> to vector<32x256xbf16>
    %c1 = arith.constant 1 : index
    %c0_2 = arith.constant 0 : index
    %c0_3 = arith.constant 0 : index
    %2 = vector.load %arg2[%c1, %c0_2, %c0_3] : memref<8x32x256xbf16, #tpu.memory_space<vmem>>, vector<1x32x256xbf16>
    %3 = vector.shape_cast %2 : vector<1x32x256xbf16> to vector<32x256xbf16>
    %4 = arith.maximumf %1, %3 : vector<32x256xbf16>
    %c2 = arith.constant 2 : index
    %c0_4 = arith.constant 0 : index
    %c0_5 = arith.constant 0 : index
    %5 = vector.load %arg2[%c2, %c0_4, %c0_5] : memref<8x32x256xbf16, #tpu.memory_space<vmem>>, vector<1x32x256xbf16>
    %6 = vector.shape_cast %5 : vector<1x32x256xbf16> to vector<32x256xbf16>
    %7 = arith.maximumf %4, %6 : vector<32x256xbf16>
    %c3 = arith.constant 3 : index
    %c0_6 = arith.constant 0 : index
    %c0_7 = arith.constant 0 : index
    %8 = vector.load %arg2[%c3, %c0_6, %c0_7] : memref<8x32x256xbf16, #tpu.memory_space<vmem>>, vector<1x32x256xbf16>
    %9 = vector.shape_cast %8 : vector<1x32x256xbf16> to vector<32x256xbf16>
    %10 = arith.maximumf %7, %9 : vector<32x256xbf16>
    %c4 = arith.constant 4 : index
    %c0_8 = arith.constant 0 : index
    %c0_9 = arith.constant 0 : index
    %11 = vector.load %arg2[%c4, %c0_8, %c0_9] : memref<8x32x256xbf16, #tpu.memory_space<vmem>>, vector<1x32x256xbf16>
    %12 = vector.shape_cast %11 : vector<1x32x256xbf16> to vector<32x256xbf16>
    %13 = arith.maximumf %10, %12 : vector<32x256xbf16>
    %c5 = arith.constant 5 : index
    %c0_10 = arith.constant 0 : index
    %c0_11 = arith.constant 0 : index
    %14 = vector.load %arg2[%c5, %c0_10, %c0_11] : memref<8x32x256xbf16, #tpu.memory_space<vmem>>, vector<1x32x256xbf16>
    %15 = vector.shape_cast %14 : vector<1x32x256xbf16> to vector<32x256xbf16>
    %16 = arith.maximumf %13, %15 : vector<32x256xbf16>
    %c6 = arith.constant 6 : index
    %c0_12 = arith.constant 0 : index
    %c0_13 = arith.constant 0 : index
    %17 = vector.load %arg2[%c6, %c0_12, %c0_13] : memref<8x32x256xbf16, #tpu.memory_space<vmem>>, vector<1x32x256xbf16>
    %18 = vector.shape_cast %17 : vector<1x32x256xbf16> to vector<32x256xbf16>
    %19 = arith.maximumf %16, %18 : vector<32x256xbf16>
    %c7 = arith.constant 7 : index
    %c0_14 = arith.constant 0 : index
    %c0_15 = arith.constant 0 : index
    %20 = vector.load %arg2[%c7, %c0_14, %c0_15] : memref<8x32x256xbf16, #tpu.memory_space<vmem>>, vector<1x32x256xbf16>
    %21 = vector.shape_cast %20 : vector<1x32x256xbf16> to vector<32x256xbf16>
    %22 = arith.maximumf %19, %21 : vector<32x256xbf16>
    %c0_16 = arith.constant 0 : index
    %c0_17 = arith.constant 0 : index
    %23 = vector.load %arg1[%c0_16, %c0_17] : memref<32x256xbf16, #tpu.memory_space<vmem>>, vector<32x256xbf16>
    %24 = arith.extf %23 : vector<32x256xbf16> to vector<32x256xf32>
    %25 = arith.extf %22 : vector<32x256xbf16> to vector<32x256xf32>
    %26 = arith.addf %24, %25 : vector<32x256xf32>
    %cst = arith.constant 2.000000e-01 : f32
    %27 = vector.broadcast %cst : f32 to vector<32x256xf32>
    %28 = arith.mulf %27, %26 : vector<32x256xf32>
    %29 = arith.maximumf %26, %28 : vector<32x256xf32>
    %30 = arith.truncf %29 : vector<32x256xf32> to vector<32x256xbf16>
    %c0_18 = arith.constant 0 : index
    %c0_19 = arith.constant 0 : index
    %31 = vector.load %arg3[%c0_18, %c0_19] : memref<32x256xbf16, #tpu.memory_space<vmem>>, vector<32x256xbf16>
    tpu.vector_store %arg3[%c0_18, %c0_19], %30 {strides = array<i32>} : memref<32x256xbf16, #tpu.memory_space<vmem>>, vector<32x256xbf16>,
    return
  }
  func.func @transform_0(%arg0: i32) -> (i32, i32) {
    %c0_i32 = arith.constant 0 : i32
    %c0_i32_0 = arith.constant 0 : i32
    return %arg0, %c0_i32 : i32, i32
  }
  func.func @transform_1(%arg0: i32) -> (i32, i32, i32) {
    %c0_i32 = arith.constant 0 : i32
    %c0_i32_0 = arith.constant 0 : i32
    %c0_i32_1 = arith.constant 0 : i32
    return %c0_i32, %arg0, %c0_i32_0 : i32, i32, i32
  }
  func.func @transform_2(%arg0: i32) -> (i32, i32) {
    %c0_i32 = arith.constant 0 : i32
    %c0_i32_0 = arith.constant 0 : i32
    return %arg0, %c0_i32 : i32, i32
  }
}

module attributes {stable_mosaic.version = 11 : i64} {
  func.func @_transform_kernel(%arg0: i32, %arg1: memref<32x64xbf16, #tpu.memory_space<vmem>>, %arg2: memref<32x64xbf16, #tpu.memory_space<vmem>>, %arg3: memref<32x128xbf16, #tpu.memory_space<vmem>>, %arg4: memref<32x256xbf16, #tpu.memory_space<vmem>>, %arg5: memref<512x64xbf16, #tpu.memory_space<vmem>>, %arg6: memref<512x64xbf16, #tpu.memory_space<vmem>>, %arg7: memref<1x64xf32, #tpu.memory_space<vmem>>, %arg8: memref<32x64xbf16, #tpu.memory_space<vmem>>, %arg9: memref<32x64xbf16, #tpu.memory_space<vmem>>) attributes {dimension_semantics = [#tpu.dimension_semantics<parallel>], iteration_bounds = array<i64: 2>, scalar_prefetch = 0 : i64, scratch_operands = 0 : i64, tpu.core_type = #tpu.core_type<tc>, window_params = [{transform_indices = @transform_0, window_bounds = array<i64: 32, 64>}, {transform_indices = @transform_1, window_bounds = array<i64: 32, 64>}, {transform_indices = @transform_2, window_bounds = array<i64: 32, 128>}, {transform_indices = @transform_3, window_bounds = array<i64: 32, 256>}, {pipeline_mode = #tpu.pipeline_mode<synchronous>, transform_indices = @transform_4, window_bounds = array<i64: 512, 64>}, {pipeline_mode = #tpu.pipeline_mode<synchronous>, transform_indices = @transform_5, window_bounds = array<i64: 512, 64>}, {pipeline_mode = #tpu.pipeline_mode<synchronous>, transform_indices = @transform_6, window_bounds = array<i64: 1, 64>}, {transform_indices = @transform_7, window_bounds = array<i64: 32, 64>}, {transform_indices = @transform_8, window_bounds = array<i64: 32, 64>}]} {
    %c0 = arith.constant 0 : index
    %c0_0 = arith.constant 0 : index
    %0 = vector.load %arg1[%c0, %c0_0] : memref<32x64xbf16, #tpu.memory_space<vmem>>, vector<32x64xbf16>
    %c0_1 = arith.constant 0 : index
    %c0_2 = arith.constant 0 : index
    %1 = vector.load %arg5[%c0_1, %c0_2] : memref<512x64xbf16, #tpu.memory_space<vmem>>, vector<64x64xbf16>
    %cst = arith.constant dense<0.000000e+00> : vector<32x64xf32>
    %2 = tpu.matmul %0, %1, %cst {dimension_numbers = #tpu.dot_dimension_numbers<[1], [0], [0], [1], [0, 0, 1, 1], [], []>} : vector<32x64xbf16>, vector<64x64xbf16>, vector<32x64xf32> -> vector<32x64xf32>
    %c0_3 = arith.constant 0 : index
    %c0_4 = arith.constant 0 : index
    %3 = vector.load %arg6[%c0_3, %c0_4] : memref<512x64xbf16, #tpu.memory_space<vmem>>, vector<64x64xbf16>
    %cst_5 = arith.constant dense<0.000000e+00> : vector<32x64xf32>
    %4 = tpu.matmul %0, %3, %cst_5 {dimension_numbers = #tpu.dot_dimension_numbers<[1], [0], [0], [1], [0, 0, 1, 1], [], []>} : vector<32x64xbf16>, vector<64x64xbf16>, vector<32x64xf32> -> vector<32x64xf32>
    %c0_6 = arith.constant 0 : index
    %c0_7 = arith.constant 0 : index
    %5 = vector.load %arg2[%c0_6, %c0_7] : memref<32x64xbf16, #tpu.memory_space<vmem>>, vector<32x64xbf16>
    %c64 = arith.constant 64 : index
    %c0_8 = arith.constant 0 : index
    %6 = vector.load %arg5[%c64, %c0_8] : memref<512x64xbf16, #tpu.memory_space<vmem>>, vector<64x64xbf16>
    %cst_9 = arith.constant dense<0.000000e+00> : vector<32x64xf32>
    %7 = tpu.matmul %5, %6, %cst_9 {dimension_numbers = #tpu.dot_dimension_numbers<[1], [0], [0], [1], [0, 0, 1, 1], [], []>} : vector<32x64xbf16>, vector<64x64xbf16>, vector<32x64xf32> -> vector<32x64xf32>
    %c64_10 = arith.constant 64 : index
    %c0_11 = arith.constant 0 : index
    %8 = vector.load %arg6[%c64_10, %c0_11] : memref<512x64xbf16, #tpu.memory_space<vmem>>, vector<64x64xbf16>
    %cst_12 = arith.constant dense<0.000000e+00> : vector<32x64xf32>
    %9 = tpu.matmul %5, %8, %cst_12 {dimension_numbers = #tpu.dot_dimension_numbers<[1], [0], [0], [1], [0, 0, 1, 1], [], []>} : vector<32x64xbf16>, vector<64x64xbf16>, vector<32x64xf32> -> vector<32x64xf32>
    %10 = arith.addf %2, %7 : vector<32x64xf32>
    %11 = arith.addf %4, %9 : vector<32x64xf32>
    %c0_13 = arith.constant 0 : index
    %c0_14 = arith.constant 0 : index
    %12 = vector.load %arg3[%c0_13, %c0_14] : memref<32x128xbf16, #tpu.memory_space<vmem>>, vector<32x128xbf16>
    %c128 = arith.constant 128 : index
    %c0_15 = arith.constant 0 : index
    %13 = vector.load %arg5[%c128, %c0_15] : memref<512x64xbf16, #tpu.memory_space<vmem>>, vector<128x64xbf16>
    %cst_16 = arith.constant dense<0.000000e+00> : vector<32x64xf32>
    %14 = tpu.matmul %12, %13, %cst_16 {dimension_numbers = #tpu.dot_dimension_numbers<[1], [0], [0], [1], [0, 0, 1, 1], [], []>} : vector<32x128xbf16>, vector<128x64xbf16>, vector<32x64xf32> -> vector<32x64xf32>
    %c128_17 = arith.constant 128 : index
    %c0_18 = arith.constant 0 : index
    %15 = vector.load %arg6[%c128_17, %c0_18] : memref<512x64xbf16, #tpu.memory_space<vmem>>, vector<128x64xbf16>
    %cst_19 = arith.constant dense<0.000000e+00> : vector<32x64xf32>
    %16 = tpu.matmul %12, %15, %cst_19 {dimension_numbers = #tpu.dot_dimension_numbers<[1], [0], [0], [1], [0, 0, 1, 1], [], []>} : vector<32x128xbf16>, vector<128x64xbf16>, vector<32x64xf32> -> vector<32x64xf32>
    %17 = arith.addf %10, %14 : vector<32x64xf32>
    %18 = arith.addf %11, %16 : vector<32x64xf32>
    %c0_20 = arith.constant 0 : index
    %c0_21 = arith.constant 0 : index
    %19 = vector.load %arg4[%c0_20, %c0_21] : memref<32x256xbf16, #tpu.memory_space<vmem>>, vector<32x256xbf16>
    %c256 = arith.constant 256 : index
    %c0_22 = arith.constant 0 : index
    %20 = vector.load %arg5[%c256, %c0_22] : memref<512x64xbf16, #tpu.memory_space<vmem>>, vector<256x64xbf16>
    %cst_23 = arith.constant dense<0.000000e+00> : vector<32x64xf32>
    %21 = tpu.matmul %19, %20, %cst_23 {dimension_numbers = #tpu.dot_dimension_numbers<[1], [0], [0], [1], [0, 0, 1, 1], [], []>} : vector<32x256xbf16>, vector<256x64xbf16>, vector<32x64xf32> -> vector<32x64xf32>
    %c256_24 = arith.constant 256 : index
    %c0_25 = arith.constant 0 : index
    %22 = vector.load %arg6[%c256_24, %c0_25] : memref<512x64xbf16, #tpu.memory_space<vmem>>, vector<256x64xbf16>
    %cst_26 = arith.constant dense<0.000000e+00> : vector<32x64xf32>
    %23 = tpu.matmul %19, %22, %cst_26 {dimension_numbers = #tpu.dot_dimension_numbers<[1], [0], [0], [1], [0, 0, 1, 1], [], []>} : vector<32x256xbf16>, vector<256x64xbf16>, vector<32x64xf32> -> vector<32x64xf32>
    %24 = arith.addf %17, %21 : vector<32x64xf32>
    %25 = arith.addf %18, %23 : vector<32x64xf32>
    %c0_27 = arith.constant 0 : index
    %c0_28 = arith.constant 0 : index
    %26 = vector.load %arg7[%c0_27, %c0_28] : memref<1x64xf32, #tpu.memory_space<vmem>>, vector<1x64xf32>
    %27 = vector.broadcast %26 : vector<1x64xf32> to vector<32x64xf32>
    %28 = arith.addf %24, %27 : vector<32x64xf32>
    %29 = arith.truncf %28 : vector<32x64xf32> to vector<32x64xbf16>
    %c0_29 = arith.constant 0 : index
    %c0_30 = arith.constant 0 : index
    %30 = vector.load %arg8[%c0_29, %c0_30] : memref<32x64xbf16, #tpu.memory_space<vmem>>, vector<32x64xbf16>
    tpu.vector_store %arg8[%c0_29, %c0_30], %29 {strides = array<i32>} : memref<32x64xbf16, #tpu.memory_space<vmem>>, vector<32x64xbf16>,
    %31 = arith.truncf %25 : vector<32x64xf32> to vector<32x64xbf16>
    %c0_31 = arith.constant 0 : index
    %c0_32 = arith.constant 0 : index
    %32 = vector.load %arg9[%c0_31, %c0_32] : memref<32x64xbf16, #tpu.memory_space<vmem>>, vector<32x64xbf16>
    tpu.vector_store %arg9[%c0_31, %c0_32], %31 {strides = array<i32>} : memref<32x64xbf16, #tpu.memory_space<vmem>>, vector<32x64xbf16>,
    return
  }
  func.func @transform_0(%arg0: i32) -> (i32, i32) {
    %c0_i32 = arith.constant 0 : i32
    %c0_i32_0 = arith.constant 0 : i32
    return %arg0, %c0_i32 : i32, i32
  }
  func.func @transform_1(%arg0: i32) -> (i32, i32) {
    %c0_i32 = arith.constant 0 : i32
    %c0_i32_0 = arith.constant 0 : i32
    return %arg0, %c0_i32 : i32, i32
  }
  func.func @transform_2(%arg0: i32) -> (i32, i32) {
    %c0_i32 = arith.constant 0 : i32
    %c0_i32_0 = arith.constant 0 : i32
    return %arg0, %c0_i32 : i32, i32
  }
  func.func @transform_3(%arg0: i32) -> (i32, i32) {
    %c0_i32 = arith.constant 0 : i32
    %c0_i32_0 = arith.constant 0 : i32
    return %arg0, %c0_i32 : i32, i32
  }
  func.func @transform_4(%arg0: i32) -> (i32, i32) {
    %c0_i32 = arith.constant 0 : i32
    %c0_i32_0 = arith.constant 0 : i32
    %c0_i32_1 = arith.constant 0 : i32
    return %c0_i32, %c0_i32_0 : i32, i32
  }
  func.func @transform_5(%arg0: i32) -> (i32, i32) {
    %c0_i32 = arith.constant 0 : i32
    %c0_i32_0 = arith.constant 0 : i32
    %c0_i32_1 = arith.constant 0 : i32
    return %c0_i32, %c0_i32_0 : i32, i32
  }
  func.func @transform_6(%arg0: i32) -> (i32, i32) {
    %c0_i32 = arith.constant 0 : i32
    %c0_i32_0 = arith.constant 0 : i32
    %c0_i32_1 = arith.constant 0 : i32
    return %c0_i32, %c0_i32_0 : i32, i32
  }
  func.func @transform_7(%arg0: i32) -> (i32, i32) {
    %c0_i32 = arith.constant 0 : i32
    %c0_i32_0 = arith.constant 0 : i32
    return %arg0, %c0_i32 : i32, i32
  }
  func.func @transform_8(%arg0: i32) -> (i32, i32) {
    %c0_i32 = arith.constant 0 : i32
    %c0_i32_0 = arith.constant 0 : i32
    return %arg0, %c0_i32 : i32, i32
  }
}

module attributes {stable_mosaic.version = 11 : i64} {
  func.func @_combine_kernel(%arg0: i32, %arg1: memref<32x64xbf16, #tpu.memory_space<vmem>>, %arg2: memref<8x32x64xbf16, #tpu.memory_space<vmem>>, %arg3: memref<32x64xbf16, #tpu.memory_space<vmem>>) attributes {dimension_semantics = [#tpu.dimension_semantics<parallel>], iteration_bounds = array<i64: 2>, scalar_prefetch = 0 : i64, scratch_operands = 0 : i64, tpu.core_type = #tpu.core_type<tc>, window_params = [{transform_indices = @transform_0, window_bounds = array<i64: 32, 64>}, {transform_indices = @transform_1, window_bounds = array<i64: 8, 32, 64>}, {transform_indices = @transform_2, window_bounds = array<i64: 32, 64>}]} {
    %c0 = arith.constant 0 : index
    %c0_0 = arith.constant 0 : index
    %c0_1 = arith.constant 0 : index
    %0 = vector.load %arg2[%c0, %c0_0, %c0_1] : memref<8x32x64xbf16, #tpu.memory_space<vmem>>, vector<1x32x64xbf16>
    %1 = vector.shape_cast %0 : vector<1x32x64xbf16> to vector<32x64xbf16>
    %c1 = arith.constant 1 : index
    %c0_2 = arith.constant 0 : index
    %c0_3 = arith.constant 0 : index
    %2 = vector.load %arg2[%c1, %c0_2, %c0_3] : memref<8x32x64xbf16, #tpu.memory_space<vmem>>, vector<1x32x64xbf16>
    %3 = vector.shape_cast %2 : vector<1x32x64xbf16> to vector<32x64xbf16>
    %4 = arith.maximumf %1, %3 : vector<32x64xbf16>
    %c2 = arith.constant 2 : index
    %c0_4 = arith.constant 0 : index
    %c0_5 = arith.constant 0 : index
    %5 = vector.load %arg2[%c2, %c0_4, %c0_5] : memref<8x32x64xbf16, #tpu.memory_space<vmem>>, vector<1x32x64xbf16>
    %6 = vector.shape_cast %5 : vector<1x32x64xbf16> to vector<32x64xbf16>
    %7 = arith.maximumf %4, %6 : vector<32x64xbf16>
    %c3 = arith.constant 3 : index
    %c0_6 = arith.constant 0 : index
    %c0_7 = arith.constant 0 : index
    %8 = vector.load %arg2[%c3, %c0_6, %c0_7] : memref<8x32x64xbf16, #tpu.memory_space<vmem>>, vector<1x32x64xbf16>
    %9 = vector.shape_cast %8 : vector<1x32x64xbf16> to vector<32x64xbf16>
    %10 = arith.maximumf %7, %9 : vector<32x64xbf16>
    %c4 = arith.constant 4 : index
    %c0_8 = arith.constant 0 : index
    %c0_9 = arith.constant 0 : index
    %11 = vector.load %arg2[%c4, %c0_8, %c0_9] : memref<8x32x64xbf16, #tpu.memory_space<vmem>>, vector<1x32x64xbf16>
    %12 = vector.shape_cast %11 : vector<1x32x64xbf16> to vector<32x64xbf16>
    %13 = arith.maximumf %10, %12 : vector<32x64xbf16>
    %c5 = arith.constant 5 : index
    %c0_10 = arith.constant 0 : index
    %c0_11 = arith.constant 0 : index
    %14 = vector.load %arg2[%c5, %c0_10, %c0_11] : memref<8x32x64xbf16, #tpu.memory_space<vmem>>, vector<1x32x64xbf16>
    %15 = vector.shape_cast %14 : vector<1x32x64xbf16> to vector<32x64xbf16>
    %16 = arith.maximumf %13, %15 : vector<32x64xbf16>
    %c6 = arith.constant 6 : index
    %c0_12 = arith.constant 0 : index
    %c0_13 = arith.constant 0 : index
    %17 = vector.load %arg2[%c6, %c0_12, %c0_13] : memref<8x32x64xbf16, #tpu.memory_space<vmem>>, vector<1x32x64xbf16>
    %18 = vector.shape_cast %17 : vector<1x32x64xbf16> to vector<32x64xbf16>
    %19 = arith.maximumf %16, %18 : vector<32x64xbf16>
    %c7 = arith.constant 7 : index
    %c0_14 = arith.constant 0 : index
    %c0_15 = arith.constant 0 : index
    %20 = vector.load %arg2[%c7, %c0_14, %c0_15] : memref<8x32x64xbf16, #tpu.memory_space<vmem>>, vector<1x32x64xbf16>
    %21 = vector.shape_cast %20 : vector<1x32x64xbf16> to vector<32x64xbf16>
    %22 = arith.maximumf %19, %21 : vector<32x64xbf16>
    %c0_16 = arith.constant 0 : index
    %c0_17 = arith.constant 0 : index
    %23 = vector.load %arg1[%c0_16, %c0_17] : memref<32x64xbf16, #tpu.memory_space<vmem>>, vector<32x64xbf16>
    %24 = arith.extf %23 : vector<32x64xbf16> to vector<32x64xf32>
    %25 = arith.extf %22 : vector<32x64xbf16> to vector<32x64xf32>
    %26 = arith.addf %24, %25 : vector<32x64xf32>
    %cst = arith.constant 2.000000e-01 : f32
    %27 = vector.broadcast %cst : f32 to vector<32x64xf32>
    %28 = arith.mulf %27, %26 : vector<32x64xf32>
    %29 = arith.maximumf %26, %28 : vector<32x64xf32>
    %30 = arith.truncf %29 : vector<32x64xf32> to vector<32x64xbf16>
    %c0_18 = arith.constant 0 : index
    %c0_19 = arith.constant 0 : index
    %31 = vector.load %arg3[%c0_18, %c0_19] : memref<32x64xbf16, #tpu.memory_space<vmem>>, vector<32x64xbf16>
    tpu.vector_store %arg3[%c0_18, %c0_19], %30 {strides = array<i32>} : memref<32x64xbf16, #tpu.memory_space<vmem>>, vector<32x64xbf16>,
    return
  }
  func.func @transform_0(%arg0: i32) -> (i32, i32) {
    %c0_i32 = arith.constant 0 : i32
    %c0_i32_0 = arith.constant 0 : i32
    return %arg0, %c0_i32 : i32, i32
  }
  func.func @transform_1(%arg0: i32) -> (i32, i32, i32) {
    %c0_i32 = arith.constant 0 : i32
    %c0_i32_0 = arith.constant 0 : i32
    %c0_i32_1 = arith.constant 0 : i32
    return %c0_i32, %arg0, %c0_i32_0 : i32, i32, i32
  }
  func.func @transform_2(%arg0: i32) -> (i32, i32) {
    %c0_i32 = arith.constant 0 : i32
    %c0_i32_0 = arith.constant 0 : i32
    return %arg0, %c0_i32 : i32, i32
  }
}

module attributes {stable_mosaic.version = 11 : i64} {
  func.func @_head_single_kernel(%arg0: i32, %arg1: memref<2x32x64xbf16, #tpu.memory_space<vmem>>, %arg2: memref<64x512xbf16, #tpu.memory_space<vmem>>, %arg3: memref<64x512xbf16, #tpu.memory_space<vmem>>, %arg4: memref<1x512xf32, #tpu.memory_space<vmem>>, %arg5: memref<512x256xbf16, #tpu.memory_space<vmem>>, %arg6: memref<1x256xf32, #tpu.memory_space<vmem>>, %arg7: memref<256x128xbf16, #tpu.memory_space<vmem>>, %arg8: memref<1x128xf32, #tpu.memory_space<vmem>>, %arg9: memref<2x128xf32, #tpu.memory_space<vmem>>) attributes {dimension_semantics = [#tpu.dimension_semantics<arbitrary>], iteration_bounds = array<i64: 1>, scalar_prefetch = 0 : i64, scratch_operands = 0 : i64, tpu.core_type = #tpu.core_type<tc>, window_params = [{pipeline_mode = #tpu.pipeline_mode<synchronous>, transform_indices = @transform_0, window_bounds = array<i64: 2, 32, 64>}, {pipeline_mode = #tpu.pipeline_mode<synchronous>, transform_indices = @transform_1, window_bounds = array<i64: 64, 512>}, {pipeline_mode = #tpu.pipeline_mode<synchronous>, transform_indices = @transform_2, window_bounds = array<i64: 64, 512>}, {pipeline_mode = #tpu.pipeline_mode<synchronous>, transform_indices = @transform_3, window_bounds = array<i64: 1, 512>}, {pipeline_mode = #tpu.pipeline_mode<synchronous>, transform_indices = @transform_4, window_bounds = array<i64: 512, 256>}, {pipeline_mode = #tpu.pipeline_mode<synchronous>, transform_indices = @transform_5, window_bounds = array<i64: 1, 256>}, {pipeline_mode = #tpu.pipeline_mode<synchronous>, transform_indices = @transform_6, window_bounds = array<i64: 256, 128>}, {pipeline_mode = #tpu.pipeline_mode<synchronous>, transform_indices = @transform_7, window_bounds = array<i64: 1, 128>}, {pipeline_mode = #tpu.pipeline_mode<synchronous>, transform_indices = @transform_8, window_bounds = array<i64: 2, 128>}]} {
    %c0 = arith.constant 0 : index
    %c0_0 = arith.constant 0 : index
    %c0_1 = arith.constant 0 : index
    %0 = vector.load %arg1[%c0, %c0_0, %c0_1] : memref<2x32x64xbf16, #tpu.memory_space<vmem>>, vector<2x32x64xbf16>
    %1 = arith.extf %0 : vector<2x32x64xbf16> to vector<2x32x64xf32>
    %cst = arith.constant dense<0xFF800000> : vector<2x64xf32>
    %2 = vector.multi_reduction <maximumf>, %1, %cst [1] : vector<2x32x64xf32> to vector<2x64xf32>
    %cst_2 = arith.constant dense<0.000000e+00> : vector<2x64xf32>
    %3 = vector.multi_reduction <add>, %1, %cst_2 [1] : vector<2x32x64xf32> to vector<2x64xf32>
    %cst_3 = arith.constant 3.125000e-02 : f32
    %4 = vector.broadcast %cst_3 : f32 to vector<2x64xf32>
    %5 = arith.mulf %3, %4 : vector<2x64xf32>
    %6 = arith.truncf %2 : vector<2x64xf32> to vector<2x64xbf16>
    %c0_4 = arith.constant 0 : index
    %c0_5 = arith.constant 0 : index
    %7 = vector.load %arg2[%c0_4, %c0_5] : memref<64x512xbf16, #tpu.memory_space<vmem>>, vector<64x512xbf16>
    %cst_6 = arith.constant dense<0.000000e+00> : vector<2x512xf32>
    %8 = tpu.matmul %6, %7, %cst_6 {dimension_numbers = #tpu.dot_dimension_numbers<[1], [0], [0], [1], [0, 0, 1, 1], [], []>} : vector<2x64xbf16>, vector<64x512xbf16>, vector<2x512xf32> -> vector<2x512xf32>
    %9 = arith.truncf %5 : vector<2x64xf32> to vector<2x64xbf16>
    %c0_7 = arith.constant 0 : index
    %c0_8 = arith.constant 0 : index
    %10 = vector.load %arg3[%c0_7, %c0_8] : memref<64x512xbf16, #tpu.memory_space<vmem>>, vector<64x512xbf16>
    %cst_9 = arith.constant dense<0.000000e+00> : vector<2x512xf32>
    %11 = tpu.matmul %9, %10, %cst_9 {dimension_numbers = #tpu.dot_dimension_numbers<[1], [0], [0], [1], [0, 0, 1, 1], [], []>} : vector<2x64xbf16>, vector<64x512xbf16>, vector<2x512xf32> -> vector<2x512xf32>
    %12 = arith.addf %8, %11 : vector<2x512xf32>
    %c0_10 = arith.constant 0 : index
    %c0_11 = arith.constant 0 : index
    %13 = vector.load %arg4[%c0_10, %c0_11] : memref<1x512xf32, #tpu.memory_space<vmem>>, vector<1x512xf32>
    %14 = vector.broadcast %13 : vector<1x512xf32> to vector<2x512xf32>
    %15 = arith.addf %12, %14 : vector<2x512xf32>
    %cst_12 = arith.constant 2.000000e-01 : f32
    %16 = vector.broadcast %cst_12 : f32 to vector<2x512xf32>
    %17 = arith.mulf %16, %15 : vector<2x512xf32>
    %18 = arith.maximumf %15, %17 : vector<2x512xf32>
    %19 = arith.truncf %18 : vector<2x512xf32> to vector<2x512xbf16>
    %c0_13 = arith.constant 0 : index
    %c0_14 = arith.constant 0 : index
    %20 = vector.load %arg5[%c0_13, %c0_14] : memref<512x256xbf16, #tpu.memory_space<vmem>>, vector<512x256xbf16>
    %cst_15 = arith.constant dense<0.000000e+00> : vector<2x256xf32>
    %21 = tpu.matmul %19, %20, %cst_15 {dimension_numbers = #tpu.dot_dimension_numbers<[1], [0], [0], [1], [0, 0, 1, 1], [], []>} : vector<2x512xbf16>, vector<512x256xbf16>, vector<2x256xf32> -> vector<2x256xf32>
    %c0_16 = arith.constant 0 : index
    %c0_17 = arith.constant 0 : index
    %22 = vector.load %arg6[%c0_16, %c0_17] : memref<1x256xf32, #tpu.memory_space<vmem>>, vector<1x256xf32>
    %23 = vector.broadcast %22 : vector<1x256xf32> to vector<2x256xf32>
    %24 = arith.addf %21, %23 : vector<2x256xf32>
    %cst_18 = arith.constant 2.000000e-01 : f32
    %25 = vector.broadcast %cst_18 : f32 to vector<2x256xf32>
    %26 = arith.mulf %25, %24 : vector<2x256xf32>
    %27 = arith.maximumf %24, %26 : vector<2x256xf32>
    %28 = arith.truncf %27 : vector<2x256xf32> to vector<2x256xbf16>
    %c0_19 = arith.constant 0 : index
    %c0_20 = arith.constant 0 : index
    %29 = vector.load %arg7[%c0_19, %c0_20] : memref<256x128xbf16, #tpu.memory_space<vmem>>, vector<256x128xbf16>
    %cst_21 = arith.constant dense<0.000000e+00> : vector<2x128xf32>
    %30 = tpu.matmul %28, %29, %cst_21 {dimension_numbers = #tpu.dot_dimension_numbers<[1], [0], [0], [1], [0, 0, 1, 1], [], []>} : vector<2x256xbf16>, vector<256x128xbf16>, vector<2x128xf32> -> vector<2x128xf32>
    %c0_22 = arith.constant 0 : index
    %c0_23 = arith.constant 0 : index
    %31 = vector.load %arg8[%c0_22, %c0_23] : memref<1x128xf32, #tpu.memory_space<vmem>>, vector<1x128xf32>
    %32 = vector.broadcast %31 : vector<1x128xf32> to vector<2x128xf32>
    %33 = arith.addf %30, %32 : vector<2x128xf32>
    %c0_24 = arith.constant 0 : index
    %c0_25 = arith.constant 0 : index
    %34 = vector.load %arg9[%c0_24, %c0_25] : memref<2x128xf32, #tpu.memory_space<vmem>>, vector<2x128xf32>
    tpu.vector_store %arg9[%c0_24, %c0_25], %33 {strides = array<i32>} : memref<2x128xf32, #tpu.memory_space<vmem>>, vector<2x128xf32>,
    return
  }
  func.func @transform_0(%arg0: i32) -> (i32, i32, i32) {
    %c0_i32 = arith.constant 0 : i32
    %c0_i32_0 = arith.constant 0 : i32
    %c0_i32_1 = arith.constant 0 : i32
    %c0_i32_2 = arith.constant 0 : i32
    return %c0_i32, %c0_i32_0, %c0_i32_1 : i32, i32, i32
  }
  func.func @transform_1(%arg0: i32) -> (i32, i32) {
    %c0_i32 = arith.constant 0 : i32
    %c0_i32_0 = arith.constant 0 : i32
    %c0_i32_1 = arith.constant 0 : i32
    return %c0_i32, %c0_i32_0 : i32, i32
  }
  func.func @transform_2(%arg0: i32) -> (i32, i32) {
    %c0_i32 = arith.constant 0 : i32
    %c0_i32_0 = arith.constant 0 : i32
    %c0_i32_1 = arith.constant 0 : i32
    return %c0_i32, %c0_i32_0 : i32, i32
  }
  func.func @transform_3(%arg0: i32) -> (i32, i32) {
    %c0_i32 = arith.constant 0 : i32
    %c0_i32_0 = arith.constant 0 : i32
    %c0_i32_1 = arith.constant 0 : i32
    return %c0_i32, %c0_i32_0 : i32, i32
  }
  func.func @transform_4(%arg0: i32) -> (i32, i32) {
    %c0_i32 = arith.constant 0 : i32
    %c0_i32_0 = arith.constant 0 : i32
    %c0_i32_1 = arith.constant 0 : i32
    return %c0_i32, %c0_i32_0 : i32, i32
  }
  func.func @transform_5(%arg0: i32) -> (i32, i32) {
    %c0_i32 = arith.constant 0 : i32
    %c0_i32_0 = arith.constant 0 : i32
    %c0_i32_1 = arith.constant 0 : i32
    return %c0_i32, %c0_i32_0 : i32, i32
  }
  func.func @transform_6(%arg0: i32) -> (i32, i32) {
    %c0_i32 = arith.constant 0 : i32
    %c0_i32_0 = arith.constant 0 : i32
    %c0_i32_1 = arith.constant 0 : i32
    return %c0_i32, %c0_i32_0 : i32, i32
  }
  func.func @transform_7(%arg0: i32) -> (i32, i32) {
    %c0_i32 = arith.constant 0 : i32
    %c0_i32_0 = arith.constant 0 : i32
    %c0_i32_1 = arith.constant 0 : i32
    return %c0_i32, %c0_i32_0 : i32, i32
  }
  func.func @transform_8(%arg0: i32) -> (i32, i32) {
    %c0_i32 = arith.constant 0 : i32
    %c0_i32_0 = arith.constant 0 : i32
    %c0_i32_1 = arith.constant 0 : i32
    return %c0_i32, %c0_i32_0 : i32, i32
  }
}

</mosaic_0001>

<bundles_post_ra>
// kernel: edge_conv_model_forward.8
= control target key start
LH: loop header
LB: loop body
LE: loop exit
PB: predicated region body
PF: predicated region fallthrough
CT: control target
= control target key end

     0   :  { %s622_s18 = smov 0   ;;  %s659_s0 = inlined_call_operand.vmem [shape: bf16[64,16], index: 0, kind: input, shape index: {}]   ;;  %s660_s1 = inlined_call_operand.vmem [shape: bf16[16,64], index: 1, kind: input, shape index: {}]   ;;  %s661_s2 = inlined_call_operand.vmem [shape: bf16[16,64], index: 2, kind: input, shape index: {}]   ;;  %s662_s3 = inlined_call_operand.vmem [shape: f32[1,64], index: 3, kind: input, shape index: {}]   ;;  %s663_s4 = inlined_call_operand.vmem [shape: bf16[64,64], index: 4, kind: output, shape index: {0}]   ;;  %s664_s5 = inlined_call_operand.vmem [shape: bf16[64,64], index: 5, kind: output, shape index: {1}]  }
   0x1 LB: > { %s516_s19 = sadd.s32 4294967295, %s590_s18   ;;  %p520_p0 = scmp.ge.s32.totalorder %s590_s18, 1  ;;  %s590_s18 = sphi %s622_s18, %s16_s18  }
   0x2   : > { %p191_p1 = scmp.lt.s32.totalorder %s590_s18, 3 }
   0x4   : > { %p192_p2 = pnand %p520_p0, %p191_p1 }
   0x5   : > { %v580_v0 = vld [vmem:[%s661_s2] sm:$0xff] (!%p192_p2)   ;;  %s521_s22 = sshll.u32 (!%p192_p2), %s516_s19, 2  ;;  %vm267_vm0 = vcmask (!%p192_p2), 130048   ;;  %vm401_vm1 = vcmask (!%p192_p2), 519168  }
   0x6   : > { %195 = sbr.rel (%p192_p2) target bundleno = 238 (0xee), region = 36  ;;  %v581_v1 = vld [vmem:[%s660_s1] sm:$0xff] (!%p192_p2)   ;;  %p225_p3 = scmp.lt.s32.totalorder (!%p192_p2), %s521_s22, 7  ;;  %560 = vmatprep.subr.bf16.mxu0 (!%p192_p2), %v580_v0 }
   0x7   : > { %566 = vmatprep.subr.bf16.mxu1 (!%p192_p2), %v581_v1  ;;  %561 = vmatpush3.bf16.msra.mxu0 (!%p192_p2), %v580_v0  ;;  %v532_v4 = vld [vmem:[%s662_s3] ss:$0 sm:$0xff] (!%p192_p2) }
   0x8   : > { %567 = vmatpush3.bf16.msra.mxu1 (!%p192_p2), %v581_v1 }
   0xd   : > { %s666_s22 = smov (!%p225_p3, %s521_s22), 7 }
   0xe   : > { %s522_s25 = sshll.u32 %s666_s22, 2 }
   0xf   : > { %s228_s28 = scalar_lea.vmem %s659_s0, %s522_s25  ;;  %s240_s8 = scalar_lea.vmem %s664_s5, %s522_s25 }
  0x10   : > { %v582_v2 = vld [vmem:[%s228_s28] sm:$0xff]   ;;  %v583_v3 = vld [vmem:[%s228_s28 + $0x8] sm:$0xff]   ;;  %s234_s11 = scalar_lea.vmem %s663_s4, %s522_s25 }
  0x11   : > { %562 = vmatprep.mubr.msk.bf16.mxu0 %vm267_vm0, %v582_v2  ;;  %568 = vmatprep.mubr.msk.bf16.mxu1 %vm267_vm0, %v582_v2 }
  0x12   : > { %563 = vmatmul.mubr.msk.bf16.vlgmr.msra.gmra.mrb[0].mxu0 %vm267_vm0, %v583_v3  ;;  %569 = vmatmul.mubr.msk.bf16.vlgmr.msra.gmra.mrb[0].mxu1 %vm267_vm0, %v583_v3 }
  0xe5   : > { %v564_v5 = vpop.f32.mrb[0].mxu0  ;;  %v570_v6 = vpop.f32.mrb[0].mxu1 }
  0xe6   : > { %v308_v7 = vpop.f32.mrb[1].mxu0  ;;  %v370_v8 = vpop.f32.mrb[1].mxu1  ;;  %v379_v13 = vadd.f32 %v570_v6, %v532_v4  ;;  %v552_v20 = vpack.c.bf16 %v564_v5, %v564_v5 }
  0xe7   : > { %v550_v9 = vpack.c.bf16 %v308_v7, %v308_v7  ;;  %v371_v10 = vadd.f32 %v532_v4, %v370_v8  ;;  %v565_v11 = vpop.f32.mrb[2].mxu0  ;;  %v571_v12 = vpop.f32.mrb[2].mxu1 }
  0xe8   : > { %v311_v14 = vpop.f32.mrb[3].mxu0  ;;  %v373_v15 = vpop.f32.mrb[3].mxu1  ;;  %v382_v17 = vadd.f32 %v571_v12, %v532_v4  ;;  %v553_v21 = vpack.c.bf16 %v565_v11, %v565_v11  ;;  %v548_v23 = vpack.c.bf16 %v379_v13, %v379_v13  ;;  %424 = vst.msk [vmem:[%s240_s8 + $0x8] sm:$0xf] %vm401_vm1, %v552_v20 }
  0xe9   : > { %422 = vst.msk [vmem:[%s240_s8] sm:$0xf] %vm401_vm1, %v550_v9  ;;  %v546_v16 = vpack.c.bf16 %v371_v10, %v371_v10  ;;  %v551_v18 = vpack.c.bf16 %v311_v14, %v311_v14  ;;  %v374_v19 = vadd.f32 %v532_v4, %v373_v15 }
  0xea   : > { %v549_v24 = vpack.c.bf16 %v382_v17, %v382_v17  ;;  %425 = vst.msk [vmem:[%s240_s8 + $0xc] sm:$0xf] %vm401_vm1, %v553_v21  ;;  %404 = vst.msk [vmem:[%s234_s11 + $0x8] sm:$0xf] %vm401_vm1, %v548_v23 }
  0xeb   : > { %402 = vst.msk [vmem:[%s234_s11] sm:$0xf] %vm401_vm1, %v546_v16  ;;  %423 = vst.msk [vmem:[%s240_s8 + $0x4] sm:$0xf] %vm401_vm1, %v551_v18  ;;  %v547_v22 = vpack.c.bf16 %v374_v19, %v374_v19 }
  0xec   : > { %405 = vst.msk [vmem:[%s234_s11 + $0xc] sm:$0xf] %vm401_vm1, %v549_v24 }
  0xed   : > { %403 = vst.msk [vmem:[%s234_s11 + $0x4] sm:$0xf] %vm401_vm1, %v547_v22 }
  0xee PF: > { %s16_s18 = sadd.s32 1, %s590_s18  }
  0xef   : > { %p13_p4 = scmp.ge.s32.totalorder %s16_s18, 4  }
  0xf1   :  { %15 = sbr.rel (!%p13_p4) target bundleno = 1 (0x1), region = 78 }

// kernel: edge_conv_model_forward.9
= control target key start
LH: loop header
LB: loop body
LE: loop exit
PB: predicated region body
PF: predicated region fallthrough
CT: control target
= control target key end

     0   :  { %s1193_s24 = smov 0   ;;  %s1195_s25 = smov 0   ;;  %s1359_s0 = inlined_call_operand.vmem [shape: bf16[64,64], index: 0, kind: input, shape index: {}]   ;;  %s1360_s1 = inlined_call_operand.vmem [shape: bf16[8,64,64], index: 1, kind: input, shape index: {}]   ;;  %s1361_s2 = inlined_call_operand.vmem [shape: bf16[64,64], index: 2, kind: input, shape index: {}]   ;;  %s1362_s3 = inlined_call_operand.vmem [shape: bf16[64,64], index: 3, kind: input, shape index: {}]   ;;  %s1363_s4 = inlined_call_operand.vmem [shape: f32[1,64], index: 4, kind: input, shape index: {}]   ;;  %s1364_s5 = inlined_call_operand.vmem [shape: bf16[64,64], index: 5, kind: output, shape index: {0}]   ;;  %s1365_s6 = inlined_call_operand.vmem [shape: bf16[64,64], index: 6, kind: output, shape index: {1}]   ;;  %s1366_s7 = inlined_call_operand.vmem [shape: bf16[64,64], index: 7, kind: output, shape index: {2}]  }
   0x1   :  { %s1197_s26 = smov 0  }
   0x2 LB: > { %s967_s27 = sadd.s32 4294967295, %s1151_s26   ;;  %s1210_s28 = sadd.s32 1, %s1151_s26   ;;  %s1151_s26 = sphi %s1197_s26, %s1369_s26   ;;  %s1147_s25 = sphi %s1195_s25, %s1368_s25   ;;  %s1143_s24 = sphi %s1193_s24, %s1367_s24  }
   0x3   : > { %s48_s29 = ssub.s32 %s1151_s26, %s1210_s28  ;;  %s51_s30 = sadd.s32 1, %s1147_s25 }
   0x4   : > { %p49_p0 = scmp.eq.s32.totalorder %s48_s29, 0  ;;  %p58_p1 = scmp.ne.s32.totalorder %s1147_s25, %s1143_s24 }
   0x5   : > { %p59_p2 = scmp.eq.s32.totalorder %s1151_s26, 0  ;;  %p970_p4 = scmp.ge.s32.totalorder %s1151_s26, 2 }
   0x6   : > { %s1219_s8 = scalar_select %p49_p0, %s1147_s25, %s51_s30  }
   0x7   : > { %p60_p3 = por %p59_p2, %p58_p1  ;;  %234 = sbr.rel (%p970_p4) target bundleno = 26 (0x1a), region = 28 }
   0xe   : > { %246 = sbr.rel (!%p60_p3) target bundleno = 26 (0x1a), region = 36  ;;  %s248_s9 = sand.u32 (%p60_p3), 1, %s1147_s25  }
   0xf   : > { %s1039_s10 = sshll.u32 (%p60_p3), %s1151_s26, 4  ;;  %s971_s11 = sshll.u32 (%p60_p3), %s248_s9, 7 }
  0x10   : > { %s1227_s14 = scalar_lea.vmem (%p60_p3), %s1360_s1, %s1039_s10  ;;  %s250_s15 = scalar_lea.vmem (%p60_p3), [#allocation2], %s971_s11 }
  0x11   : > { %v269_v0 = vld [vmem:[%s1227_s14] sm:$0xff] (%p60_p3)   ;;  %v273_v1 = vld [vmem:[%s1227_s14 + $0x8] sm:$0xff] (%p60_p3)  }
  0x12   : > { %v277_v2 = vld [vmem:[%s1227_s14 + $0x20] sm:$0xff] (%p60_p3)   ;;  %270 = vst [vmem:[%s250_s15] sm:$0xff] (%p60_p3), %v269_v0   ;;  %274 = vst [vmem:[%s250_s15 + $0x8] sm:$0xff] (%p60_p3), %v273_v1   ;;  %v281_v3 = vld [vmem:[%s1227_s14 + $0x28] sm:$0xff] (%p60_p3)  }
  0x13   : > { %278 = vst [vmem:[%s250_s15 + $0x10] sm:$0xff] (%p60_p3), %v277_v2   ;;  %v285_v4 = vld [vmem:[%s1227_s14 + $0x40] sm:$0xff] (%p60_p3)   ;;  %v289_v5 = vld [vmem:[%s1227_s14 + $0x48] sm:$0xff] (%p60_p3)   ;;  %282 = vst [vmem:[%s250_s15 + $0x18] sm:$0xff] (%p60_p3), %v281_v3  }
  0x14   : > { %286 = vst [vmem:[%s250_s15 + $0x20] sm:$0xff] (%p60_p3), %v285_v4   ;;  %290 = vst [vmem:[%s250_s15 + $0x28] sm:$0xff] (%p60_p3), %v289_v5   ;;  %v293_v6 = vld [vmem:[%s1227_s14 + $0x60] sm:$0xff] (%p60_p3)   ;;  %v297_v7 = vld [vmem:[%s1227_s14 + $0x68] sm:$0xff] (%p60_p3)  }
  0x15   : > { %v301_v8 = vld [vmem:[%s1227_s14 + $0x80] sm:$0xff]   ;;  %294 = vst [vmem:[%s250_s15 + $0x30] sm:$0xff] %v293_v6   ;;  %298 = vst [vmem:[%s250_s15 + $0x38] sm:$0xff] %v297_v7   ;;  %v305_v9 = vld [vmem:[%s1227_s14 + $0x88] sm:$0xff]  }
  0x16   : > { %302 = vst [vmem:[%s250_s15 + $0x40] sm:$0xff] %v301_v8   ;;  %v309_v10 = vld [vmem:[%s1227_s14 + $0xa0] sm:$0xff]   ;;  %v313_v11 = vld [vmem:[%s1227_s14 + $0xa8] sm:$0xff]   ;;  %306 = vst [vmem:[%s250_s15 + $0x48] sm:$0xff] %v305_v9  }
  0x17   : > { %310 = vst [vmem:[%s250_s15 + $0x50] sm:$0xff] %v309_v10   ;;  %314 = vst [vmem:[%s250_s15 + $0x58] sm:$0xff] %v313_v11   ;;  %v317_v12 = vld [vmem:[%s1227_s14 + $0xc0] sm:$0xff]   ;;  %v321_v13 = vld [vmem:[%s1227_s14 + $0xc8] sm:$0xff]  }
  0x18   : > { %v325_v14 = vld [vmem:[%s1227_s14 + $0xe0] sm:$0xff]   ;;  %318 = vst [vmem:[%s250_s15 + $0x60] sm:$0xff] %v317_v12   ;;  %322 = vst [vmem:[%s250_s15 + $0x68] sm:$0xff] %v321_v13   ;;  %v329_v15 = vld [vmem:[%s1227_s14 + $0xe8] sm:$0xff]  }
  0x19   : > { %326 = vst [vmem:[%s250_s15 + $0x70] sm:$0xff] %v325_v14   ;;  %330 = vst [vmem:[%s250_s15 + $0x78] sm:$0xff] %v329_v15  }
  0x1a PF: > { %p974_p5 = scmp.ge.s32.totalorder %s1151_s26, 1  ;;  %p418_p6 = scmp.lt.s32.totalorder %s1151_s26, 3 }
  0x1c   : > { %p419_p7 = pnand %p974_p5, %p418_p6 }
  0x1d   : > { %v1121_v16 = vld [vmem:[%s1361_s2] sm:$0xff] (!%p419_p7)   ;;  %s425_s18 = sand.u32 (!%p419_p7), 1, %s1143_s24   ;;  %v1123_v18 = vld [vmem:[%s1361_s2 + $0x8] sm:$0xff] (!%p419_p7)   ;;  %s976_s9 = sshll.u32 (!%p419_p7), %s967_s27, 2  ;;  %v1125_v20 = vld [vmem:[%s1361_s2 + $0x10] sm:$0xff] (!%p419_p7)   ;;  %vm648_vm0 = vcmask (!%p419_p7), 523264  }
  0x1e   : > { %422 = sbr.rel (%p419_p7) target bundleno = 283 (0x11b), region = 77  ;;  %v1122_v17 = vld [vmem:[%s1362_s3] sm:$0xff] (!%p419_p7)   ;;  %1073 = vmatprep.subr.bf16.mxu0 (!%p419_p7), %v1121_v16  ;;  %s975_s23 = sshll.u32 (!%p419_p7), %s425_s18, 7  ;;  %v1124_v19 = vld [vmem:[%s1362_s3 + $0x8] sm:$0xff] (!%p419_p7)   ;;  %v1126_v21 = vld [vmem:[%s1362_s3 + $0x10] sm:$0xff] (!%p419_p7)   ;;  %vm604_vm1 = vcmask (!%p419_p7), 519168  }
  0x1f   : > { %1085 = vmatprep.subr.bf16.mxu1 (!%p419_p7), %v1122_v17  ;;  %1074 = vmatpush3.bf16.msra.mxu0 (!%p419_p7), %v1121_v16  ;;  %p472_p8 = scmp.lt.s32.totalorder (!%p419_p7), %s976_s9, 7  ;;  %v1127_v22 = vld [vmem:[%s1361_s2 + $0x18] sm:$0xff] (!%p419_p7)   ;;  %s1274_s15 = scalar_lea.vmem (!%p419_p7), [#allocation2], %s975_s23 }
  0x20   : > { %1086 = vmatpush3.bf16.msra.mxu1 (!%p419_p7), %v1122_v17  ;;  %1075 = vmatprep.subr.bf16.mxu0 (!%p419_p7), %v1123_v18  ;;  %v1128_v23 = vld [vmem:[%s1362_s3 + $0x18] sm:$0xff] (!%p419_p7)   ;;  %v497_v24 = vld [vmem:[%s1274_s15] sm:$0xf] (!%p419_p7)  ;;  %v498_v25 = vld [vmem:[%s1274_s15 + $0x4] sm:$0xf] (!%p419_p7) }
  0x21   : > { %1087 = vmatprep.subr.bf16.mxu1 (!%p419_p7), %v1124_v19  ;;  %v984_v26 = vld [vmem:[%s1274_s15 + $0x10] sm:$0xf] (!%p419_p7)  ;;  %v985_v27 = vld [vmem:[%s1274_s15 + $0x14] sm:$0xf] (!%p419_p7)  ;;  %v988_v28 = vld [vmem:[%s1274_s15 + $0x20] sm:$0xf] (!%p419_p7) }
  0x22   : > { %v506_v29 = vmax.bf16 (!%p419_p7), %v984_v26, %v497_v24  ;;  %v507_v30 = vmax.bf16 (!%p419_p7), %v985_v27, %v498_v25  ;;  %v989_v31 = vld [vmem:[%s1274_s15 + $0x24] sm:$0xf] (!%p419_p7)  ;;  %v992_v32 = vld [vmem:[%s1274_s15 + $0x30] sm:$0xf] (!%p419_p7)  ;;  %v993_v33 = vld [vmem:[%s1274_s15 + $0x34] sm:$0xf] (!%p419_p7) }
  0x23   : > { %1076 = vmatpush3.bf16.msra.mxu0 (!%p419_p7), %v1123_v18  ;;  %v996_v36 = vld [vmem:[%s1274_s15 + $0x40] sm:$0xf] (!%p419_p7)  ;;  %v997_v37 = vld [vmem:[%s1274_s15 + $0x44] sm:$0xf] (!%p419_p7)  ;;  %v1000_v38 = vld [vmem:[%s1274_s15 + $0x50] sm:$0xf] (!%p419_p7) }
  0x24   : > { %1088 = vmatpush3.bf16.msra.mxu1 (!%p419_p7), %v1124_v19  ;;  %1077 = vmatprep.subr.bf16.mxu0 (!%p419_p7), %v1125_v20  ;;  %v515_v34 = vmax.bf16 (!%p419_p7), %v988_v28, %v506_v29  ;;  %v516_v35 = vmax.bf16 (!%p419_p7), %v989_v31, %v507_v30  ;;  %v1001_v41 = vld [vmem:[%s1274_s15 + $0x54] sm:$0xf] (!%p419_p7)  ;;  %v499_v42 = vld [vmem:[%s1274_s15 + $0x8] sm:$0xf] (!%p419_p7)  ;;  %v500_v43 = vld [vmem:[%s1274_s15 + $0xc] sm:$0xf] (!%p419_p7) }
  0x25   : > { %s1371_s9 = smov (!%p472_p8, %s976_s9), 7  ;;  %1089 = vmatprep.subr.bf16.mxu1 %v1126_v21  ;;  %v986_v44 = vld [vmem:[%s1274_s15 + $0x18] sm:$0xf]  ;;  %v987_v45 = vld [vmem:[%s1274_s15 + $0x1c] sm:$0xf] }
  0x26   : > { %s1284_s16 = sshll.u32 %s1371_s9, 2  ;;  %v524_v39 = vmax.bf16 %v992_v32, %v515_v34  ;;  %v525_v40 = vmax.bf16 %v993_v33, %v516_v35  ;;  %v990_v46 = vld [vmem:[%s1274_s15 + $0x28] sm:$0xf]  ;;  %v1004_v49 = vld [vmem:[%s1274_s15 + $0x60] sm:$0xf]  ;;  %v508_v50 = vmax.bf16 %v986_v44, %v499_v42  ;;  %v509_v51 = vmax.bf16 %v987_v45, %v500_v43 }
  0x27   : > { %1078 = vmatpush3.bf16.msra.mxu0 %v1125_v20  ;;  %s1296_s19 = scalar_lea.vmem %s1359_s0, %s1284_s16  ;;  %v991_v52 = vld [vmem:[%s1274_s15 + $0x2c] sm:$0xf]  ;;  %v1005_v53 = vld [vmem:[%s1274_s15 + $0x64] sm:$0xf]  ;;  %v994_v54 = vld [vmem:[%s1274_s15 + $0x38] sm:$0xf]  ;;  %s482_s22 = scalar_lea.vmem %s1364_s5, %s1284_s16 }
  0x28   : > { %1090 = vmatpush3.bf16.msra.mxu1 %v1126_v21  ;;  %1079 = vmatprep.subr.bf16.mxu0 %v1127_v22  ;;  %v533_v47 = vmax.bf16 %v996_v36, %v524_v39  ;;  %v534_v48 = vmax.bf16 %v997_v37, %v525_v40  ;;  %v995_v55 = vld [vmem:[%s1274_s15 + $0x3c] sm:$0xf]  ;;  %v1008_v58 = vld [vmem:[%s1274_s15 + $0x70] sm:$0xf]  ;;  %v1053_v59 = vld [vmem:[%s1296_s19] sm:$0xff]   ;;  %v517_v60 = vmax.bf16 %v990_v46, %v508_v50  ;;  %s494_s24 = scalar_lea.vmem %s1366_s7, %s1284_s16  ;;  %s488_s12 = scalar_lea.vmem %s1365_s6, %s1284_s16 }
  0x29   : > { %1091 = vmatprep.subr.bf16.mxu1 %v1128_v23  ;;  %v518_v61 = vmax.bf16 %v991_v52, %v509_v51  ;;  %v1009_v62 = vld [vmem:[%s1274_s15 + $0x74] sm:$0xf]  ;;  %v998_v63 = vld [vmem:[%s1274_s15 + $0x48] sm:$0xf]  ;;  %v999_v0 = vld [vmem:[%s1274_s15 + $0x4c] sm:$0xf]  ;;  %v1054_v5 = vunpack.c.l.bf16 %v1053_v59  ;;  %v1055_v6 = vunpack.c.h.bf16 %v1053_v59 }
  0x2a   : > { %v542_v56 = vmax.bf16 %v1000_v38, %v533_v47  ;;  %v543_v57 = vmax.bf16 %v1001_v41, %v534_v48  ;;  %v526_v3 = vmax.bf16 %v994_v54, %v517_v60  ;;  %v1002_v7 = vld [vmem:[%s1274_s15 + $0x58] sm:$0xf]  ;;  %v1003_v8 = vld [vmem:[%s1274_s15 + $0x5c] sm:$0xf]  ;;  %v1006_v13 = vld [vmem:[%s1274_s15 + $0x68] sm:$0xf] }
  0x2b   : > { %1080 = vmatpush3.bf16.msra.mxu0 %v1127_v22  ;;  %v527_v4 = vmax.bf16 %v995_v55, %v518_v61  ;;  %v1007_v14 = vld [vmem:[%s1274_s15 + $0x6c] sm:$0xf]  ;;  %v1010_v20 = vld [vmem:[%s1274_s15 + $0x78] sm:$0xf]  ;;  %v1011_v21 = vld [vmem:[%s1274_s15 + $0x7c] sm:$0xf] }
  0x2c   : > { %1092 = vmatpush3.bf16.msra.mxu1 %v1128_v23  ;;  %v551_v1 = vmax.bf16 %v1004_v49, %v542_v56  ;;  %v552_v2 = vmax.bf16 %v1005_v53, %v543_v57  ;;  %v535_v11 = vmax.bf16 %v998_v63, %v526_v3  ;;  %v1060_v15 = vld [vmem:[%s1296_s19 + $0x8] sm:$0xff]   ;;  %v1016_v48 = vld [vmem:[%s1363_s4] ss:$0 sm:$0xff] }
  0x2d   : > { %v536_v12 = vmax.bf16 %v999_v0, %v527_v4  ;;  %v1058_v26 = vunpack.c.l.bf16 %v1060_v15  ;;  %v1059_v31 = vunpack.c.h.bf16 %v1060_v15 }
  0x2e   : > { %v560_v9 = vmax.bf16 %v1008_v58, %v551_v1  ;;  %v561_v10 = vmax.bf16 %v1009_v62, %v552_v2  ;;  %v544_v18 = vmax.bf16 %v1002_v7, %v535_v11 }
  0x2f   : > { %v545_v19 = vmax.bf16 %v1003_v8, %v536_v12 }
  0x30   : > { %v572_v16 = vunpack.c.l.bf16 %v560_v9  ;;  %v573_v17 = vunpack.c.l.bf16 %v561_v10  ;;  %v553_v24 = vmax.bf16 %v1006_v13, %v544_v18 }
  0x31   : > { %v554_v25 = vmax.bf16 %v1007_v14, %v545_v19 }
  0x32   : > { %v576_v22 = vadd.f32 %v1054_v5, %v572_v16  ;;  %v577_v23 = vadd.f32 %v1055_v6, %v573_v17  ;;  %v562_v29 = vmax.bf16 %v1010_v20, %v553_v24 }
  0x33   : > { %v563_v30 = vmax.bf16 %v1011_v21, %v554_v25 }
  0x34   : > { %v580_v27 = vmul.f32 0.2, %v576_v22  ;;  %v581_v28 = vmul.f32 0.2, %v577_v23  ;;  %v574_v34 = vunpack.c.l.bf16 %v562_v29 }
  0x35   : > { %v575_v35 = vunpack.c.l.bf16 %v563_v30 }
  0x36   : > { %v584_v32 = vmax.f32 %v576_v22, %v580_v27  ;;  %v585_v33 = vmax.f32 %v577_v23, %v581_v28  ;;  %v578_v39 = vadd.f32 %v1058_v26, %v574_v34 }
  0x37   : > { %v579_v40 = vadd.f32 %v1059_v31, %v575_v35 }
  0x38   : > { %v588_v36 = vpack.c.bf16 %v585_v33, %v584_v32  ;;  %v1040_v37 = vpack.c.bf16 %v584_v32, %v584_v32  ;;  %v1041_v38 = vpack.c.bf16 %v585_v33, %v585_v33  ;;  %v582_v41 = vmul.f32 0.2, %v578_v39 }
  0x39   : > { %v583_v42 = vmul.f32 0.2, %v579_v40 }
  0x3a   : > { %605 = vst.msk [vmem:[%s482_s22] sm:$0xf] %vm604_vm1, %v1040_v37  ;;  %1081 = vmatprep.mubr.msk.bf16.mxu0 %vm648_vm0, %v588_v36  ;;  %1093 = vmatprep.mubr.msk.bf16.mxu1 %vm648_vm0, %v588_v36  ;;  %606 = vst.msk [vmem:[%s482_s22 + $0x4] sm:$0xf] %vm604_vm1, %v1041_v38  ;;  %v586_v43 = vmax.f32 %v578_v39, %v582_v41 }
  0x3b   : > { %v587_v44 = vmax.f32 %v579_v40, %v583_v42 }
  0x3c   : > { %v1042_v45 = vpack.c.bf16 %v586_v43, %v586_v43 }
  0x3d   : > { %v589_v46 = vpack.c.bf16 %v587_v44, %v586_v43  ;;  %v1043_v47 = vpack.c.bf16 %v587_v44, %v587_v44 }
  0x3e   : > { %607 = vst.msk [vmem:[%s482_s22 + $0x8] sm:$0xf] %vm604_vm1, %v1042_v45 }
  0x3f   : > { %608 = vst.msk [vmem:[%s482_s22 + $0xc] sm:$0xf] %vm604_vm1, %v1043_v47  ;;  %1082 = vmatmul.mubr.msk.bf16.vlgmr.msra.gmra.mrb[0].mxu0 %vm648_vm0, %v589_v46  ;;  %1094 = vmatmul.mubr.msk.bf16.vlgmr.msra.gmra.mrb[0].mxu1 %vm648_vm0, %v589_v46 }
 0x112   : > { %v1083_v49 = vpop.f32.mrb[0].mxu0  ;;  %v1095_v50 = vpop.f32.mrb[0].mxu1 }
 0x113   : > { %v689_v51 = vpop.f32.mrb[1].mxu0  ;;  %v790_v52 = vpop.f32.mrb[1].mxu1  ;;  %v698_v57 = vadd.f32 %v1083_v49, %v1016_v48  ;;  %v1050_v0 = vpack.c.bf16 %v1095_v50, %v1095_v50 }
 0x114   : > { %v690_v53 = vadd.f32 %v1016_v48, %v689_v51  ;;  %v1048_v54 = vpack.c.bf16 %v790_v52, %v790_v52  ;;  %v1084_v55 = vpop.f32.mrb[2].mxu0  ;;  %v1096_v56 = vpop.f32.mrb[2].mxu1 }
 0x115   : > { %v692_v58 = vpop.f32.mrb[3].mxu0  ;;  %v793_v59 = vpop.f32.mrb[3].mxu1  ;;  %v701_v61 = vadd.f32 %v1084_v55, %v1016_v48  ;;  %v1051_v1 = vpack.c.bf16 %v1096_v56, %v1096_v56  ;;  %v1046_v3 = vpack.c.bf16 %v698_v57, %v698_v57  ;;  %823 = vst.msk [vmem:[%s494_s24 + $0x8] sm:$0xf] %vm604_vm1, %v1050_v0 }
 0x116   : > { %v1044_v60 = vpack.c.bf16 %v690_v53, %v690_v53  ;;  %821 = vst.msk [vmem:[%s494_s24] sm:$0xf] %vm604_vm1, %v1048_v54  ;;  %v693_v62 = vadd.f32 %v1016_v48, %v692_v58  ;;  %v1049_v63 = vpack.c.bf16 %v793_v59, %v793_v59 }
 0x117   : > { %v1047_v4 = vpack.c.bf16 %v701_v61, %v701_v61  ;;  %824 = vst.msk [vmem:[%s494_s24 + $0xc] sm:$0xf] %vm604_vm1, %v1051_v1  ;;  %722 = vst.msk [vmem:[%s488_s12 + $0x8] sm:$0xf] %vm604_vm1, %v1046_v3 }
 0x118   : > { %720 = vst.msk [vmem:[%s488_s12] sm:$0xf] %vm604_vm1, %v1044_v60  ;;  %v1045_v2 = vpack.c.bf16 %v693_v62, %v693_v62  ;;  %822 = vst.msk [vmem:[%s494_s24 + $0x4] sm:$0xf] %vm604_vm1, %v1049_v63 }
 0x119   : > { %723 = vst.msk [vmem:[%s488_s12 + $0xc] sm:$0xf] %vm604_vm1, %v1047_v4 }
 0x11a   : > { %721 = vst.msk [vmem:[%s488_s12 + $0x4] sm:$0xf] %vm604_vm1, %v1045_v2 }
 0x11b PF: > { %p15_p9 = scmp.ge.s32.totalorder %s1210_s28, 4   ;;  %s1367_s24 = smov %s1147_s25 }
 0x11c   : > { %s1368_s25 = smov %s1219_s8  ;;  %s1369_s26 = smov %s1210_s28 }
 0x11d   :  { %17 = sbr.rel (!%p15_p9) target bundleno = 2 (0x2), region = 150 }

// kernel: edge_conv_model_forward.10
= control target key start
LH: loop header
LB: loop body
LE: loop exit
PB: predicated region body
PF: predicated region fallthrough
CT: control target
= control target key end

     0   :  { %s1215_s24 = smov 0   ;;  %s1217_s25 = smov 0   ;;  %s1373_s0 = inlined_call_operand.vmem [shape: bf16[64,64], index: 0, kind: input, shape index: {}]   ;;  %s1374_s1 = inlined_call_operand.vmem [shape: bf16[8,64,64], index: 1, kind: input, shape index: {}]   ;;  %s1375_s2 = inlined_call_operand.vmem [shape: bf16[64,128], index: 2, kind: input, shape index: {}]   ;;  %s1376_s3 = inlined_call_operand.vmem [shape: bf16[64,128], index: 3, kind: input, shape index: {}]   ;;  %s1377_s4 = inlined_call_operand.vmem [shape: f32[1,128], index: 4, kind: input, shape index: {}]   ;;  %s1378_s5 = inlined_call_operand.vmem [shape: bf16[64,64], index: 5, kind: output, shape index: {0}]   ;;  %s1379_s6 = inlined_call_operand.vmem [shape: bf16[64,128], index: 6, kind: output, shape index: {1}]   ;;  %s1380_s7 = inlined_call_operand.vmem [shape: bf16[64,128], index: 7, kind: output, shape index: {2}]  }
   0x1   :  { %s1219_s26 = smov 0  }
   0x2 LB: > { %s967_s27 = sadd.s32 4294967295, %s1173_s26   ;;  %s1232_s28 = sadd.s32 1, %s1173_s26   ;;  %s1173_s26 = sphi %s1219_s26, %s1383_s26   ;;  %s1169_s25 = sphi %s1217_s25, %s1382_s25   ;;  %s1165_s24 = sphi %s1215_s24, %s1381_s24  }
   0x3   : > { %s48_s29 = ssub.s32 %s1173_s26, %s1232_s28  ;;  %s51_s30 = sadd.s32 1, %s1169_s25 }
   0x4   : > { %p49_p0 = scmp.eq.s32.totalorder %s48_s29, 0  ;;  %p58_p1 = scmp.ne.s32.totalorder %s1169_s25, %s1165_s24 }
   0x5   : > { %p59_p2 = scmp.eq.s32.totalorder %s1173_s26, 0  ;;  %p970_p4 = scmp.ge.s32.totalorder %s1173_s26, 2 }
   0x6   : > { %s1241_s8 = scalar_select %p49_p0, %s1169_s25, %s51_s30  }
   0x7   : > { %p60_p3 = por %p59_p2, %p58_p1  ;;  %234 = sbr.rel (%p970_p4) target bundleno = 26 (0x1a), region = 28 }
   0xe   : > { %246 = sbr.rel (!%p60_p3) target bundleno = 26 (0x1a), region = 36  ;;  %s248_s9 = sand.u32 (%p60_p3), 1, %s1169_s25  }
   0xf   : > { %s1039_s10 = sshll.u32 (%p60_p3), %s1173_s26, 4  ;;  %s971_s11 = sshll.u32 (%p60_p3), %s248_s9, 7 }
  0x10   : > { %s1249_s14 = scalar_lea.vmem (%p60_p3), %s1374_s1, %s1039_s10  ;;  %s250_s15 = scalar_lea.vmem (%p60_p3), [#allocation2], %s971_s11 }
  0x11   : > { %v269_v0 = vld [vmem:[%s1249_s14] sm:$0xff] (%p60_p3)   ;;  %v273_v1 = vld [vmem:[%s1249_s14 + $0x8] sm:$0xff] (%p60_p3)  }
  0x12   : > { %v277_v2 = vld [vmem:[%s1249_s14 + $0x20] sm:$0xff] (%p60_p3)   ;;  %270 = vst [vmem:[%s250_s15] sm:$0xff] (%p60_p3), %v269_v0   ;;  %274 = vst [vmem:[%s250_s15 + $0x8] sm:$0xff] (%p60_p3), %v273_v1   ;;  %v281_v3 = vld [vmem:[%s1249_s14 + $0x28] sm:$0xff] (%p60_p3)  }
  0x13   : > { %278 = vst [vmem:[%s250_s15 + $0x10] sm:$0xff] (%p60_p3), %v277_v2   ;;  %v285_v4 = vld [vmem:[%s1249_s14 + $0x40] sm:$0xff] (%p60_p3)   ;;  %v289_v5 = vld [vmem:[%s1249_s14 + $0x48] sm:$0xff] (%p60_p3)   ;;  %282 = vst [vmem:[%s250_s15 + $0x18] sm:$0xff] (%p60_p3), %v281_v3  }
  0x14   : > { %286 = vst [vmem:[%s250_s15 + $0x20] sm:$0xff] (%p60_p3), %v285_v4   ;;  %290 = vst [vmem:[%s250_s15 + $0x28] sm:$0xff] (%p60_p3), %v289_v5   ;;  %v293_v6 = vld [vmem:[%s1249_s14 + $0x60] sm:$0xff] (%p60_p3)   ;;  %v297_v7 = vld [vmem:[%s1249_s14 + $0x68] sm:$0xff] (%p60_p3)  }
  0x15   : > { %v301_v8 = vld [vmem:[%s1249_s14 + $0x80] sm:$0xff]   ;;  %294 = vst [vmem:[%s250_s15 + $0x30] sm:$0xff] %v293_v6   ;;  %298 = vst [vmem:[%s250_s15 + $0x38] sm:$0xff] %v297_v7   ;;  %v305_v9 = vld [vmem:[%s1249_s14 + $0x88] sm:$0xff]  }
  0x16   : > { %302 = vst [vmem:[%s250_s15 + $0x40] sm:$0xff] %v301_v8   ;;  %v309_v10 = vld [vmem:[%s1249_s14 + $0xa0] sm:$0xff]   ;;  %v313_v11 = vld [vmem:[%s1249_s14 + $0xa8] sm:$0xff]   ;;  %306 = vst [vmem:[%s250_s15 + $0x48] sm:$0xff] %v305_v9  }
  0x17   : > { %310 = vst [vmem:[%s250_s15 + $0x50] sm:$0xff] %v309_v10   ;;  %314 = vst [vmem:[%s250_s15 + $0x58] sm:$0xff] %v313_v11   ;;  %v317_v12 = vld [vmem:[%s1249_s14 + $0xc0] sm:$0xff]   ;;  %v321_v13 = vld [vmem:[%s1249_s14 + $0xc8] sm:$0xff]  }
  0x18   : > { %v325_v14 = vld [vmem:[%s1249_s14 + $0xe0] sm:$0xff]   ;;  %318 = vst [vmem:[%s250_s15 + $0x60] sm:$0xff] %v317_v12   ;;  %322 = vst [vmem:[%s250_s15 + $0x68] sm:$0xff] %v321_v13   ;;  %v329_v15 = vld [vmem:[%s1249_s14 + $0xe8] sm:$0xff]  }
  0x19   : > { %326 = vst [vmem:[%s250_s15 + $0x70] sm:$0xff] %v325_v14   ;;  %330 = vst [vmem:[%s250_s15 + $0x78] sm:$0xff] %v329_v15  }
  0x1a PF: > { %p974_p5 = scmp.ge.s32.totalorder %s1173_s26, 1  ;;  %p418_p6 = scmp.lt.s32.totalorder %s1173_s26, 3 }
  0x1c   : > { %p419_p7 = pnand %p974_p5, %p418_p6 }
  0x1d   : > { %v1143_v16 = vld [vmem:[%s1375_s2] sm:$0xff] (!%p419_p7)   ;;  %s425_s18 = sand.u32 (!%p419_p7), 1, %s1165_s24   ;;  %v1145_v18 = vld [vmem:[%s1375_s2 + $0x8] sm:$0xff] (!%p419_p7)   ;;  %s976_s9 = sshll.u32 (!%p419_p7), %s967_s27, 2  ;;  %v1147_v20 = vld [vmem:[%s1375_s2 + $0x10] sm:$0xff] (!%p419_p7)   ;;  %vm604_vm0 = vcmask (!%p419_p7), 519168  }
  0x1e   : > { %422 = sbr.rel (%p419_p7) target bundleno = 283 (0x11b), region = 77  ;;  %v1144_v17 = vld [vmem:[%s1376_s3] sm:$0xff] (!%p419_p7)   ;;  %1095 = vmatprep.subr.bf16.mxu0 (!%p419_p7), %v1143_v16  ;;  %s975_s23 = sshll.u32 (!%p419_p7), %s425_s18, 7  ;;  %v1146_v19 = vld [vmem:[%s1376_s3 + $0x8] sm:$0xff] (!%p419_p7)   ;;  %v1148_v21 = vld [vmem:[%s1376_s3 + $0x10] sm:$0xff] (!%p419_p7)   ;;  %vm648_vm1 = vcmask (!%p419_p7), 523264  }
  0x1f   : > { %1107 = vmatprep.subr.bf16.mxu1 (!%p419_p7), %v1144_v17  ;;  %1096 = vmatpush3.bf16.msra.mxu0 (!%p419_p7), %v1143_v16  ;;  %p472_p8 = scmp.lt.s32.totalorder (!%p419_p7), %s976_s9, 7  ;;  %v1149_v22 = vld [vmem:[%s1375_s2 + $0x18] sm:$0xff] (!%p419_p7)   ;;  %s1296_s15 = scalar_lea.vmem (!%p419_p7), [#allocation2], %s975_s23 }
  0x20   : > { %1108 = vmatpush3.bf16.msra.mxu1 (!%p419_p7), %v1144_v17  ;;  %1097 = vmatprep.subr.bf16.mxu0 (!%p419_p7), %v1145_v18  ;;  %v1150_v23 = vld [vmem:[%s1376_s3 + $0x18] sm:$0xff] (!%p419_p7)   ;;  %v497_v24 = vld [vmem:[%s1296_s15] sm:$0xf] (!%p419_p7)  ;;  %v498_v25 = vld [vmem:[%s1296_s15 + $0x4] sm:$0xf] (!%p419_p7) }
  0x21   : > { %1109 = vmatprep.subr.bf16.mxu1 (!%p419_p7), %v1146_v19  ;;  %v984_v26 = vld [vmem:[%s1296_s15 + $0x10] sm:$0xf] (!%p419_p7)  ;;  %v985_v27 = vld [vmem:[%s1296_s15 + $0x14] sm:$0xf] (!%p419_p7)  ;;  %v988_v28 = vld [vmem:[%s1296_s15 + $0x20] sm:$0xf] (!%p419_p7) }
  0x22   : > { %v506_v29 = vmax.bf16 (!%p419_p7), %v984_v26, %v497_v24  ;;  %v507_v30 = vmax.bf16 (!%p419_p7), %v985_v27, %v498_v25  ;;  %v989_v31 = vld [vmem:[%s1296_s15 + $0x24] sm:$0xf] (!%p419_p7)  ;;  %v992_v32 = vld [vmem:[%s1296_s15 + $0x30] sm:$0xf] (!%p419_p7)  ;;  %v993_v33 = vld [vmem:[%s1296_s15 + $0x34] sm:$0xf] (!%p419_p7) }
  0x23   : > { %1098 = vmatpush3.bf16.msra.mxu0 (!%p419_p7), %v1145_v18  ;;  %v996_v36 = vld [vmem:[%s1296_s15 + $0x40] sm:$0xf] (!%p419_p7)  ;;  %v997_v37 = vld [vmem:[%s1296_s15 + $0x44] sm:$0xf] (!%p419_p7)  ;;  %v1000_v38 = vld [vmem:[%s1296_s15 + $0x50] sm:$0xf] (!%p419_p7) }
  0x24   : > { %1110 = vmatpush3.bf16.msra.mxu1 (!%p419_p7), %v1146_v19  ;;  %1099 = vmatprep.subr.bf16.mxu0 (!%p419_p7), %v1147_v20  ;;  %v515_v34 = vmax.bf16 (!%p419_p7), %v988_v28, %v506_v29  ;;  %v516_v35 = vmax.bf16 (!%p419_p7), %v989_v31, %v507_v30  ;;  %v1001_v41 = vld [vmem:[%s1296_s15 + $0x54] sm:$0xf] (!%p419_p7)  ;;  %v499_v42 = vld [vmem:[%s1296_s15 + $0x8] sm:$0xf] (!%p419_p7)  ;;  %v500_v43 = vld [vmem:[%s1296_s15 + $0xc] sm:$0xf] (!%p419_p7) }
  0x25   : > { %s1385_s9 = smov (!%p472_p8, %s976_s9), 7  ;;  %1111 = vmatprep.subr.bf16.mxu1 %v1148_v21  ;;  %v986_v44 = vld [vmem:[%s1296_s15 + $0x18] sm:$0xf]  ;;  %v987_v45 = vld [vmem:[%s1296_s15 + $0x1c] sm:$0xf] }
  0x26   : > { %s1306_s16 = sshll.u32 %s1385_s9, 2  ;;  %v524_v39 = vmax.bf16 %v992_v32, %v515_v34  ;;  %v525_v40 = vmax.bf16 %v993_v33, %v516_v35  ;;  %v990_v46 = vld [vmem:[%s1296_s15 + $0x28] sm:$0xf]  ;;  %v1004_v49 = vld [vmem:[%s1296_s15 + $0x60] sm:$0xf]  ;;  %v508_v50 = vmax.bf16 %v986_v44, %v499_v42  ;;  %v509_v51 = vmax.bf16 %v987_v45, %v500_v43 }
  0x27   : > { %1100 = vmatpush3.bf16.msra.mxu0 %v1147_v20  ;;  %s1318_s19 = scalar_lea.vmem %s1373_s0, %s1306_s16  ;;  %v991_v52 = vld [vmem:[%s1296_s15 + $0x2c] sm:$0xf]  ;;  %v1005_v53 = vld [vmem:[%s1296_s15 + $0x64] sm:$0xf]  ;;  %v994_v54 = vld [vmem:[%s1296_s15 + $0x38] sm:$0xf]  ;;  %s482_s22 = scalar_lea.vmem %s1378_s5, %s1306_s16 }
  0x28   : > { %1112 = vmatpush3.bf16.msra.mxu1 %v1148_v21  ;;  %1101 = vmatprep.subr.bf16.mxu0 %v1149_v22  ;;  %v533_v47 = vmax.bf16 %v996_v36, %v524_v39  ;;  %v534_v48 = vmax.bf16 %v997_v37, %v525_v40  ;;  %v995_v55 = vld [vmem:[%s1296_s15 + $0x3c] sm:$0xf]  ;;  %v1008_v58 = vld [vmem:[%s1296_s15 + $0x70] sm:$0xf]  ;;  %v1053_v59 = vld [vmem:[%s1318_s19] sm:$0xff]   ;;  %v517_v60 = vmax.bf16 %v990_v46, %v508_v50  ;;  %s494_s24 = scalar_lea.vmem %s1380_s7, %s1306_s16  ;;  %s488_s12 = scalar_lea.vmem %s1379_s6, %s1306_s16 }
  0x29   : > { %1113 = vmatprep.subr.bf16.mxu1 %v1150_v23  ;;  %v518_v61 = vmax.bf16 %v991_v52, %v509_v51  ;;  %v1009_v62 = vld [vmem:[%s1296_s15 + $0x74] sm:$0xf]  ;;  %v998_v63 = vld [vmem:[%s1296_s15 + $0x48] sm:$0xf]  ;;  %v999_v0 = vld [vmem:[%s1296_s15 + $0x4c] sm:$0xf]  ;;  %v1054_v5 = vunpack.c.l.bf16 %v1053_v59  ;;  %v1055_v6 = vunpack.c.h.bf16 %v1053_v59 }
  0x2a   : > { %v542_v56 = vmax.bf16 %v1000_v38, %v533_v47  ;;  %v543_v57 = vmax.bf16 %v1001_v41, %v534_v48  ;;  %v526_v3 = vmax.bf16 %v994_v54, %v517_v60  ;;  %v1002_v7 = vld [vmem:[%s1296_s15 + $0x58] sm:$0xf]  ;;  %v1003_v8 = vld [vmem:[%s1296_s15 + $0x5c] sm:$0xf]  ;;  %v1006_v13 = vld [vmem:[%s1296_s15 + $0x68] sm:$0xf] }
  0x2b   : > { %1102 = vmatpush3.bf16.msra.mxu0 %v1149_v22  ;;  %v527_v4 = vmax.bf16 %v995_v55, %v518_v61  ;;  %v1007_v14 = vld [vmem:[%s1296_s15 + $0x6c] sm:$0xf]  ;;  %v1010_v20 = vld [vmem:[%s1296_s15 + $0x78] sm:$0xf]  ;;  %v1011_v21 = vld [vmem:[%s1296_s15 + $0x7c] sm:$0xf] }
  0x2c   : > { %1114 = vmatpush3.bf16.msra.mxu1 %v1150_v23  ;;  %v551_v1 = vmax.bf16 %v1004_v49, %v542_v56  ;;  %v552_v2 = vmax.bf16 %v1005_v53, %v543_v57  ;;  %v535_v11 = vmax.bf16 %v998_v63, %v526_v3  ;;  %v1080_v15 = vld [vmem:[%s1318_s19 + $0x8] sm:$0xff]   ;;  %v1016_v49 = vld [vmem:[%s1377_s4] ss:$0 sm:$0xff] }
  0x2d   : > { %v536_v12 = vmax.bf16 %v999_v0, %v527_v4  ;;  %v1058_v26 = vunpack.c.l.bf16 %v1080_v15  ;;  %v1059_v31 = vunpack.c.h.bf16 %v1080_v15 }
  0x2e   : > { %v560_v9 = vmax.bf16 %v1008_v58, %v551_v1  ;;  %v561_v10 = vmax.bf16 %v1009_v62, %v552_v2  ;;  %v544_v18 = vmax.bf16 %v1002_v7, %v535_v11 }
  0x2f   : > { %v545_v19 = vmax.bf16 %v1003_v8, %v536_v12 }
  0x30   : > { %v572_v16 = vunpack.c.l.bf16 %v560_v9  ;;  %v573_v17 = vunpack.c.l.bf16 %v561_v10  ;;  %v553_v24 = vmax.bf16 %v1006_v13, %v544_v18 }
  0x31   : > { %v554_v25 = vmax.bf16 %v1007_v14, %v545_v19 }
  0x32   : > { %v576_v22 = vadd.f32 %v1054_v5, %v572_v16  ;;  %v577_v23 = vadd.f32 %v1055_v6, %v573_v17  ;;  %v562_v29 = vmax.bf16 %v1010_v20, %v553_v24 }
  0x33   : > { %v563_v30 = vmax.bf16 %v1011_v21, %v554_v25 }
  0x34   : > { %v580_v27 = vmul.f32 0.2, %v576_v22  ;;  %v581_v28 = vmul.f32 0.2, %v577_v23  ;;  %v574_v34 = vunpack.c.l.bf16 %v562_v29 }
  0x35   : > { %v575_v35 = vunpack.c.l.bf16 %v563_v30 }
  0x36   : > { %v584_v32 = vmax.f32 %v576_v22, %v580_v27  ;;  %v585_v33 = vmax.f32 %v577_v23, %v581_v28  ;;  %v578_v39 = vadd.f32 %v1058_v26, %v574_v34 }
  0x37   : > { %v579_v40 = vadd.f32 %v1059_v31, %v575_v35 }
  0x38   : > { %v588_v36 = vpack.c.bf16 %v585_v33, %v584_v32  ;;  %v1040_v37 = vpack.c.bf16 %v584_v32, %v584_v32  ;;  %v1041_v38 = vpack.c.bf16 %v585_v33, %v585_v33  ;;  %v582_v41 = vmul.f32 0.2, %v578_v39 }
  0x39   : > { %v583_v42 = vmul.f32 0.2, %v579_v40 }
  0x3a   : > { %605 = vst.msk [vmem:[%s482_s22] sm:$0xf] %vm604_vm0, %v1040_v37  ;;  %1103 = vmatprep.mubr.msk.bf16.mxu0 %vm648_vm1, %v588_v36  ;;  %1115 = vmatprep.mubr.msk.bf16.mxu1 %vm648_vm1, %v588_v36  ;;  %606 = vst.msk [vmem:[%s482_s22 + $0x4] sm:$0xf] %vm604_vm0, %v1041_v38  ;;  %v586_v43 = vmax.f32 %v578_v39, %v582_v41 }
  0x3b   : > { %v587_v44 = vmax.f32 %v579_v40, %v583_v42 }
  0x3c   : > { %v1042_v45 = vpack.c.bf16 %v586_v43, %v586_v43 }
  0x3d   : > { %v589_v46 = vpack.c.bf16 %v587_v44, %v586_v43  ;;  %v1043_v47 = vpack.c.bf16 %v587_v44, %v587_v44 }
  0x3e   : > { %607 = vst.msk [vmem:[%s482_s22 + $0x8] sm:$0xf] %vm604_vm0, %v1042_v45 }
  0x3f   : > { %608 = vst.msk [vmem:[%s482_s22 + $0xc] sm:$0xf] %vm604_vm0, %v1043_v47  ;;  %1104 = vmatmul.mubr.msk.bf16.vlgmr.msra.gmra.mrb[0].mxu0 %vm648_vm1, %v589_v46  ;;  %1116 = vmatmul.mubr.msk.bf16.vlgmr.msra.gmra.mrb[0].mxu1 %vm648_vm1, %v589_v46 }
 0x112   : > { %v1105_v48 = vpop.f32.mrb[0].mxu0  ;;  %v1117_v50 = vpop.f32.mrb[0].mxu1 }
 0x113   : > { %v689_v51 = vpop.f32.mrb[1].mxu0  ;;  %v790_v52 = vpop.f32.mrb[1].mxu1  ;;  %v698_v55 = vadd.f32 %v1105_v48, %v1016_v49 }
 0x114   : > { %v1106_v53 = vpop.f32.mrb[2].mxu0  ;;  %v1118_v54 = vpop.f32.mrb[2].mxu1  ;;  %v690_v60 = vadd.f32 %v1016_v49, %v689_v51 }
 0x115   : > { %v701_v56 = vadd.f32 %v1106_v53, %v1016_v49  ;;  %v1078_v57 = vpack.c.bf16 %v1118_v54, %v1117_v50  ;;  %v692_v58 = vpop.f32.mrb[3].mxu0  ;;  %v793_v59 = vpop.f32.mrb[3].mxu1 }
 0x116   : > { %v693_v61 = vadd.f32 %v1016_v49, %v692_v58  ;;  %v1073_v62 = vpack.c.bf16 %v793_v59, %v790_v52 }
 0x117   : > { %v1068_v63 = vpack.c.bf16 %v701_v56, %v698_v55  ;;  %1082 = vst [vmem:[%s494_s24 + $0x8] sm:$0xff] %v1078_v57  }
 0x118   : > { %v1063_v0 = vpack.c.bf16 %v693_v61, %v690_v60  ;;  %1074 = vst [vmem:[%s494_s24] sm:$0xff] %v1073_v62  }
 0x119   : > { %1081 = vst [vmem:[%s488_s12 + $0x8] sm:$0xff] %v1068_v63  }
 0x11a   : > { %1064 = vst [vmem:[%s488_s12] sm:$0xff] %v1063_v0  }
 0x11b PF: > { %p15_p9 = scmp.ge.s32.totalorder %s1232_s28, 4   ;;  %s1381_s24 = smov %s1169_s25 }
 0x11c   : > { %s1382_s25 = smov %s1241_s8  ;;  %s1383_s26 = smov %s1232_s28 }
 0x11d   :  { %17 = sbr.rel (!%p15_p9) target bundleno = 2 (0x2), region = 150 }

// kernel: edge_conv_model_forward.11
= control target key start
LH: loop header
LB: loop body
LE: loop exit
PB: predicated region body
PF: predicated region fallthrough
CT: control target
= control target key end

     0   :  { %s1390_s24 = smov 0   ;;  %s1392_s25 = smov 0   ;;  %s1630_s0 = inlined_call_operand.vmem [shape: bf16[64,128], index: 0, kind: input, shape index: {}]   ;;  %s1631_s1 = inlined_call_operand.vmem [shape: bf16[8,64,128], index: 1, kind: input, shape index: {}]   ;;  %s1632_s2 = inlined_call_operand.vmem [shape: bf16[128,256], index: 2, kind: input, shape index: {}]   ;;  %s1633_s3 = inlined_call_operand.vmem [shape: bf16[128,256], index: 3, kind: input, shape index: {}]   ;;  %s1634_s4 = inlined_call_operand.vmem [shape: f32[1,256], index: 4, kind: input, shape index: {}]   ;;  %s1635_s5 = inlined_call_operand.vmem [shape: bf16[64,128], index: 5, kind: output, shape index: {0}]   ;;  %s1636_s6 = inlined_call_operand.vmem [shape: bf16[64,256], index: 6, kind: output, shape index: {1}]   ;;  %s1637_s7 = inlined_call_operand.vmem [shape: bf16[64,256], index: 7, kind: output, shape index: {2}]  }
   0x1   :  { %s1394_s26 = smov 0  }
   0x2 LB: > { %s1124_s27 = sadd.s32 4294967295, %s1347_s26   ;;  %s1407_s28 = sadd.s32 1, %s1347_s26   ;;  %s1347_s26 = sphi %s1394_s26, %s1640_s26   ;;  %s1343_s25 = sphi %s1392_s25, %s1639_s25   ;;  %s1339_s24 = sphi %s1390_s24, %s1638_s24  }
   0x3   : > { %s48_s29 = ssub.s32 %s1347_s26, %s1407_s28  ;;  %s51_s30 = sadd.s32 1, %s1343_s25 }
   0x4   : > { %p49_p0 = scmp.eq.s32.totalorder %s48_s29, 0  ;;  %p58_p1 = scmp.ne.s32.totalorder %s1343_s25, %s1339_s24 }
   0x5   : > { %p59_p2 = scmp.eq.s32.totalorder %s1347_s26, 0  ;;  %p1127_p4 = scmp.ge.s32.totalorder %s1347_s26, 2 }
   0x6   : > { %s1416_s8 = scalar_select %p49_p0, %s1343_s25, %s51_s30  }
   0x7   : > { %p60_p3 = por %p59_p2, %p58_p1  ;;  %234 = sbr.rel (%p1127_p4) target bundleno = 26 (0x1a), region = 28 }
   0xe   : > { %246 = sbr.rel (!%p60_p3) target bundleno = 26 (0x1a), region = 36  ;;  %s248_s9 = sand.u32 (%p60_p3), 1, %s1343_s25  }
   0xf   : > { %s1217_s10 = sshll.u32 (%p60_p3), %s1347_s26, 4  ;;  %s1128_s11 = sshll.u32 (%p60_p3), %s248_s9, 7 }
  0x10   : > { %s1424_s14 = scalar_lea.vmem (%p60_p3), %s1631_s1, %s1217_s10  ;;  %s250_s15 = scalar_lea.vmem (%p60_p3), [#allocation2], %s1128_s11 }
  0x11   : > { %v269_v0 = vld [vmem:[%s1424_s14] sm:$0xff] (%p60_p3)   ;;  %v273_v1 = vld [vmem:[%s1424_s14 + $0x8] sm:$0xff] (%p60_p3)  }
  0x12   : > { %v277_v2 = vld [vmem:[%s1424_s14 + $0x20] sm:$0xff] (%p60_p3)   ;;  %270 = vst [vmem:[%s250_s15] sm:$0xff] (%p60_p3), %v269_v0   ;;  %274 = vst [vmem:[%s250_s15 + $0x8] sm:$0xff] (%p60_p3), %v273_v1   ;;  %v281_v3 = vld [vmem:[%s1424_s14 + $0x28] sm:$0xff] (%p60_p3)  }
  0x13   : > { %278 = vst [vmem:[%s250_s15 + $0x10] sm:$0xff] (%p60_p3), %v277_v2   ;;  %v285_v4 = vld [vmem:[%s1424_s14 + $0x40] sm:$0xff] (%p60_p3)   ;;  %v289_v5 = vld [vmem:[%s1424_s14 + $0x48] sm:$0xff] (%p60_p3)   ;;  %282 = vst [vmem:[%s250_s15 + $0x18] sm:$0xff] (%p60_p3), %v281_v3  }
  0x14   : > { %286 = vst [vmem:[%s250_s15 + $0x20] sm:$0xff] (%p60_p3), %v285_v4   ;;  %290 = vst [vmem:[%s250_s15 + $0x28] sm:$0xff] (%p60_p3), %v289_v5   ;;  %v293_v6 = vld [vmem:[%s1424_s14 + $0x60] sm:$0xff] (%p60_p3)   ;;  %v297_v7 = vld [vmem:[%s1424_s14 + $0x68] sm:$0xff] (%p60_p3)  }
  0x15   : > { %v301_v8 = vld [vmem:[%s1424_s14 + $0x80] sm:$0xff]   ;;  %294 = vst [vmem:[%s250_s15 + $0x30] sm:$0xff] %v293_v6   ;;  %298 = vst [vmem:[%s250_s15 + $0x38] sm:$0xff] %v297_v7   ;;  %v305_v9 = vld [vmem:[%s1424_s14 + $0x88] sm:$0xff]  }
  0x16   : > { %302 = vst [vmem:[%s250_s15 + $0x40] sm:$0xff] %v301_v8   ;;  %v309_v10 = vld [vmem:[%s1424_s14 + $0xa0] sm:$0xff]   ;;  %v313_v11 = vld [vmem:[%s1424_s14 + $0xa8] sm:$0xff]   ;;  %306 = vst [vmem:[%s250_s15 + $0x48] sm:$0xff] %v305_v9  }
  0x17   : > { %310 = vst [vmem:[%s250_s15 + $0x50] sm:$0xff] %v309_v10   ;;  %314 = vst [vmem:[%s250_s15 + $0x58] sm:$0xff] %v313_v11   ;;  %v317_v12 = vld [vmem:[%s1424_s14 + $0xc0] sm:$0xff]   ;;  %v321_v13 = vld [vmem:[%s1424_s14 + $0xc8] sm:$0xff]  }
  0x18   : > { %v325_v14 = vld [vmem:[%s1424_s14 + $0xe0] sm:$0xff]   ;;  %318 = vst [vmem:[%s250_s15 + $0x60] sm:$0xff] %v317_v12   ;;  %322 = vst [vmem:[%s250_s15 + $0x68] sm:$0xff] %v321_v13   ;;  %v329_v15 = vld [vmem:[%s1424_s14 + $0xe8] sm:$0xff]  }
  0x19   : > { %326 = vst [vmem:[%s250_s15 + $0x70] sm:$0xff] %v325_v14   ;;  %330 = vst [vmem:[%s250_s15 + $0x78] sm:$0xff] %v329_v15  }
  0x1a PF: > { %p1131_p5 = scmp.ge.s32.totalorder %s1347_s26, 1  ;;  %p418_p6 = scmp.lt.s32.totalorder %s1347_s26, 3 }
  0x1c   : > { %p419_p7 = pnand %p1131_p5, %p418_p6 }
  0x1d   : > { %v1277_v16 = vld [vmem:[%s1632_s2 + $0x4] ss:$8 sps:$4 sm:$0xff] (!%p419_p7)   ;;  %v1349_v18 = vmov (!%p419_p7), 0   ;;  %v1281_v19 = vld [vmem:[%s1632_s2] ss:$8 sps:$4 sm:$0xff] (!%p419_p7)   ;;  %s425_s12 = sand.u32 (!%p419_p7), 1, %s1339_s24  }
  0x1e   : > { %422 = sbr.rel (%p419_p7) target bundleno = 293 (0x125), region = 77  ;;  %v1279_v17 = vld [vmem:[%s1633_s3 + $0x4] ss:$8 sps:$4 sm:$0xff] (!%p419_p7)   ;;  %752 = vmatprep.mubr.bf16.mxu0 (!%p419_p7), %v1349_v18  ;;  %929 = vmatprep.mubr.bf16.mxu1 (!%p419_p7), %v1349_v18  ;;  %v1282_v20 = vld [vmem:[%s1633_s3] ss:$8 sps:$4 sm:$0xff] (!%p419_p7)   ;;  %s1133_s17 = sshll.u32 (!%p419_p7), %s1124_s27, 2 }
  0x1f   : > { %720 = vmatprep.subr.bf16.mxu0 (!%p419_p7), %v1277_v16  ;;  %897 = vmatprep.subr.bf16.mxu1 (!%p419_p7), %v1279_v17  ;;  %v1283_v21 = vld [vmem:[%s1632_s2 + $0x14] ss:$8 sps:$4 sm:$0xff] (!%p419_p7)   ;;  %v1287_v23 = vld [vmem:[%s1632_s2 + $0x10] ss:$8 sps:$4 sm:$0xff] (!%p419_p7)   ;;  %v1289_v25 = vld [vmem:[%s1632_s2 + $0x24] ss:$8 sps:$4 sm:$0xff] (!%p419_p7)  }
  0x20   : > { %721 = vmatpush1.bf16.msra.mxu0 (!%p419_p7), %v1281_v19  ;;  %898 = vmatpush1.bf16.msra.mxu1 (!%p419_p7), %v1282_v20  ;;  %v1285_v22 = vld [vmem:[%s1633_s3 + $0x14] ss:$8 sps:$4 sm:$0xff] (!%p419_p7)   ;;  %v1288_v24 = vld [vmem:[%s1633_s3 + $0x10] ss:$8 sps:$4 sm:$0xff] (!%p419_p7)   ;;  %v1291_v26 = vld [vmem:[%s1633_s3 + $0x24] ss:$8 sps:$4 sm:$0xff] (!%p419_p7)  }
  0x21   : > { %722 = vmatprep.subr.bf16.mxu0 (!%p419_p7), %v1283_v21  ;;  %899 = vmatprep.subr.bf16.mxu1 (!%p419_p7), %v1285_v22  ;;  %v1293_v27 = vld [vmem:[%s1632_s2 + $0x20] ss:$8 sps:$4 sm:$0xff] (!%p419_p7)   ;;  %v1295_v29 = vld [vmem:[%s1632_s2 + $0x34] ss:$8 sps:$4 sm:$0xff] (!%p419_p7)   ;;  %v1299_v31 = vld [vmem:[%s1632_s2 + $0x30] ss:$8 sps:$4 sm:$0xff] (!%p419_p7)  }
  0x22   : > { %v1294_v28 = vld [vmem:[%s1633_s3 + $0x20] ss:$8 sps:$4 sm:$0xff] (!%p419_p7)   ;;  %v1297_v30 = vld [vmem:[%s1633_s3 + $0x34] ss:$8 sps:$4 sm:$0xff] (!%p419_p7)   ;;  %v1300_v32 = vld [vmem:[%s1633_s3 + $0x30] ss:$8 sps:$4 sm:$0xff] (!%p419_p7)  }
  0x23   : > { %v1301_v33 = vld [vmem:[%s1632_s2 + $0x44] ss:$8 sps:$4 sm:$0xff] (!%p419_p7)   ;;  %v1305_v35 = vld [vmem:[%s1632_s2 + $0x40] ss:$8 sps:$4 sm:$0xff] (!%p419_p7)   ;;  %s1132_s23 = sshll.u32 (!%p419_p7), %s425_s12, 7  ;;  %p474_p8 = scmp.lt.s32.totalorder (!%p419_p7), %s1133_s17, 7 }
  0x24   : > { %723 = vmatpush1.bf16.msra.mxu0 (!%p419_p7), %v1287_v23  ;;  %900 = vmatpush1.bf16.msra.mxu1 (!%p419_p7), %v1288_v24  ;;  %v1303_v34 = vld [vmem:[%s1633_s3 + $0x44] ss:$8 sps:$4 sm:$0xff] (!%p419_p7)   ;;  %v1306_v36 = vld [vmem:[%s1633_s3 + $0x40] ss:$8 sps:$4 sm:$0xff] (!%p419_p7)   ;;  %v1307_v37 = vld [vmem:[%s1632_s2 + $0x54] ss:$8 sps:$4 sm:$0xff] (!%p419_p7)  }
  0x25   : > { %724 = vmatprep.subr.bf16.mxu0 %v1289_v25  ;;  %901 = vmatprep.subr.bf16.mxu1 %v1291_v26  ;;  %v1309_v38 = vld [vmem:[%s1633_s3 + $0x54] ss:$8 sps:$4 sm:$0xff]   ;;  %v1311_v39 = vld [vmem:[%s1632_s2 + $0x50] ss:$8 sps:$4 sm:$0xff]   ;;  %s1642_s17 = smov (!%p474_p8, %s1133_s17), 7  ;;  %s1529_s18 = scalar_lea.vmem [#allocation2], %s1132_s23 }
  0x26   : > { %v1312_v40 = vld [vmem:[%s1633_s3 + $0x50] ss:$8 sps:$4 sm:$0xff]   ;;  %v1313_v41 = vld [vmem:[%s1632_s2 + $0x64] ss:$8 sps:$4 sm:$0xff]   ;;  %v501_v43 = vld [vmem:[%s1529_s18] sm:$0xf] }
  0x27   : > { %v1315_v42 = vld [vmem:[%s1633_s3 + $0x64] ss:$8 sps:$4 sm:$0xff]   ;;  %v1143_v45 = vld [vmem:[%s1529_s18 + $0x10] sm:$0xf]  ;;  %v1144_v46 = vld [vmem:[%s1529_s18 + $0x14] sm:$0xf] }
  0x28   : > { %725 = vmatpush1.bf16.msra.mxu0 %v1293_v27  ;;  %902 = vmatpush1.bf16.msra.mxu1 %v1294_v28  ;;  %v502_v44 = vld [vmem:[%s1529_s18 + $0x4] sm:$0xf]  ;;  %v1147_v47 = vld [vmem:[%s1529_s18 + $0x20] sm:$0xf]  ;;  %s1134_s24 = sshll.u32 %s1642_s17, 2  ;;  %v510_v49 = vmax.bf16 %v1143_v45, %v501_v43 }
  0x29   : > { %726 = vmatprep.subr.bf16.mxu0 %v1295_v29  ;;  %903 = vmatprep.subr.bf16.mxu1 %v1297_v30  ;;  %v1317_v48 = vld [vmem:[%s1632_s2 + $0x60] ss:$8 sps:$4 sm:$0xff]   ;;  %v511_v50 = vmax.bf16 %v1144_v46, %v502_v44  ;;  %v1148_v51 = vld [vmem:[%s1529_s18 + $0x24] sm:$0xf]  ;;  %v1151_v53 = vld [vmem:[%s1529_s18 + $0x30] sm:$0xf]  ;;  %s1570_s14 = scalar_lea.vmem %s1630_s0, %s1134_s24  ;;  %s484_s19 = scalar_lea.vmem %s1635_s5, %s1134_s24 }
  0x2a   : > { %v1318_v52 = vld [vmem:[%s1633_s3 + $0x60] ss:$8 sps:$4 sm:$0xff]   ;;  %v1152_v54 = vld [vmem:[%s1529_s18 + $0x34] sm:$0xf]  ;;  %v519_v57 = vmax.bf16 %v1147_v47, %v510_v49  ;;  %v1323_v60 = vld [vmem:[%s1632_s2 + $0x70] ss:$8 sps:$4 sm:$0xff]  }
  0x2b   : > { %v1319_v55 = vld [vmem:[%s1632_s2 + $0x74] ss:$8 sps:$4 sm:$0xff]   ;;  %v520_v58 = vmax.bf16 %v1148_v51, %v511_v50  ;;  %v1155_v59 = vld [vmem:[%s1529_s18 + $0x40] sm:$0xf]  ;;  %v1324_v61 = vld [vmem:[%s1633_s3 + $0x70] ss:$8 sps:$4 sm:$0xff]  }
  0x2c   : > { %727 = vmatpush1.bf16.msra.mxu0 %v1299_v31  ;;  %904 = vmatpush1.bf16.msra.mxu1 %v1300_v32  ;;  %v1321_v56 = vld [vmem:[%s1633_s3 + $0x74] ss:$8 sps:$4 sm:$0xff]   ;;  %v1156_v62 = vld [vmem:[%s1529_s18 + $0x44] sm:$0xf]  ;;  %v1159_v63 = vld [vmem:[%s1529_s18 + $0x50] sm:$0xf]  ;;  %v528_v1 = vmax.bf16 %v1151_v53, %v519_v57 }
  0x2d   : > { %728 = vmatprep.subr.bf16.mxu0 %v1301_v33  ;;  %905 = vmatprep.subr.bf16.mxu1 %v1303_v34  ;;  %v1160_v0 = vld [vmem:[%s1529_s18 + $0x54] sm:$0xf]  ;;  %v529_v2 = vmax.bf16 %v1152_v54, %v520_v58  ;;  %v503_v3 = vld [vmem:[%s1529_s18 + $0x8] sm:$0xf]  ;;  %v504_v4 = vld [vmem:[%s1529_s18 + $0xc] sm:$0xf] }
  0x2e   : > { %v1145_v5 = vld [vmem:[%s1529_s18 + $0x18] sm:$0xf]  ;;  %v1146_v6 = vld [vmem:[%s1529_s18 + $0x1c] sm:$0xf]  ;;  %v1149_v8 = vld [vmem:[%s1529_s18 + $0x28] sm:$0xf]  ;;  %v537_v10 = vmax.bf16 %v1155_v59, %v528_v1 }
  0x2f   : > { %v512_v7 = vmax.bf16 %v1145_v5, %v503_v3  ;;  %v1150_v9 = vld [vmem:[%s1529_s18 + $0x2c] sm:$0xf]  ;;  %v538_v11 = vmax.bf16 %v1156_v62, %v529_v2  ;;  %v513_v12 = vmax.bf16 %v1146_v6, %v504_v4  ;;  %v1153_v13 = vld [vmem:[%s1529_s18 + $0x38] sm:$0xf]  ;;  %v1163_v14 = vld [vmem:[%s1529_s18 + $0x60] sm:$0xf]  ;;  %v630_v6 = vlaneseq }
  0x30   : > { %729 = vmatpush1.bf16.msra.mxu0 %v1305_v35  ;;  %906 = vmatpush1.bf16.msra.mxu1 %v1306_v36  ;;  %v1164_v15 = vld [vmem:[%s1529_s18 + $0x64] sm:$0xf]  ;;  %v1154_v17 = vld [vmem:[%s1529_s18 + $0x3c] sm:$0xf]  ;;  %v546_v19 = vmax.bf16 %v1159_v63, %v537_v10  ;;  %v1157_v23 = vld [vmem:[%s1529_s18 + $0x48] sm:$0xf] }
  0x31   : > { %730 = vmatprep.subr.bf16.mxu0 %v1307_v37  ;;  %907 = vmatprep.subr.bf16.mxu1 %v1309_v38  ;;  %v521_v16 = vmax.bf16 %v1149_v8, %v512_v7  ;;  %v547_v20 = vmax.bf16 %v1160_v0, %v538_v11  ;;  %v1233_v21 = vld [vmem:[%s1570_s14] sm:$0xff]   ;;  %v522_v22 = vmax.bf16 %v1150_v9, %v513_v12  ;;  %v1167_v24 = vld [vmem:[%s1529_s18 + $0x70] sm:$0xf]  ;;  %v1168_v25 = vld [vmem:[%s1529_s18 + $0x74] sm:$0xf]  ;;  %v631_v7 = vshrl.u32 %v630_v6, 7 }
  0x32   : > { %v1158_v27 = vld [vmem:[%s1529_s18 + $0x4c] sm:$0xf]  ;;  %v555_v28 = vmax.bf16 %v1163_v14, %v546_v19  ;;  %v1161_v31 = vld [vmem:[%s1529_s18 + $0x58] sm:$0xf]  ;;  %v1234_v32 = vunpack.c.l.bf16 %v1233_v21  ;;  %v1162_v34 = vld [vmem:[%s1529_s18 + $0x5c] sm:$0xf]  ;;  %v1235_v37 = vunpack.c.h.bf16 %v1233_v21 }
  0x33   : > { %v530_v26 = vmax.bf16 %v1153_v13, %v521_v16  ;;  %v556_v29 = vmax.bf16 %v1164_v15, %v547_v20  ;;  %v531_v30 = vmax.bf16 %v1154_v17, %v522_v22  ;;  %v1169_v45 = vld [vmem:[%s1529_s18 + $0x78] sm:$0xf]  ;;  %v1250_v46 = vld [vmem:[%s1570_s14 + $0x8] sm:$0xff]   ;;  %v632_v8 = vsub.s32 0, %v631_v7  ;;  %v628_v9 = vld [vmem:[%s1634_s4] sm:$0x3] }
  0x34   : > { %731 = vmatpush1.bf16.msra.mxu0 %v1311_v39  ;;  %908 = vmatpush1.bf16.msra.mxu1 %v1312_v40  ;;  %v564_v35 = vmax.bf16 %v1167_v24, %v555_v28  ;;  %v1165_v39 = vld [vmem:[%s1529_s18 + $0x68] sm:$0xf]  ;;  %v1238_v53 = vunpack.c.l.bf16 %v1250_v46  ;;  %v1239_v57 = vunpack.c.h.bf16 %v1250_v46  ;;  %v636_v10 = vsub.s32 1, %v631_v7  ;;  %s1218_s24 = sshll.u32 %s1642_s17, 3 }
  0x35   : > { %732 = vmatprep.subr.bf16.mxu0 %v1313_v41  ;;  %909 = vmatprep.subr.bf16.mxu1 %v1315_v42  ;;  %v539_v33 = vmax.bf16 %v1157_v23, %v530_v26  ;;  %v565_v36 = vmax.bf16 %v1168_v25, %v556_v29  ;;  %v540_v38 = vmax.bf16 %v1158_v27, %v531_v30  ;;  %v1166_v41 = vld [vmem:[%s1529_s18 + $0x6c] sm:$0xf]  ;;  %s1605_s23 = scalar_lea.vmem %s1637_s7, %s1218_s24  ;;  %s1610_s17 = scalar_lea.vmem %s1636_s6, %s1218_s24 }
  0x36   : > { %v576_v42 = vunpack.c.l.bf16 %v564_v35  ;;  %v633_v11 = vrot.slane %v628_v9, %v632_v8  ;;  %v637_v12 = vrot.slane %v628_v9, %v636_v10 }
  0x37   : > { %v548_v40 = vmax.bf16 %v1161_v31, %v539_v33  ;;  %v577_v43 = vunpack.c.l.bf16 %v565_v36  ;;  %v549_v44 = vmax.bf16 %v1162_v34, %v540_v38 }
  0x38   : > { %733 = vmatpush1.bf16.msra.mxu0 %v1317_v48  ;;  %910 = vmatpush1.bf16.msra.mxu1 %v1318_v52  ;;  %v1170_v48 = vld [vmem:[%s1529_s18 + $0x7c] sm:$0xf]  ;;  %v580_v49 = vadd.f32 %v1234_v32, %v576_v42 }
  0x39   : > { %734 = vmatprep.subr.bf16.mxu0 %v1319_v55  ;;  %911 = vmatprep.subr.bf16.mxu1 %v1321_v56  ;;  %v557_v47 = vmax.bf16 %v1165_v39, %v548_v40  ;;  %v581_v50 = vadd.f32 %v1235_v37, %v577_v43  ;;  %v558_v51 = vmax.bf16 %v1166_v41, %v549_v44 }
  0x3a   : > { %v584_v54 = vmul.f32 0.2, %v580_v49 }
  0x3b   : > { %v566_v52 = vmax.bf16 %v1169_v45, %v557_v47  ;;  %v585_v55 = vmul.f32 0.2, %v581_v50  ;;  %v567_v56 = vmax.bf16 %v1170_v48, %v558_v51 }
  0x3c   : > { %735 = vmatpush1.bf16.msra.mxu0 %v1323_v60  ;;  %912 = vmatpush1.bf16.msra.mxu1 %v1324_v61  ;;  %v588_v59 = vmax.f32 %v580_v49, %v584_v54 }
  0x3d   : > { %v578_v58 = vunpack.c.l.bf16 %v566_v52  ;;  %v589_v60 = vmax.f32 %v581_v50, %v585_v55  ;;  %v579_v61 = vunpack.c.l.bf16 %v567_v56 }
  0x3f   : > { %v582_v62 = vadd.f32 %v1238_v53, %v578_v58  ;;  %v592_v63 = vpack.c.bf16 %v589_v60, %v588_v59  ;;  %v583_v0 = vadd.f32 %v1239_v57, %v579_v61 }
  0x41   : > { %v586_v1 = vmul.f32 0.2, %v582_v62  ;;  %1244 = vst [vmem:[%s484_s19] sm:$0xff] %v592_v63   ;;  %753 = vmatmul.mubr.bf16.vlgmr.msra.gmra.mrb[0].mxu0 %v592_v63  ;;  %930 = vmatmul.mubr.bf16.vlgmr.msra.gmra.mrb[0].mxu1 %v592_v63  ;;  %v587_v2 = vmul.f32 0.2, %v583_v0 }
  0x42   : > { %762 = vmatprep.mubr.bf16.mxu0 %v1349_v18  ;;  %939 = vmatprep.mubr.bf16.mxu1 %v1349_v18 }
  0x43   : > { %v590_v3 = vmax.f32 %v582_v62, %v586_v1  ;;  %v591_v4 = vmax.f32 %v583_v0, %v587_v2 }
  0x45   : > { %v593_v5 = vpack.c.bf16 %v591_v4, %v590_v3 }
  0x47   : > { %1251 = vst [vmem:[%s484_s19 + $0x8] sm:$0xff] %v593_v5  }
  0x49   : > { %763 = vmatmul.mubr.bf16.gmra.mrb[4].mxu0 %v593_v5  ;;  %940 = vmatmul.mubr.bf16.gmra.mrb[4].mxu1 %v593_v5 }
 0x114   : > { %v754_v13 = vpop.f32.mrb[0].mxu0  ;;  %v931_v14 = vpop.f32.mrb[0].mxu1 }
 0x115   : > { %v755_v18 = vadd.f32 %v754_v13, %v633_v11  ;;  %v756_v15 = vpop.f32.mrb[1].mxu0  ;;  %v933_v16 = vpop.f32.mrb[1].mxu1 }
 0x116   : > { %v757_v17 = vadd.f32 %v756_v15, %v637_v12  ;;  %v1228_v19 = vpack.c.bf16 %v933_v16, %v931_v14  ;;  %v758_v20 = vpop.f32.mrb[2].mxu0  ;;  %v935_v21 = vpop.f32.mrb[2].mxu1 }
 0x117   : > { %v759_v22 = vadd.f32 %v758_v20, %v633_v11  ;;  %v760_v23 = vpop.f32.mrb[3].mxu0  ;;  %v937_v24 = vpop.f32.mrb[3].mxu1 }
 0x118   : > { %v1224_v25 = vpack.c.bf16 %v757_v17, %v755_v18  ;;  %974 = vst [vmem:[%s1605_s23] sm:$0xff] %v1228_v19  ;;  %v761_v26 = vadd.f32 %v760_v23, %v637_v12  ;;  %v1229_v27 = vpack.c.bf16 %v937_v24, %v935_v21 }
 0x11a   : > { %797 = vst [vmem:[%s1610_s17] sm:$0xff] %v1224_v25  ;;  %v1225_v28 = vpack.c.bf16 %v761_v26, %v759_v22  ;;  %975 = vst [vmem:[%s1605_s23 + $0x8] sm:$0xff] %v1229_v27 }
 0x11c   : > { %798 = vst [vmem:[%s1610_s17 + $0x8] sm:$0xff] %v1225_v28  ;;  %v764_v29 = vpop.f32.mrb[4].mxu0  ;;  %v941_v30 = vpop.f32.mrb[4].mxu1 }
 0x11d   : > { %v765_v31 = vadd.f32 %v764_v29, %v633_v11  ;;  %v766_v32 = vpop.f32.mrb[5].mxu0  ;;  %v943_v33 = vpop.f32.mrb[5].mxu1 }
 0x11e   : > { %v767_v34 = vadd.f32 %v766_v32, %v637_v12  ;;  %v1230_v35 = vpack.c.bf16 %v943_v33, %v941_v30  ;;  %v768_v36 = vpop.f32.mrb[6].mxu0  ;;  %v945_v37 = vpop.f32.mrb[6].mxu1 }
 0x11f   : > { %v769_v38 = vadd.f32 %v768_v36, %v633_v11  ;;  %v770_v39 = vpop.f32.mrb[7].mxu0  ;;  %v947_v40 = vpop.f32.mrb[7].mxu1 }
 0x120   : > { %v1226_v41 = vpack.c.bf16 %v767_v34, %v765_v31  ;;  %976 = vst [vmem:[%s1605_s23 + $0x10] sm:$0xff] %v1230_v35  ;;  %v771_v42 = vadd.f32 %v770_v39, %v637_v12  ;;  %v1231_v43 = vpack.c.bf16 %v947_v40, %v945_v37 }
 0x122   : > { %799 = vst [vmem:[%s1610_s17 + $0x10] sm:$0xff] %v1226_v41  ;;  %v1227_v44 = vpack.c.bf16 %v771_v42, %v769_v38  ;;  %977 = vst [vmem:[%s1605_s23 + $0x18] sm:$0xff] %v1231_v43 }
 0x124   : > { %800 = vst [vmem:[%s1610_s17 + $0x18] sm:$0xff] %v1227_v44 }
 0x125 PF: > { %p15_p9 = scmp.ge.s32.totalorder %s1407_s28, 4   ;;  %s1638_s24 = smov %s1343_s25 }
 0x126   : > { %s1639_s25 = smov %s1416_s8  ;;  %s1640_s26 = smov %s1407_s28 }
 0x127   :  { %17 = sbr.rel (!%p15_p9) target bundleno = 2 (0x2), region = 150 }

// kernel: edge_conv_model_forward.12
= control target key start
LH: loop header
LB: loop body
LE: loop exit
PB: predicated region body
PF: predicated region fallthrough
CT: control target
= control target key end

     0   :  { %s669_s9 = smov 0   ;;  %s671_s10 = smov 0   ;;  %s845_s0 = inlined_call_operand.vmem [shape: bf16[64,256], index: 0, kind: input, shape index: {}]   ;;  %s846_s1 = inlined_call_operand.vmem [shape: bf16[8,64,256], index: 1, kind: input, shape index: {}]   ;;  %s847_s2 = inlined_call_operand.vmem [shape: bf16[64,256], index: 2, kind: output, shape index: {}]  }
   0x1   :  { %s673_s11 = smov 0  }
   0x2 LB: > { %s548_s12 = sadd.s32 4294967295, %s652_s11   ;;  %s686_s13 = sadd.s32 1, %s652_s11   ;;  %s652_s11 = sphi %s673_s11, %s850_s11   ;;  %s648_s10 = sphi %s671_s10, %s849_s10   ;;  %s644_s9 = sphi %s669_s9, %s848_s9  }
   0x3   : > { %s42_s14 = ssub.s32 %s652_s11, %s686_s13  ;;  %s45_s15 = sadd.s32 1, %s648_s10 }
   0x4   : > { %p43_p0 = scmp.eq.s32.totalorder %s42_s14, 0  ;;  %p52_p1 = scmp.ne.s32.totalorder %s648_s10, %s644_s9 }
   0x5   : > { %p53_p2 = scmp.eq.s32.totalorder %s652_s11, 0  ;;  %p551_p4 = scmp.ge.s32.totalorder %s652_s11, 2 }
   0x6   : > { %s695_s16 = scalar_select %p43_p0, %s648_s10, %s45_s15  }
   0x7   : > { %p54_p3 = por %p53_p2, %p52_p1  ;;  %104 = sbr.rel (%p551_p4) target bundleno = 34 (0x22), region = 16 }
   0xe   : > { %117 = sbr.rel (!%p54_p3) target bundleno = 34 (0x22), region = 24  ;;  %s119_s17 = sand.u32 (%p54_p3), 1, %s648_s10  }
   0xf   : > { %s599_s18 = sshll.u32 (%p54_p3), %s652_s11, 5  ;;  %s552_s19 = sshll.u32 (%p54_p3), %s119_s17, 8 }
  0x10   : > { %s703_s22 = scalar_lea.vmem (%p54_p3), %s846_s1, %s599_s18  ;;  %s708_s23 = scalar_lea.vmem (%p54_p3), [#allocation2], %s552_s19 }
  0x11   : > { %v215_v0 = vld [vmem:[%s703_s22] sm:$0xff] (%p54_p3)  ;;  %v217_v1 = vld [vmem:[%s703_s22 + $0x8] sm:$0xff] (%p54_p3)  ;;  %v219_v2 = vld [vmem:[%s703_s22 + $0x10] sm:$0xff] (%p54_p3) }
  0x12   : > { %216 = vst [vmem:[%s708_s23] sm:$0xff] (%p54_p3), %v215_v0  ;;  %218 = vst [vmem:[%s708_s23 + $0x8] sm:$0xff] (%p54_p3), %v217_v1  ;;  %v221_v3 = vld [vmem:[%s703_s22 + $0x18] sm:$0xff] (%p54_p3)  ;;  %v223_v4 = vld [vmem:[%s703_s22 + $0x40] sm:$0xff] (%p54_p3) }
  0x13   : > { %220 = vst [vmem:[%s708_s23 + $0x10] sm:$0xff] (%p54_p3), %v219_v2  ;;  %v225_v5 = vld [vmem:[%s703_s22 + $0x48] sm:$0xff] (%p54_p3)  ;;  %222 = vst [vmem:[%s708_s23 + $0x18] sm:$0xff] (%p54_p3), %v221_v3  ;;  %v227_v6 = vld [vmem:[%s703_s22 + $0x50] sm:$0xff] (%p54_p3) }
  0x14   : > { %224 = vst [vmem:[%s708_s23 + $0x20] sm:$0xff] (%p54_p3), %v223_v4  ;;  %226 = vst [vmem:[%s708_s23 + $0x28] sm:$0xff] (%p54_p3), %v225_v5  ;;  %v229_v7 = vld [vmem:[%s703_s22 + $0x58] sm:$0xff] (%p54_p3)  ;;  %v231_v8 = vld [vmem:[%s703_s22 + $0x80] sm:$0xff] (%p54_p3) }
  0x15   : > { %228 = vst [vmem:[%s708_s23 + $0x30] sm:$0xff] %v227_v6  ;;  %230 = vst [vmem:[%s708_s23 + $0x38] sm:$0xff] %v229_v7  ;;  %v233_v9 = vld [vmem:[%s703_s22 + $0x88] sm:$0xff]  ;;  %v235_v10 = vld [vmem:[%s703_s22 + $0x90] sm:$0xff] }
  0x16   : > { %232 = vst [vmem:[%s708_s23 + $0x40] sm:$0xff] %v231_v8  ;;  %v237_v11 = vld [vmem:[%s703_s22 + $0x98] sm:$0xff]  ;;  %234 = vst [vmem:[%s708_s23 + $0x48] sm:$0xff] %v233_v9  ;;  %v239_v12 = vld [vmem:[%s703_s22 + $0xc0] sm:$0xff] }
  0x17   : > { %236 = vst [vmem:[%s708_s23 + $0x50] sm:$0xff] %v235_v10  ;;  %238 = vst [vmem:[%s708_s23 + $0x58] sm:$0xff] %v237_v11  ;;  %v241_v13 = vld [vmem:[%s703_s22 + $0xc8] sm:$0xff]  ;;  %v243_v14 = vld [vmem:[%s703_s22 + $0xd0] sm:$0xff] }
  0x18   : > { %240 = vst [vmem:[%s708_s23 + $0x60] sm:$0xff] %v239_v12  ;;  %242 = vst [vmem:[%s708_s23 + $0x68] sm:$0xff] %v241_v13  ;;  %v245_v15 = vld [vmem:[%s703_s22 + $0xd8] sm:$0xff]  ;;  %v247_v16 = vld [vmem:[%s703_s22 + $0x100] sm:$0xff] }
  0x19   : > { %244 = vst [vmem:[%s708_s23 + $0x70] sm:$0xff] %v243_v14  ;;  %v249_v17 = vld [vmem:[%s703_s22 + $0x108] sm:$0xff]  ;;  %246 = vst [vmem:[%s708_s23 + $0x78] sm:$0xff] %v245_v15  ;;  %v251_v18 = vld [vmem:[%s703_s22 + $0x110] sm:$0xff] }
  0x1a   : > { %248 = vst [vmem:[%s708_s23 + $0x80] sm:$0xff] %v247_v16  ;;  %250 = vst [vmem:[%s708_s23 + $0x88] sm:$0xff] %v249_v17  ;;  %v253_v19 = vld [vmem:[%s703_s22 + $0x118] sm:$0xff]  ;;  %v255_v20 = vld [vmem:[%s703_s22 + $0x140] sm:$0xff] }
  0x1b   : > { %252 = vst [vmem:[%s708_s23 + $0x90] sm:$0xff] %v251_v18  ;;  %254 = vst [vmem:[%s708_s23 + $0x98] sm:$0xff] %v253_v19  ;;  %v257_v21 = vld [vmem:[%s703_s22 + $0x148] sm:$0xff]  ;;  %v259_v22 = vld [vmem:[%s703_s22 + $0x150] sm:$0xff] }
  0x1c   : > { %256 = vst [vmem:[%s708_s23 + $0xa0] sm:$0xff] %v255_v20  ;;  %v261_v23 = vld [vmem:[%s703_s22 + $0x158] sm:$0xff]  ;;  %258 = vst [vmem:[%s708_s23 + $0xa8] sm:$0xff] %v257_v21  ;;  %v263_v24 = vld [vmem:[%s703_s22 + $0x180] sm:$0xff] }
  0x1d   : > { %260 = vst [vmem:[%s708_s23 + $0xb0] sm:$0xff] %v259_v22  ;;  %262 = vst [vmem:[%s708_s23 + $0xb8] sm:$0xff] %v261_v23  ;;  %v265_v25 = vld [vmem:[%s703_s22 + $0x188] sm:$0xff]  ;;  %v267_v26 = vld [vmem:[%s703_s22 + $0x190] sm:$0xff] }
  0x1e   : > { %264 = vst [vmem:[%s708_s23 + $0xc0] sm:$0xff] %v263_v24  ;;  %266 = vst [vmem:[%s708_s23 + $0xc8] sm:$0xff] %v265_v25  ;;  %v269_v27 = vld [vmem:[%s703_s22 + $0x198] sm:$0xff]  ;;  %v271_v28 = vld [vmem:[%s703_s22 + $0x1c0] sm:$0xff] }
  0x1f   : > { %268 = vst [vmem:[%s708_s23 + $0xd0] sm:$0xff] %v267_v26  ;;  %v273_v29 = vld [vmem:[%s703_s22 + $0x1c8] sm:$0xff]  ;;  %270 = vst [vmem:[%s708_s23 + $0xd8] sm:$0xff] %v269_v27  ;;  %v275_v30 = vld [vmem:[%s703_s22 + $0x1d0] sm:$0xff] }
  0x20   : > { %272 = vst [vmem:[%s708_s23 + $0xe0] sm:$0xff] %v271_v28  ;;  %274 = vst [vmem:[%s708_s23 + $0xe8] sm:$0xff] %v273_v29  ;;  %v277_v31 = vld [vmem:[%s703_s22 + $0x1d8] sm:$0xff] }
  0x21   : > { %276 = vst [vmem:[%s708_s23 + $0xf0] sm:$0xff] %v275_v30  ;;  %278 = vst [vmem:[%s708_s23 + $0xf8] sm:$0xff] %v277_v31 }
  0x22 PF: > { %p556_p5 = scmp.ge.s32.totalorder %s652_s11, 1  ;;  %p283_p6 = scmp.lt.s32.totalorder %s652_s11, 3 }
  0x24   : > { %p284_p7 = pnand %p556_p5, %p283_p6 }
  0x25   : > { %s290_s24 = sand.u32 (!%p284_p7), 1, %s644_s9   ;;  %s558_s25 = sshll.u32 (!%p284_p7), %s548_s12, 2 }
  0x26   : > { %287 = sbr.rel (%p284_p7) target bundleno = 72 (0x48), region = 62  ;;  %s557_s26 = sshll.u32 (!%p284_p7), %s290_s24, 8 }
  0x27   : > { %p319_p8 = scmp.lt.s32.totalorder (!%p284_p7), %s558_s25, 7  ;;  %s778_s27 = scalar_lea.vmem (!%p284_p7), [#allocation2], %s557_s26 }
  0x28   : > { %v333_v32 = vld [vmem:[%s778_s27] sm:$0xff] (!%p284_p7)  ;;  %v334_v37 = vld [vmem:[%s778_s27 + $0x8] sm:$0xff] (!%p284_p7)  ;;  %v335_v47 = vld [vmem:[%s778_s27 + $0x10] sm:$0xff] (!%p284_p7) }
  0x29   : > { %v564_v33 = vld [vmem:[%s778_s27 + $0x20] sm:$0xff] (!%p284_p7)  ;;  %v565_v39 = vld [vmem:[%s778_s27 + $0x28] sm:$0xff] (!%p284_p7)  ;;  %v566_v50 = vld [vmem:[%s778_s27 + $0x30] sm:$0xff] (!%p284_p7) }
  0x2a   : > { %v568_v34 = vld [vmem:[%s778_s27 + $0x40] sm:$0xff] (!%p284_p7)  ;;  %v342_v35 = vmax.bf16 (!%p284_p7), %v564_v33, %v333_v32  ;;  %v569_v40 = vld [vmem:[%s778_s27 + $0x48] sm:$0xff] (!%p284_p7)  ;;  %v343_v42 = vmax.bf16 (!%p284_p7), %v565_v39, %v334_v37  ;;  %v570_v51 = vld [vmem:[%s778_s27 + $0x50] sm:$0xff] (!%p284_p7)  ;;  %v344_v55 = vmax.bf16 (!%p284_p7), %v566_v50, %v335_v47 }
  0x2b   : > { %v572_v36 = vld [vmem:[%s778_s27 + $0x60] sm:$0xff] (!%p284_p7)  ;;  %v573_v44 = vld [vmem:[%s778_s27 + $0x68] sm:$0xff] (!%p284_p7)  ;;  %v574_v57 = vld [vmem:[%s778_s27 + $0x70] sm:$0xff] (!%p284_p7) }
  0x2c   : > { %v351_v38 = vmax.bf16 (!%p284_p7), %v568_v34, %v342_v35  ;;  %v576_v41 = vld [vmem:[%s778_s27 + $0x80] sm:$0xff] (!%p284_p7)  ;;  %v352_v46 = vmax.bf16 (!%p284_p7), %v569_v40, %v343_v42  ;;  %v577_v49 = vld [vmem:[%s778_s27 + $0x88] sm:$0xff] (!%p284_p7)  ;;  %v336_v58 = vld [vmem:[%s778_s27 + $0x18] sm:$0xff] (!%p284_p7)  ;;  %v353_v63 = vmax.bf16 (!%p284_p7), %v570_v51, %v344_v55 }
  0x2d   : > { %s852_s25 = smov (!%p319_p8, %s558_s25), 7  ;;  %v580_v45 = vld [vmem:[%s778_s27 + $0xa0] sm:$0xff]  ;;  %v581_v54 = vld [vmem:[%s778_s27 + $0xa8] sm:$0xff]  ;;  %v567_v59 = vld [vmem:[%s778_s27 + $0x38] sm:$0xff] }
  0x2e   : > { %s600_s28 = sshll.u32 %s852_s25, 3  ;;  %v360_v43 = vmax.bf16 %v572_v36, %v351_v38  ;;  %v584_v52 = vld [vmem:[%s778_s27 + $0xc0] sm:$0xff]  ;;  %v361_v53 = vmax.bf16 %v573_v44, %v352_v46  ;;  %v345_v0 = vmax.bf16 %v567_v59, %v336_v58  ;;  %v571_v1 = vld [vmem:[%s778_s27 + $0x58] sm:$0xff]  ;;  %v585_v3 = vld [vmem:[%s778_s27 + $0xc8] sm:$0xff]  ;;  %v362_v8 = vmax.bf16 %v574_v57, %v353_v63 }
  0x2f   : > { %s797_s3 = scalar_lea.vmem %s845_s0, %s600_s28  ;;  %v588_v60 = vld [vmem:[%s778_s27 + $0xe0] sm:$0xff]  ;;  %v578_v4 = vld [vmem:[%s778_s27 + $0x90] sm:$0xff]  ;;  %v575_v5 = vld [vmem:[%s778_s27 + $0x78] sm:$0xff]  ;;  %s829_s6 = scalar_lea.vmem %s847_s2, %s600_s28 }
  0x30   : > { %v369_v48 = vmax.bf16 %v576_v41, %v360_v43  ;;  %v400_v61 = vld [vmem:[%s797_s3] sm:$0xff]  ;;  %v370_v62 = vmax.bf16 %v577_v49, %v361_v53  ;;  %v401_v6 = vld [vmem:[%s797_s3 + $0x8] sm:$0xff]  ;;  %v354_v9 = vmax.bf16 %v571_v1, %v345_v0  ;;  %v582_v14 = vld [vmem:[%s778_s27 + $0xb0] sm:$0xff]  ;;  %v371_v17 = vmax.bf16 %v578_v4, %v362_v8 }
  0x31   : > { %v404_v11 = vunpack.c.l.bf16 %v400_v61  ;;  %v405_v12 = vunpack.c.h.bf16 %v400_v61  ;;  %v589_v13 = vld [vmem:[%s778_s27 + $0xe8] sm:$0xff]  ;;  %v579_v15 = vld [vmem:[%s778_s27 + $0x98] sm:$0xff]  ;;  %v406_v21 = vunpack.c.l.bf16 %v401_v6  ;;  %v586_v22 = vld [vmem:[%s778_s27 + $0xd0] sm:$0xff]  ;;  %v407_v26 = vunpack.c.h.bf16 %v401_v6 }
  0x32   : > { %v378_v56 = vmax.bf16 %v580_v45, %v369_v48  ;;  %v379_v7 = vmax.bf16 %v581_v54, %v370_v62  ;;  %v363_v18 = vmax.bf16 %v575_v5, %v354_v9  ;;  %v583_v23 = vld [vmem:[%s778_s27 + $0xb8] sm:$0xff]  ;;  %v402_v24 = vld [vmem:[%s797_s3 + $0x10] sm:$0xff]  ;;  %v380_v27 = vmax.bf16 %v582_v14, %v371_v17 }
  0x33   : > { %v590_v31 = vld [vmem:[%s778_s27 + $0xf0] sm:$0xff]  ;;  %v587_v32 = vld [vmem:[%s778_s27 + $0xd8] sm:$0xff]  ;;  %v408_v39 = vunpack.c.l.bf16 %v402_v24  ;;  %v409_v40 = vunpack.c.h.bf16 %v402_v24 }
  0x34   : > { %v387_v2 = vmax.bf16 %v584_v52, %v378_v56  ;;  %v388_v16 = vmax.bf16 %v585_v3, %v379_v7  ;;  %v372_v28 = vmax.bf16 %v579_v15, %v363_v18  ;;  %v389_v35 = vmax.bf16 %v586_v22, %v380_v27  ;;  %v403_v41 = vld [vmem:[%s797_s3 + $0x18] sm:$0xff] }
  0x35   : > { %v591_v46 = vld [vmem:[%s778_s27 + $0xf8] sm:$0xff]  ;;  %v410_v55 = vunpack.c.l.bf16 %v403_v41  ;;  %v411_v56 = vunpack.c.h.bf16 %v403_v41 }
  0x36   : > { %v396_v10 = vmax.bf16 %v588_v60, %v387_v2  ;;  %v397_v25 = vmax.bf16 %v589_v13, %v388_v16  ;;  %v381_v36 = vmax.bf16 %v583_v23, %v372_v28  ;;  %v398_v44 = vmax.bf16 %v590_v31, %v389_v35 }
  0x38   : > { %v412_v19 = vunpack.c.l.bf16 %v396_v10  ;;  %v413_v20 = vunpack.c.h.bf16 %v396_v10  ;;  %v414_v33 = vunpack.c.l.bf16 %v397_v25  ;;  %v415_v34 = vunpack.c.h.bf16 %v397_v25 }
  0x39   : > { %v390_v45 = vmax.bf16 %v587_v32, %v381_v36  ;;  %v416_v51 = vunpack.c.l.bf16 %v398_v44  ;;  %v417_v52 = vunpack.c.h.bf16 %v398_v44 }
  0x3a   : > { %v420_v29 = vadd.f32 %v412_v19, %v404_v11  ;;  %v421_v30 = vadd.f32 %v413_v20, %v405_v12  ;;  %v422_v42 = vadd.f32 %v414_v33, %v406_v21  ;;  %v423_v43 = vadd.f32 %v415_v34, %v407_v26 }
  0x3b   : > { %v399_v54 = vmax.bf16 %v591_v46, %v390_v45  ;;  %v424_v59 = vadd.f32 %v416_v51, %v408_v39  ;;  %v425_v60 = vadd.f32 %v417_v52, %v409_v40 }
  0x3c   : > { %v428_v37 = vmul.f32 0.2, %v420_v29  ;;  %v429_v38 = vmul.f32 0.2, %v421_v30  ;;  %v430_v49 = vmul.f32 0.2, %v422_v42 }
  0x3d   : > { %v431_v50 = vmul.f32 0.2, %v423_v43  ;;  %v418_v61 = vunpack.c.l.bf16 %v399_v54  ;;  %v419_v62 = vunpack.c.h.bf16 %v399_v54  ;;  %v432_v0 = vmul.f32 0.2, %v424_v59 }
  0x3e   : > { %v436_v47 = vmax.f32 %v420_v29, %v428_v37  ;;  %v437_v48 = vmax.f32 %v421_v30, %v429_v38  ;;  %v438_v57 = vmax.f32 %v422_v42, %v430_v49  ;;  %v433_v1 = vmul.f32 0.2, %v425_v60 }
  0x3f   : > { %v439_v58 = vmax.f32 %v423_v43, %v431_v50  ;;  %v426_v2 = vadd.f32 %v418_v61, %v410_v55  ;;  %v427_v3 = vadd.f32 %v419_v62, %v411_v56  ;;  %v440_v4 = vmax.f32 %v424_v59, %v432_v0 }
  0x40   : > { %v602_v53 = vpack.c.bf16 %v437_v48, %v436_v47  ;;  %v441_v5 = vmax.f32 %v425_v60, %v433_v1 }
  0x41   : > { %v603_v63 = vpack.c.bf16 %v439_v58, %v438_v57  ;;  %v434_v6 = vmul.f32 0.2, %v426_v2  ;;  %v435_v7 = vmul.f32 0.2, %v427_v3 }
  0x42   : > { %468 = vst [vmem:[%s829_s6] sm:$0xff] %v602_v53  ;;  %v604_v8 = vpack.c.bf16 %v441_v5, %v440_v4 }
  0x43   : > { %469 = vst [vmem:[%s829_s6 + $0x8] sm:$0xff] %v603_v63  ;;  %v442_v9 = vmax.f32 %v426_v2, %v434_v6  ;;  %v443_v10 = vmax.f32 %v427_v3, %v435_v7 }
  0x44   : > { %470 = vst [vmem:[%s829_s6 + $0x10] sm:$0xff] %v604_v8 }
  0x45   : > { %v605_v11 = vpack.c.bf16 %v443_v10, %v442_v9 }
  0x47   : > { %471 = vst [vmem:[%s829_s6 + $0x18] sm:$0xff] %v605_v11 }
  0x48 PF: > { %p9_p9 = scmp.ge.s32.totalorder %s686_s13, 4   ;;  %s848_s9 = smov %s648_s10 }
  0x49   : > { %s849_s10 = smov %s695_s16  ;;  %s850_s11 = smov %s686_s13 }
  0x4a   :  { %11 = sbr.rel (!%p9_p9) target bundleno = 2 (0x2), region = 111 }

// kernel: edge_conv_model_forward.14
= control target key start
LH: loop header
LB: loop body
LE: loop exit
PB: predicated region body
PF: predicated region fallthrough
CT: control target
= control target key end

     0   :  { %s644_s9 = smov 0   ;;  %s646_s10 = smov 0   ;;  %s758_s0 = inlined_call_operand.vmem [shape: bf16[64,64], index: 0, kind: input, shape index: {}]   ;;  %s759_s1 = inlined_call_operand.vmem [shape: bf16[8,64,64], index: 1, kind: input, shape index: {}]   ;;  %s760_s2 = inlined_call_operand.vmem [shape: bf16[64,64], index: 2, kind: output, shape index: {}]  }
   0x1   :  { %s648_s11 = smov 0  }
   0x2 LB: > { %s520_s12 = sadd.s32 4294967295, %s627_s11   ;;  %s661_s13 = sadd.s32 1, %s627_s11   ;;  %s627_s11 = sphi %s648_s11, %s763_s11   ;;  %s623_s10 = sphi %s646_s10, %s762_s10   ;;  %s619_s9 = sphi %s644_s9, %s761_s9  }
   0x3   : > { %s42_s14 = ssub.s32 %s627_s11, %s661_s13  ;;  %s45_s15 = sadd.s32 1, %s623_s10 }
   0x4   : > { %p43_p0 = scmp.eq.s32.totalorder %s42_s14, 0  ;;  %p52_p1 = scmp.ne.s32.totalorder %s623_s10, %s619_s9 }
   0x5   : > { %p53_p2 = scmp.eq.s32.totalorder %s627_s11, 0  ;;  %p523_p4 = scmp.ge.s32.totalorder %s627_s11, 2 }
   0x6   : > { %s670_s16 = scalar_select %p43_p0, %s623_s10, %s45_s15  }
   0x7   : > { %p54_p3 = por %p53_p2, %p52_p1  ;;  %104 = sbr.rel (%p523_p4) target bundleno = 26 (0x1a), region = 16 }
   0xe   : > { %116 = sbr.rel (!%p54_p3) target bundleno = 26 (0x1a), region = 24  ;;  %s118_s17 = sand.u32 (%p54_p3), 1, %s623_s10  }
   0xf   : > { %s567_s18 = sshll.u32 (%p54_p3), %s627_s11, 4  ;;  %s524_s19 = sshll.u32 (%p54_p3), %s118_s17, 7 }
  0x10   : > { %s678_s22 = scalar_lea.vmem (%p54_p3), %s759_s1, %s567_s18  ;;  %s120_s23 = scalar_lea.vmem (%p54_p3), [#allocation2], %s524_s19 }
  0x11   : > { %v139_v0 = vld [vmem:[%s678_s22] sm:$0xff] (%p54_p3)   ;;  %v143_v1 = vld [vmem:[%s678_s22 + $0x8] sm:$0xff] (%p54_p3)  }
  0x12   : > { %v147_v2 = vld [vmem:[%s678_s22 + $0x20] sm:$0xff] (%p54_p3)   ;;  %140 = vst [vmem:[%s120_s23] sm:$0xff] (%p54_p3), %v139_v0   ;;  %144 = vst [vmem:[%s120_s23 + $0x8] sm:$0xff] (%p54_p3), %v143_v1   ;;  %v151_v3 = vld [vmem:[%s678_s22 + $0x28] sm:$0xff] (%p54_p3)  }
  0x13   : > { %148 = vst [vmem:[%s120_s23 + $0x10] sm:$0xff] (%p54_p3), %v147_v2   ;;  %v155_v4 = vld [vmem:[%s678_s22 + $0x40] sm:$0xff] (%p54_p3)   ;;  %v159_v5 = vld [vmem:[%s678_s22 + $0x48] sm:$0xff] (%p54_p3)   ;;  %152 = vst [vmem:[%s120_s23 + $0x18] sm:$0xff] (%p54_p3), %v151_v3  }
  0x14   : > { %156 = vst [vmem:[%s120_s23 + $0x20] sm:$0xff] (%p54_p3), %v155_v4   ;;  %160 = vst [vmem:[%s120_s23 + $0x28] sm:$0xff] (%p54_p3), %v159_v5   ;;  %v163_v6 = vld [vmem:[%s678_s22 + $0x60] sm:$0xff] (%p54_p3)   ;;  %v167_v7 = vld [vmem:[%s678_s22 + $0x68] sm:$0xff] (%p54_p3)  }
  0x15   : > { %v171_v8 = vld [vmem:[%s678_s22 + $0x80] sm:$0xff]   ;;  %164 = vst [vmem:[%s120_s23 + $0x30] sm:$0xff] %v163_v6   ;;  %168 = vst [vmem:[%s120_s23 + $0x38] sm:$0xff] %v167_v7   ;;  %v175_v9 = vld [vmem:[%s678_s22 + $0x88] sm:$0xff]  }
  0x16   : > { %172 = vst [vmem:[%s120_s23 + $0x40] sm:$0xff] %v171_v8   ;;  %v179_v10 = vld [vmem:[%s678_s22 + $0xa0] sm:$0xff]   ;;  %v183_v11 = vld [vmem:[%s678_s22 + $0xa8] sm:$0xff]   ;;  %176 = vst [vmem:[%s120_s23 + $0x48] sm:$0xff] %v175_v9  }
  0x17   : > { %180 = vst [vmem:[%s120_s23 + $0x50] sm:$0xff] %v179_v10   ;;  %184 = vst [vmem:[%s120_s23 + $0x58] sm:$0xff] %v183_v11   ;;  %v187_v12 = vld [vmem:[%s678_s22 + $0xc0] sm:$0xff]   ;;  %v191_v13 = vld [vmem:[%s678_s22 + $0xc8] sm:$0xff]  }
  0x18   : > { %v195_v14 = vld [vmem:[%s678_s22 + $0xe0] sm:$0xff]   ;;  %188 = vst [vmem:[%s120_s23 + $0x60] sm:$0xff] %v187_v12   ;;  %192 = vst [vmem:[%s120_s23 + $0x68] sm:$0xff] %v191_v13   ;;  %v199_v15 = vld [vmem:[%s678_s22 + $0xe8] sm:$0xff]  }
  0x19   : > { %196 = vst [vmem:[%s120_s23 + $0x70] sm:$0xff] %v195_v14   ;;  %200 = vst [vmem:[%s120_s23 + $0x78] sm:$0xff] %v199_v15  }
  0x1a PF: > { %p527_p5 = scmp.ge.s32.totalorder %s627_s11, 1  ;;  %p288_p6 = scmp.lt.s32.totalorder %s627_s11, 3 }
  0x1c   : > { %p289_p7 = pnand %p527_p5, %p288_p6 }
  0x1d   : > { %s295_s24 = sand.u32 (!%p289_p7), 1, %s619_s9   ;;  %s529_s25 = sshll.u32 (!%p289_p7), %s520_s12, 2  ;;  %vm441_vm0 = vcmask (!%p289_p7), 519168  }
  0x1e   : > { %292 = sbr.rel (%p289_p7) target bundleno = 60 (0x3c), region = 65  ;;  %s528_s26 = sshll.u32 (!%p289_p7), %s295_s24, 7 }
  0x1f   : > { %p322_p8 = scmp.lt.s32.totalorder (!%p289_p7), %s529_s25, 7  ;;  %s703_s27 = scalar_lea.vmem (!%p289_p7), [#allocation2], %s528_s26 }
  0x20   : > { %v334_v16 = vld [vmem:[%s703_s27] sm:$0xf] (!%p289_p7)  ;;  %v335_v17 = vld [vmem:[%s703_s27 + $0x4] sm:$0xf] (!%p289_p7)  ;;  %v336_v18 = vld [vmem:[%s703_s27 + $0x8] sm:$0xf] (!%p289_p7) }
  0x21   : > { %v337_v19 = vld [vmem:[%s703_s27 + $0xc] sm:$0xf] (!%p289_p7)  ;;  %v533_v20 = vld [vmem:[%s703_s27 + $0x10] sm:$0xf] (!%p289_p7)  ;;  %v534_v21 = vld [vmem:[%s703_s27 + $0x14] sm:$0xf] (!%p289_p7) }
  0x22   : > { %v535_v22 = vld [vmem:[%s703_s27 + $0x18] sm:$0xf] (!%p289_p7)  ;;  %v343_v23 = vmax.bf16 (!%p289_p7), %v533_v20, %v334_v16  ;;  %v536_v24 = vld [vmem:[%s703_s27 + $0x1c] sm:$0xf] (!%p289_p7)  ;;  %v344_v25 = vmax.bf16 (!%p289_p7), %v534_v21, %v335_v17  ;;  %v537_v27 = vld [vmem:[%s703_s27 + $0x20] sm:$0xf] (!%p289_p7) }
  0x23   : > { %v345_v26 = vmax.bf16 (!%p289_p7), %v535_v22, %v336_v18  ;;  %v538_v28 = vld [vmem:[%s703_s27 + $0x24] sm:$0xf] (!%p289_p7)  ;;  %v346_v29 = vmax.bf16 (!%p289_p7), %v536_v24, %v337_v19  ;;  %v539_v30 = vld [vmem:[%s703_s27 + $0x28] sm:$0xf] (!%p289_p7)  ;;  %v540_v31 = vld [vmem:[%s703_s27 + $0x2c] sm:$0xf] (!%p289_p7) }
  0x24   : > { %v352_v32 = vmax.bf16 (!%p289_p7), %v537_v27, %v343_v23  ;;  %v541_v33 = vld [vmem:[%s703_s27 + $0x30] sm:$0xf] (!%p289_p7)  ;;  %v353_v34 = vmax.bf16 (!%p289_p7), %v538_v28, %v344_v25  ;;  %v542_v36 = vld [vmem:[%s703_s27 + $0x34] sm:$0xf] (!%p289_p7)  ;;  %v543_v37 = vld [vmem:[%s703_s27 + $0x38] sm:$0xf] (!%p289_p7) }
  0x25   : > { %s765_s25 = smov (!%p322_p8, %s529_s25), 7  ;;  %v354_v35 = vmax.bf16 %v539_v30, %v345_v26  ;;  %v544_v38 = vld [vmem:[%s703_s27 + $0x3c] sm:$0xf]  ;;  %v355_v39 = vmax.bf16 %v540_v31, %v346_v29  ;;  %v545_v41 = vld [vmem:[%s703_s27 + $0x40] sm:$0xf] }
  0x26   : > { %s530_s28 = sshll.u32 %s765_s25, 2  ;;  %v361_v40 = vmax.bf16 %v541_v33, %v352_v32  ;;  %v546_v42 = vld [vmem:[%s703_s27 + $0x44] sm:$0xf]  ;;  %v547_v43 = vld [vmem:[%s703_s27 + $0x48] sm:$0xf]  ;;  %v362_v44 = vmax.bf16 %v542_v36, %v353_v34 }
  0x27   : > { %v363_v45 = vmax.bf16 %v543_v37, %v354_v35  ;;  %v548_v46 = vld [vmem:[%s703_s27 + $0x4c] sm:$0xf]  ;;  %v549_v47 = vld [vmem:[%s703_s27 + $0x50] sm:$0xf]  ;;  %s325_s3 = scalar_lea.vmem %s758_s0, %s530_s28  ;;  %v364_v48 = vmax.bf16 %v544_v38, %v355_v39  ;;  %v550_v50 = vld [vmem:[%s703_s27 + $0x54] sm:$0xf]  ;;  %s332_s6 = scalar_lea.vmem %s760_s2, %s530_s28 }
  0x28   : > { %v370_v49 = vmax.bf16 %v545_v41, %v361_v40  ;;  %v551_v51 = vld [vmem:[%s703_s27 + $0x58] sm:$0xf]  ;;  %v371_v52 = vmax.bf16 %v546_v42, %v362_v44  ;;  %v552_v54 = vld [vmem:[%s703_s27 + $0x5c] sm:$0xf]  ;;  %v553_v55 = vld [vmem:[%s703_s27 + $0x60] sm:$0xf] }
  0x29   : > { %v372_v53 = vmax.bf16 %v547_v43, %v363_v45  ;;  %v373_v56 = vmax.bf16 %v548_v46, %v364_v48  ;;  %v554_v58 = vld [vmem:[%s703_s27 + $0x64] sm:$0xf]  ;;  %v555_v59 = vld [vmem:[%s703_s27 + $0x68] sm:$0xf]  ;;  %v556_v62 = vld [vmem:[%s703_s27 + $0x6c] sm:$0xf] }
  0x2a   : > { %v379_v57 = vmax.bf16 %v549_v47, %v370_v49  ;;  %v380_v60 = vmax.bf16 %v550_v50, %v371_v52  ;;  %v557_v63 = vld [vmem:[%s703_s27 + $0x70] sm:$0xf]  ;;  %v573_v0 = vld [vmem:[%s325_s3] sm:$0xff]   ;;  %v558_v3 = vld [vmem:[%s703_s27 + $0x74] sm:$0xf] }
  0x2b   : > { %v381_v61 = vmax.bf16 %v551_v51, %v372_v53  ;;  %v382_v1 = vmax.bf16 %v552_v54, %v373_v56  ;;  %v559_v4 = vld [vmem:[%s703_s27 + $0x78] sm:$0xf]  ;;  %v580_v5 = vld [vmem:[%s325_s3 + $0x8] sm:$0xff]   ;;  %v560_v8 = vld [vmem:[%s703_s27 + $0x7c] sm:$0xf]  ;;  %v574_v11 = vunpack.c.l.bf16 %v573_v0  ;;  %v575_v14 = vunpack.c.h.bf16 %v573_v0 }
  0x2c   : > { %v388_v2 = vmax.bf16 %v553_v55, %v379_v57  ;;  %v389_v6 = vmax.bf16 %v554_v58, %v380_v60  ;;  %v578_v15 = vunpack.c.l.bf16 %v580_v5  ;;  %v579_v17 = vunpack.c.h.bf16 %v580_v5 }
  0x2d   : > { %v390_v7 = vmax.bf16 %v555_v59, %v381_v61  ;;  %v391_v9 = vmax.bf16 %v556_v62, %v382_v1 }
  0x2e   : > { %v397_v10 = vmax.bf16 %v557_v63, %v388_v2  ;;  %v398_v12 = vmax.bf16 %v558_v3, %v389_v6 }
  0x2f   : > { %v399_v13 = vmax.bf16 %v559_v4, %v390_v7  ;;  %v400_v16 = vmax.bf16 %v560_v8, %v391_v9 }
  0x30   : > { %v409_v18 = vunpack.c.l.bf16 %v397_v10  ;;  %v410_v19 = vunpack.c.l.bf16 %v398_v12 }
  0x31   : > { %v411_v20 = vunpack.c.l.bf16 %v399_v13  ;;  %v412_v21 = vunpack.c.l.bf16 %v400_v16 }
  0x32   : > { %v413_v22 = vadd.f32 %v574_v11, %v409_v18  ;;  %v414_v23 = vadd.f32 %v575_v14, %v410_v19 }
  0x33   : > { %v415_v24 = vadd.f32 %v578_v15, %v411_v20  ;;  %v416_v25 = vadd.f32 %v579_v17, %v412_v21 }
  0x34   : > { %v417_v26 = vmul.f32 0.2, %v413_v22  ;;  %v418_v27 = vmul.f32 0.2, %v414_v23 }
  0x35   : > { %v419_v28 = vmul.f32 0.2, %v415_v24  ;;  %v420_v30 = vmul.f32 0.2, %v416_v25 }
  0x36   : > { %v421_v29 = vmax.f32 %v413_v22, %v417_v26  ;;  %v422_v31 = vmax.f32 %v414_v23, %v418_v27 }
  0x37   : > { %v423_v32 = vmax.f32 %v415_v24, %v419_v28  ;;  %v424_v34 = vmax.f32 %v416_v25, %v420_v30 }
  0x38   : > { %v568_v33 = vpack.c.bf16 %v421_v29, %v421_v29  ;;  %v569_v35 = vpack.c.bf16 %v422_v31, %v422_v31 }
  0x39   : > { %v570_v36 = vpack.c.bf16 %v423_v32, %v423_v32  ;;  %v571_v37 = vpack.c.bf16 %v424_v34, %v424_v34 }
  0x3a   : > { %442 = vst.msk [vmem:[%s332_s6] sm:$0xf] %vm441_vm0, %v568_v33  ;;  %443 = vst.msk [vmem:[%s332_s6 + $0x4] sm:$0xf] %vm441_vm0, %v569_v35 }
  0x3b   : > { %444 = vst.msk [vmem:[%s332_s6 + $0x8] sm:$0xf] %vm441_vm0, %v570_v36  ;;  %445 = vst.msk [vmem:[%s332_s6 + $0xc] sm:$0xf] %vm441_vm0, %v571_v37 }
  0x3c PF: > { %p9_p9 = scmp.ge.s32.totalorder %s661_s13, 4   ;;  %s761_s9 = smov %s623_s10 }
  0x3d   : > { %s762_s10 = smov %s670_s16  ;;  %s763_s11 = smov %s661_s13 }
  0x3e   :  { %11 = sbr.rel (!%p9_p9) target bundleno = 2 (0x2), region = 114 }

// kernel: edge_conv_model_forward.13
= control target key start
LH: loop header
LB: loop body
LE: loop exit
PB: predicated region body
PF: predicated region fallthrough
CT: control target
= control target key end

     0   :  { %s2033_s27 = smov 0   ;;  %s2306_s0 = inlined_call_operand.vmem [shape: bf16[64,64], index: 0, kind: input, shape index: {}]   ;;  %s2307_s1 = inlined_call_operand.vmem [shape: bf16[64,64], index: 1, kind: input, shape index: {}]   ;;  %s2308_s2 = inlined_call_operand.vmem [shape: bf16[64,128], index: 2, kind: input, shape index: {}]   ;;  %s2309_s3 = inlined_call_operand.vmem [shape: bf16[64,256], index: 3, kind: input, shape index: {}]   ;;  %s2310_s4 = inlined_call_operand.vmem [shape: bf16[512,64], index: 4, kind: input, shape index: {}]   ;;  %s2311_s5 = inlined_call_operand.vmem [shape: bf16[512,64], index: 5, kind: input, shape index: {}]   ;;  %s2312_s6 = inlined_call_operand.vmem [shape: f32[1,64], index: 6, kind: input, shape index: {}]   ;;  %s2313_s7 = inlined_call_operand.vmem [shape: bf16[64,64], index: 7, kind: output, shape index: {0}]   ;;  %s2314_s8 = inlined_call_operand.vmem [shape: bf16[64,64], index: 8, kind: output, shape index: {1}]  }
   0x1 LB: > { %s1572_s28 = sadd.s32 4294967295, %s1986_s27   ;;  %p1576_p0 = scmp.ge.s32.totalorder %s1986_s27, 1  ;;  %s1986_s27 = sphi %s2033_s27, %s19_s27  }
   0x2   : > { %p300_p1 = scmp.lt.s32.totalorder %s1986_s27, 3 }
   0x4   : > { %p301_p2 = pnand %p1576_p0, %p300_p1 }
   0x5   : > { %v1904_v0 = vld [vmem:[%s2310_s4 + $0x20] sm:$0xff] (!%p301_p2)   ;;  %s1577_s9 = sshll.u32 (!%p301_p2), %s1572_s28, 2  ;;  %v1906_v2 = vld [vmem:[%s2310_s4 + $0x28] sm:$0xff] (!%p301_p2)   ;;  %v1908_v4 = vld [vmem:[%s2310_s4 + $0x30] sm:$0xff] (!%p301_p2)   ;;  %vm459_vm0 = vcmask (!%p301_p2), 523264   ;;  %vm1421_vm1 = vcmask (!%p301_p2), 519168  }
   0x6   : > { %304 = sbr.rel (%p301_p2) target bundleno = 334 (0x14e), region = 48  ;;  %v1905_v1 = vld [vmem:[%s2311_s5 + $0x20] sm:$0xff] (!%p301_p2)   ;;  %p356_p3 = scmp.lt.s32.totalorder (!%p301_p2), %s1577_s9, 7  ;;  %1792 = vmatprep.subr.bf16.mxu0 (!%p301_p2), %v1904_v0  ;;  %v1907_v3 = vld [vmem:[%s2311_s5 + $0x28] sm:$0xff] (!%p301_p2)   ;;  %v1909_v5 = vld [vmem:[%s2311_s5 + $0x30] sm:$0xff] (!%p301_p2)  }
   0x7   : > { %1804 = vmatprep.subr.bf16.mxu1 (!%p301_p2), %v1905_v1  ;;  %1793 = vmatpush3.bf16.msra.mxu0 (!%p301_p2), %v1904_v0  ;;  %v1910_v6 = vld [vmem:[%s2310_s4 + $0x38] sm:$0xff] (!%p301_p2)   ;;  %v1913_v9 = vld [vmem:[%s2310_s4] sm:$0xff] (!%p301_p2)   ;;  %v1916_v12 = vld [vmem:[%s2310_s4 + $0x8] sm:$0xff] (!%p301_p2)  }
   0x8   : > { %1805 = vmatpush3.bf16.msra.mxu1 (!%p301_p2), %v1905_v1  ;;  %1794 = vmatprep.subr.bf16.mxu0 (!%p301_p2), %v1906_v2  ;;  %v1911_v8 = vld [vmem:[%s2311_s5 + $0x38] sm:$0xff] (!%p301_p2)   ;;  %v1914_v10 = vld [vmem:[%s2311_s5] sm:$0xff] (!%p301_p2)   ;;  %v1917_v13 = vld [vmem:[%s2311_s5 + $0x8] sm:$0xff] (!%p301_p2)  }
   0x9   : > { %1806 = vmatprep.subr.bf16.mxu1 (!%p301_p2), %v1907_v3  ;;  %v1918_v15 = vld [vmem:[%s2310_s4 + $0x10] sm:$0xff] (!%p301_p2)   ;;  %v1920_v17 = vld [vmem:[%s2310_s4 + $0x18] sm:$0xff] (!%p301_p2)   ;;  %v1923_v19 = vld [vmem:[%s2310_s4 + $0x40] sm:$0xff] (!%p301_p2)  }
   0xa   : > { %v1919_v16 = vld [vmem:[%s2311_s5 + $0x10] sm:$0xff] (!%p301_p2)   ;;  %v1921_v18 = vld [vmem:[%s2311_s5 + $0x18] sm:$0xff] (!%p301_p2)   ;;  %v1924_v20 = vld [vmem:[%s2311_s5 + $0x40] sm:$0xff] (!%p301_p2)  }
   0xb   : > { %1795 = vmatpush3.bf16.msra.mxu0 (!%p301_p2), %v1906_v2  ;;  %v1926_v22 = vld [vmem:[%s2310_s4 + $0x48] sm:$0xff] (!%p301_p2)   ;;  %v1928_v24 = vld [vmem:[%s2310_s4 + $0x50] sm:$0xff] (!%p301_p2)   ;;  %v1930_v27 = vld [vmem:[%s2310_s4 + $0x58] sm:$0xff] (!%p301_p2)  }
   0xc   : > { %1807 = vmatpush3.bf16.msra.mxu1 (!%p301_p2), %v1907_v3  ;;  %1796 = vmatprep.subr.bf16.mxu0 (!%p301_p2), %v1908_v4  ;;  %v1927_v23 = vld [vmem:[%s2311_s5 + $0x48] sm:$0xff] (!%p301_p2)   ;;  %v1929_v26 = vld [vmem:[%s2311_s5 + $0x50] sm:$0xff] (!%p301_p2)   ;;  %v1931_v28 = vld [vmem:[%s2311_s5 + $0x58] sm:$0xff] (!%p301_p2)  }
   0xd   : > { %s2316_s9 = smov (!%p356_p3, %s1577_s9), 7  ;;  %1808 = vmatprep.subr.bf16.mxu1 %v1909_v5  ;;  %v1932_v29 = vld [vmem:[%s2310_s4 + $0x60] sm:$0xff]   ;;  %v1934_v31 = vld [vmem:[%s2310_s4 + $0x68] sm:$0xff]   ;;  %v1936_v33 = vld [vmem:[%s2310_s4 + $0x70] sm:$0xff]  }
   0xe   : > { %s2062_s20 = sshll.u32 %s2316_s9, 2  ;;  %v1933_v30 = vld [vmem:[%s2311_s5 + $0x60] sm:$0xff]   ;;  %v1935_v32 = vld [vmem:[%s2311_s5 + $0x68] sm:$0xff]   ;;  %v1937_v34 = vld [vmem:[%s2311_s5 + $0x70] sm:$0xff]   ;;  %s1683_s18 = sshll.u32 %s2316_s9, 3 }
   0xf   : > { %s365_s23 = scalar_lea.vmem %s2307_s1, %s2062_s20  ;;  %1797 = vmatpush3.bf16.msra.mxu0 %v1908_v4  ;;  %s359_s14 = scalar_lea.vmem %s2306_s0, %s2062_s20  ;;  %v1938_v35 = vld [vmem:[%s2310_s4 + $0x78] sm:$0xff]   ;;  %v1942_v38 = vld [vmem:[%s2310_s4 + $0xc0] sm:$0xff]   ;;  %v1946_v42 = vld [vmem:[%s2310_s4 + $0xc8] sm:$0xff]  }
  0x10   : > { %v1912_v7 = vld [vmem:[%s365_s23] sm:$0xff]   ;;  %1809 = vmatpush3.bf16.msra.mxu1 %v1909_v5  ;;  %1798 = vmatprep.subr.bf16.mxu0 %v1910_v6  ;;  %v1915_v11 = vld [vmem:[%s365_s23 + $0x8] sm:$0xff]   ;;  %s2124_s19 = scalar_lea.vmem %s2308_s2, %s2062_s20  ;;  %v1939_v36 = vld [vmem:[%s2311_s5 + $0x78] sm:$0xff]   ;;  %s2197_s9 = scalar_lea.vmem %s2309_s3, %s1683_s18 }
  0x11   : > { %1800 = vmatprep.mubr.msk.bf16.mxu0 %vm459_vm0, %v1912_v7  ;;  %1812 = vmatprep.mubr.msk.bf16.mxu1 %vm459_vm0, %v1912_v7  ;;  %v1922_v14 = vld [vmem:[%s359_s14] sm:$0xff]   ;;  %v1925_v21 = vld [vmem:[%s359_s14 + $0x8] sm:$0xff]   ;;  %v1950_v46 = vld [vmem:[%s2310_s4 + $0xd0] sm:$0xff]   ;;  %s2279_s14 = scalar_lea.vmem %s2314_s8, %s2062_s20  ;;  %s2285_s23 = scalar_lea.vmem %s2313_s7, %s2062_s20 }
  0x12   : > { %1810 = vmatprep.subr.bf16.mxu1 %v1911_v8  ;;  %v1940_v25 = vld [vmem:[%s2124_s19] sm:$0xff]   ;;  %v1941_v37 = vld [vmem:[%s2124_s19 + $0x8] sm:$0xff]   ;;  %v1951_v47 = vld [vmem:[%s2311_s5 + $0xd0] sm:$0xff]  }
  0x13   : > { %1799 = vmatpush3.bf16.msra.mxu0 %v1910_v6  ;;  %v1943_v39 = vld [vmem:[%s2311_s5 + $0xc0] sm:$0xff]   ;;  %v1947_v43 = vld [vmem:[%s2311_s5 + $0xc8] sm:$0xff]   ;;  %v1952_v48 = vld [vmem:[%s2310_s4 + $0x90] sm:$0xff]  }
  0x14   : > { %1811 = vmatpush3.bf16.msra.mxu1 %v1911_v8  ;;  %1816 = vmatprep.subr.bf16.mxu0 %v1913_v9  ;;  %v1944_v40 = vld [vmem:[%s2310_s4 + $0x80] sm:$0xff]   ;;  %v1948_v44 = vld [vmem:[%s2310_s4 + $0x88] sm:$0xff]   ;;  %v1953_v50 = vld [vmem:[%s2311_s5 + $0x90] sm:$0xff]  }
  0x15   : > { %1828 = vmatprep.subr.bf16.mxu1 %v1914_v10  ;;  %v1945_v41 = vld [vmem:[%s2311_s5 + $0x80] sm:$0xff]   ;;  %v1949_v45 = vld [vmem:[%s2311_s5 + $0x88] sm:$0xff]   ;;  %v1954_v51 = vld [vmem:[%s2310_s4 + $0xd8] sm:$0xff]  }
  0x16   : > { %1801 = vmatmul.mubr.msk.bf16.vlgmr.msra.gmra.mrb[0].mxu0 %vm459_vm0, %v1915_v11  ;;  %v1976_v49 = vld [vmem:[%s2197_s9 + $0x4] ss:$8 sps:$4 sm:$0xff]   ;;  %v1955_v52 = vld [vmem:[%s2311_s5 + $0xd8] sm:$0xff]   ;;  %v1966_v63 = vld [vmem:[%s2310_s4 + $0xf0] sm:$0xff]  }
  0x17   : > { %1813 = vmatmul.mubr.msk.bf16.vlgmr.msra.gmra.mrb[0].mxu1 %vm459_vm0, %v1915_v11  ;;  %1817 = vmatpush3.bf16.msra.mxu0 %v1913_v9  ;;  %v1956_v53 = vld [vmem:[%s2310_s4 + $0x98] sm:$0xff]   ;;  %v1958_v55 = vld [vmem:[%s2310_s4 + $0xe0] sm:$0xff]   ;;  %v1962_v59 = vld [vmem:[%s2310_s4 + $0xe8] sm:$0xff]  }
  0x18   : > { %1829 = vmatpush3.bf16.msra.mxu1 %v1914_v10  ;;  %1818 = vmatprep.subr.bf16.mxu0 %v1916_v12  ;;  %v1957_v54 = vld [vmem:[%s2311_s5 + $0x98] sm:$0xff]   ;;  %v1959_v56 = vld [vmem:[%s2311_s5 + $0xe0] sm:$0xff]   ;;  %v1963_v60 = vld [vmem:[%s2311_s5 + $0xe8] sm:$0xff]  }
  0x19   : > { %1830 = vmatprep.subr.bf16.mxu1 %v1917_v13  ;;  %1824 = vmatprep.mubr.msk.bf16.mxu0 %vm459_vm0, %v1922_v14  ;;  %v1960_v57 = vld [vmem:[%s2310_s4 + $0xa0] sm:$0xff]   ;;  %v1964_v61 = vld [vmem:[%s2310_s4 + $0xa8] sm:$0xff]   ;;  %v1967_v0 = vld [vmem:[%s2311_s5 + $0xf0] sm:$0xff]  }
  0x1a   : > { %1836 = vmatprep.mubr.msk.bf16.mxu1 %vm459_vm0, %v1922_v14  ;;  %v1961_v58 = vld [vmem:[%s2311_s5 + $0xa0] sm:$0xff]   ;;  %v1965_v62 = vld [vmem:[%s2311_s5 + $0xa8] sm:$0xff]   ;;  %v1968_v1 = vld [vmem:[%s2310_s4 + $0xb0] sm:$0xff]  }
  0x1b   : > { %1819 = vmatpush3.bf16.msra.mxu0 %v1916_v12  ;;  %v1969_v2 = vld [vmem:[%s2311_s5 + $0xb0] sm:$0xff]   ;;  %v1970_v3 = vld [vmem:[%s2310_s4 + $0xf8] sm:$0xff]   ;;  %v1974_v7 = vld [vmem:[%s2197_s9] ss:$8 sps:$4 sm:$0xff]  }
  0x1c   : > { %1831 = vmatpush3.bf16.msra.mxu1 %v1917_v13  ;;  %1820 = vmatprep.subr.bf16.mxu0 %v1918_v15  ;;  %v1971_v4 = vld [vmem:[%s2311_s5 + $0xf8] sm:$0xff]  }
  0x1d   : > { %1832 = vmatprep.subr.bf16.mxu1 %v1919_v16  ;;  %v1972_v5 = vld [vmem:[%s2310_s4 + $0xb8] sm:$0xff]  }
  0x1e   : > { %v1973_v6 = vld [vmem:[%s2311_s5 + $0xb8] sm:$0xff]  }
  0x1f   : > { %1821 = vmatpush3.bf16.msra.mxu0 %v1918_v15  ;;  %v1977_v8 = vld [vmem:[%s2197_s9 + $0x14] ss:$8 sps:$4 sm:$0xff]   ;;  %v1979_v9 = vld [vmem:[%s2197_s9 + $0x10] ss:$8 sps:$4 sm:$0xff]  }
  0x20   : > { %1833 = vmatpush3.bf16.msra.mxu1 %v1919_v16  ;;  %1822 = vmatprep.subr.bf16.mxu0 %v1920_v17 }
  0x21   : > { %1834 = vmatprep.subr.bf16.mxu1 %v1921_v18 }
  0x23   : > { %1823 = vmatpush3.bf16.msra.mxu0 %v1920_v17 }
  0x24   : > { %1835 = vmatpush3.bf16.msra.mxu1 %v1921_v18  ;;  %1840 = vmatprep.subr.bf16.mxu0 %v1923_v19 }
  0x25   : > { %1860 = vmatprep.subr.bf16.mxu1 %v1924_v20 }
  0x26   : > { %1825 = vmatmul.mubr.msk.bf16.vlgmr.msra.gmra.mrb[0].mxu0 %vm459_vm0, %v1925_v21 }
  0x27   : > { %1837 = vmatmul.mubr.msk.bf16.vlgmr.msra.gmra.mrb[0].mxu1 %vm459_vm0, %v1925_v21  ;;  %1841 = vmatpush3.bf16.msra.mxu0 %v1923_v19 }
  0x28   : > { %1861 = vmatpush3.bf16.msra.mxu1 %v1924_v20  ;;  %1842 = vmatprep.subr.bf16.mxu0 %v1926_v22 }
  0x29   : > { %1862 = vmatprep.subr.bf16.mxu1 %v1927_v23  ;;  %1856 = vmatprep.mubr.bf16.mxu0 %v1940_v25 }
  0x2a   : > { %1876 = vmatprep.mubr.bf16.mxu1 %v1940_v25 }
  0x2b   : > { %1843 = vmatpush3.bf16.msra.mxu0 %v1926_v22 }
  0x2c   : > { %1863 = vmatpush3.bf16.msra.mxu1 %v1927_v23  ;;  %1844 = vmatprep.subr.bf16.mxu0 %v1928_v24 }
  0x2d   : > { %1864 = vmatprep.subr.bf16.mxu1 %v1929_v26 }
  0x2f   : > { %1845 = vmatpush3.bf16.msra.mxu0 %v1928_v24  ;;  %v1672_v24 = vld [vmem:[%s2312_s6] ss:$0 sm:$0xff] }
  0x30   : > { %1865 = vmatpush3.bf16.msra.mxu1 %v1929_v26  ;;  %1846 = vmatprep.subr.bf16.mxu0 %v1930_v27 }
  0x31   : > { %1866 = vmatprep.subr.bf16.mxu1 %v1931_v28 }
  0x33   : > { %1847 = vmatpush3.bf16.msra.mxu0 %v1930_v27 }
  0x34   : > { %1867 = vmatpush3.bf16.msra.mxu1 %v1931_v28  ;;  %1848 = vmatprep.subr.bf16.mxu0 %v1932_v29 }
  0x35   : > { %1868 = vmatprep.subr.bf16.mxu1 %v1933_v30 }
  0x37   : > { %1849 = vmatpush3.bf16.msra.mxu0 %v1932_v29 }
  0x38   : > { %1869 = vmatpush3.bf16.msra.mxu1 %v1933_v30  ;;  %1850 = vmatprep.subr.bf16.mxu0 %v1934_v31 }
  0x39   : > { %1870 = vmatprep.subr.bf16.mxu1 %v1935_v32 }
  0x3b   : > { %1851 = vmatpush3.bf16.msra.mxu0 %v1934_v31 }
  0x3c   : > { %1871 = vmatpush3.bf16.msra.mxu1 %v1935_v32  ;;  %1852 = vmatprep.subr.bf16.mxu0 %v1936_v33 }
  0x3d   : > { %1872 = vmatprep.subr.bf16.mxu1 %v1937_v34 }
  0x3f   : > { %1853 = vmatpush3.bf16.msra.mxu0 %v1936_v33 }
  0x40   : > { %1873 = vmatpush3.bf16.msra.mxu1 %v1937_v34  ;;  %1854 = vmatprep.subr.bf16.mxu0 %v1938_v35 }
  0x41   : > { %1874 = vmatprep.subr.bf16.mxu1 %v1939_v36 }
  0x43   : > { %1855 = vmatpush3.bf16.msra.mxu0 %v1938_v35 }
  0x44   : > { %1875 = vmatpush3.bf16.msra.mxu1 %v1939_v36  ;;  %1736 = vmatprep.subr.bf16.mxu0 %v1942_v38 }
  0x45   : > { %1764 = vmatprep.subr.bf16.mxu1 %v1943_v39 }
  0x46   : > { %1857 = vmatmul.mubr.bf16.vlgmr.msra.gmra.mrb[0].mxu0 %v1941_v37 }
  0x47   : > { %1877 = vmatmul.mubr.bf16.vlgmr.msra.gmra.mrb[0].mxu1 %v1941_v37  ;;  %1737 = vmatpush3.bf16.msra.mxu0 %v1944_v40 }
  0x48   : > { %1765 = vmatpush3.bf16.msra.mxu1 %v1945_v41  ;;  %1738 = vmatprep.subr.bf16.mxu0 %v1946_v42 }
  0x49   : > { %1766 = vmatprep.subr.bf16.mxu1 %v1947_v43  ;;  %1192 = vmatprep.mubr.bf16.mxu0 %v1976_v49 }
  0x4a   : > { %1369 = vmatprep.mubr.bf16.mxu1 %v1976_v49 }
  0x4b   : > { %1739 = vmatpush3.bf16.msra.mxu0 %v1948_v44 }
  0x4c   : > { %1767 = vmatpush3.bf16.msra.mxu1 %v1949_v45  ;;  %1740 = vmatprep.subr.bf16.mxu0 %v1950_v46 }
  0x4d   : > { %1768 = vmatprep.subr.bf16.mxu1 %v1951_v47 }
  0x4f   : > { %1741 = vmatpush3.bf16.msra.mxu0 %v1952_v48 }
  0x50   : > { %1769 = vmatpush3.bf16.msra.mxu1 %v1953_v50  ;;  %1742 = vmatprep.subr.bf16.mxu0 %v1954_v51 }
  0x51   : > { %1770 = vmatprep.subr.bf16.mxu1 %v1955_v52 }
  0x53   : > { %1743 = vmatpush3.bf16.msra.mxu0 %v1956_v53 }
  0x54   : > { %1771 = vmatpush3.bf16.msra.mxu1 %v1957_v54  ;;  %1744 = vmatprep.subr.bf16.mxu0 %v1958_v55 }
  0x55   : > { %1772 = vmatprep.subr.bf16.mxu1 %v1959_v56 }
  0x57   : > { %1745 = vmatpush3.bf16.msra.mxu0 %v1960_v57 }
  0x58   : > { %1773 = vmatpush3.bf16.msra.mxu1 %v1961_v58  ;;  %1746 = vmatprep.subr.bf16.mxu0 %v1962_v59 }
  0x59   : > { %1774 = vmatprep.subr.bf16.mxu1 %v1963_v60 }
  0x5b   : > { %1747 = vmatpush3.bf16.msra.mxu0 %v1964_v61 }
  0x5c   : > { %1775 = vmatpush3.bf16.msra.mxu1 %v1965_v62  ;;  %1748 = vmatprep.subr.bf16.mxu0 %v1966_v63 }
  0x5d   : > { %1776 = vmatprep.subr.bf16.mxu1 %v1967_v0 }
  0x5f   : > { %1749 = vmatpush3.bf16.msra.mxu0 %v1968_v1 }
  0x60   : > { %1777 = vmatpush3.bf16.msra.mxu1 %v1969_v2  ;;  %1750 = vmatprep.subr.bf16.mxu0 %v1970_v3 }
  0x61   : > { %1778 = vmatprep.subr.bf16.mxu1 %v1971_v4 }
  0x63   : > { %1751 = vmatpush3.bf16.msra.mxu0 %v1972_v5 }
  0x64   : > { %1779 = vmatpush3.bf16.msra.mxu1 %v1973_v6 }
  0x66   : > { %1193 = vmatmul.mubr.bf16.vlgmr.msra.gmra.mrb[4].mxu0 %v1974_v7 }
  0x67   : > { %1370 = vmatmul.mubr.bf16.vlgmr.msra.gmra.mrb[4].mxu1 %v1974_v7  ;;  %1200 = vmatprep.mubr.bf16.mxu0 %v1977_v8 }
  0x68   : > { %1377 = vmatprep.mubr.bf16.mxu1 %v1977_v8 }
  0x6e   : > { %1201 = vmatmul.mubr.bf16.gmra.mrb[8].mxu0 %v1979_v9 }
  0x6f   : > { %1378 = vmatmul.mubr.bf16.gmra.mrb[8].mxu1 %v1979_v9 }
 0x119   : > { %v1858_v10 = vpop.f32.mrb[0].mxu0 }
 0x11a   : > { %v1878_v11 = vpop.f32.mrb[0].mxu1  ;;  %v872_v12 = vpop.f32.mrb[1].mxu0 }
 0x11b   : > { %v985_v13 = vpop.f32.mrb[1].mxu1  ;;  %v1859_v14 = vpop.f32.mrb[2].mxu0 }
 0x11c   : > { %v1879_v15 = vpop.f32.mrb[2].mxu1  ;;  %v875_v16 = vpop.f32.mrb[3].mxu0 }
 0x11d   : > { %v988_v17 = vpop.f32.mrb[3].mxu1 }
 0x139   : > { %v1752_v18 = vpop.f32.mrb[4].mxu0 }
 0x13a   : > { %v1780_v19 = vpop.f32.mrb[4].mxu1  ;;  %v1753_v20 = vpop.f32.mrb[5].mxu0 }
 0x13b   : > { %v1754_v21 = vadd.f32 %v1753_v20, %v1752_v18  ;;  %v1781_v22 = vpop.f32.mrb[5].mxu1  ;;  %v1755_v23 = vpop.f32.mrb[6].mxu0 }
 0x13c   : > { %v1782_v25 = vadd.f32 %v1781_v22, %v1780_v19  ;;  %v1783_v26 = vpop.f32.mrb[6].mxu1  ;;  %v1756_v27 = vpop.f32.mrb[7].mxu0 }
 0x13d   : > { %v1386_v28 = vadd.f32 %v1754_v21, %v872_v12  ;;  %v1757_v29 = vadd.f32 %v1756_v27, %v1755_v23  ;;  %v1784_v30 = vpop.f32.mrb[7].mxu1 }
 0x13e   : > { %v1390_v31 = vadd.f32 %v1782_v25, %v985_v13  ;;  %v1785_v32 = vadd.f32 %v1784_v30, %v1783_v26 }
 0x13f   : > { %v1401_v33 = vadd.f32 %v1672_v24, %v1386_v28  ;;  %v1387_v34 = vadd.f32 %v1757_v29, %v875_v16 }
 0x140   : > { %v1688_v35 = vpack.c.bf16 %v1390_v31, %v1390_v31  ;;  %v1391_v36 = vadd.f32 %v1785_v32, %v988_v17 }
 0x141   : > { %v1684_v37 = vpack.c.bf16 %v1401_v33, %v1401_v33  ;;  %v1402_v38 = vadd.f32 %v1672_v24, %v1387_v34  ;;  %v1758_v39 = vpop.f32.mrb[8].mxu0 }
 0x142   : > { %1442 = vst.msk [vmem:[%s2279_s14] sm:$0xf] %vm1421_vm1, %v1688_v35  ;;  %v1689_v40 = vpack.c.bf16 %v1391_v36, %v1391_v36  ;;  %v1786_v41 = vpop.f32.mrb[8].mxu1  ;;  %v1759_v42 = vpop.f32.mrb[9].mxu0 }
 0x143   : > { %1422 = vst.msk [vmem:[%s2285_s23] sm:$0xf] %vm1421_vm1, %v1684_v37  ;;  %v1685_v43 = vpack.c.bf16 %v1402_v38, %v1402_v38  ;;  %v1760_v44 = vadd.f32 %v1759_v42, %v1758_v39  ;;  %v1787_v45 = vpop.f32.mrb[9].mxu1  ;;  %v1761_v46 = vpop.f32.mrb[10].mxu0 }
 0x144   : > { %1443 = vst.msk [vmem:[%s2279_s14 + $0x4] sm:$0xf] %vm1421_vm1, %v1689_v40  ;;  %v1788_v47 = vadd.f32 %v1787_v45, %v1786_v41  ;;  %v1789_v48 = vpop.f32.mrb[10].mxu1  ;;  %v1762_v49 = vpop.f32.mrb[11].mxu0 }
 0x145   : > { %1423 = vst.msk [vmem:[%s2285_s23 + $0x4] sm:$0xf] %vm1421_vm1, %v1685_v43  ;;  %v1388_v50 = vadd.f32 %v1858_v10, %v1760_v44  ;;  %v1763_v51 = vadd.f32 %v1762_v49, %v1761_v46  ;;  %v1790_v52 = vpop.f32.mrb[11].mxu1 }
 0x146   : > { %v1392_v53 = vadd.f32 %v1878_v11, %v1788_v47  ;;  %v1791_v54 = vadd.f32 %v1790_v52, %v1789_v48 }
 0x147   : > { %v1403_v55 = vadd.f32 %v1672_v24, %v1388_v50  ;;  %v1389_v56 = vadd.f32 %v1859_v14, %v1763_v51 }
 0x148   : > { %v1690_v57 = vpack.c.bf16 %v1392_v53, %v1392_v53  ;;  %v1393_v58 = vadd.f32 %v1879_v15, %v1791_v54 }
 0x149   : > { %v1686_v59 = vpack.c.bf16 %v1403_v55, %v1403_v55  ;;  %v1404_v60 = vadd.f32 %v1672_v24, %v1389_v56 }
 0x14a   : > { %1444 = vst.msk [vmem:[%s2279_s14 + $0x8] sm:$0xf] %vm1421_vm1, %v1690_v57  ;;  %v1691_v61 = vpack.c.bf16 %v1393_v58, %v1393_v58 }
 0x14b   : > { %1424 = vst.msk [vmem:[%s2285_s23 + $0x8] sm:$0xf] %vm1421_vm1, %v1686_v59  ;;  %v1687_v62 = vpack.c.bf16 %v1404_v60, %v1404_v60 }
 0x14c   : > { %1445 = vst.msk [vmem:[%s2279_s14 + $0xc] sm:$0xf] %vm1421_vm1, %v1691_v61 }
 0x14d   : > { %1425 = vst.msk [vmem:[%s2285_s23 + $0xc] sm:$0xf] %vm1421_vm1, %v1687_v62 }
 0x14e PF: > { %s19_s27 = sadd.s32 1, %s1986_s27  }
 0x14f   : > { %p16_p4 = scmp.ge.s32.totalorder %s19_s27, 4  }
 0x151   :  { %18 = sbr.rel (!%p16_p4) target bundleno = 1 (0x1), region = 99 }

// kernel: edge_conv_model_forward.15
= control target key start
LH: loop header
LB: loop body
LE: loop exit
PB: predicated region body
PF: predicated region fallthrough
CT: control target
= control target key end

     0   :  { %v1541_v2 = vmov 0   ;;  %vm47_vm0 = vcmask 523264   ;;  %vm142_vm1 = vcmask 1041409   ;;  %s1987_s0 = inlined_call_operand.vmem [shape: bf16[2,32,64], index: 0, kind: input, shape index: {}]   ;;  %s1988_s1 = inlined_call_operand.vmem [shape: bf16[64,512], index: 1, kind: input, shape index: {}]   ;;  %s1989_s2 = inlined_call_operand.vmem [shape: bf16[64,512], index: 2, kind: input, shape index: {}]   ;;  %s1990_s3 = inlined_call_operand.vmem [shape: f32[1,512], index: 3, kind: input, shape index: {}]   ;;  %s1991_s4 = inlined_call_operand.vmem [shape: bf16[512,256], index: 4, kind: input, shape index: {}]   ;;  %s1992_s5 = inlined_call_operand.vmem [shape: f32[1,256], index: 5, kind: input, shape index: {}]   ;;  %s1993_s6 = inlined_call_operand.vmem [shape: bf16[256,128], index: 6, kind: input, shape index: {}]   ;;  %s1994_s7 = inlined_call_operand.vmem [shape: f32[1,128], index: 7, kind: input, shape index: {}]   ;;  %s1995_s8 = inlined_call_operand.hbm [shape: f32[2,128], index: 8, kind: output, shape index: {}]  }
   0x1   :  { %v1357_v0 = vld [vmem:[%s1989_s2 + $0x4] ss:$16 sps:$4 sm:$0xff]   ;;  %v1359_v1 = vld [vmem:[%s1989_s2] ss:$16 sps:$4 sm:$0xff]   ;;  %260 = vmatprep.mubr.bf16.mxu0 %v1541_v2  ;;  %472 = vmatprep.mubr.bf16.mxu1 %v1541_v2  ;;  %v1372_v8 = vld [vmem:[%s1988_s1 + $0xc] ss:$16 sps:$4 sm:$0xff]  }
   0x2   :  { %228 = vmatprep.subr.bf16.mxu0 %v1357_v0  ;;  %v1360_v3 = vld [vmem:[%s1989_s2 + $0x24] ss:$16 sps:$4 sm:$0xff]   ;;  %v1362_v4 = vld [vmem:[%s1989_s2 + $0x20] ss:$16 sps:$4 sm:$0xff]   ;;  %v1326_v12 = vld [vmem:[%s1987_s0 + $0x8] sm:$0xff]   ;;  %440 = vmatprep.subr.bf16.mxu1 %v1372_v8 }
   0x3   :  { %229 = vmatpush1.bf16.msra.mxu0 %v1359_v1  ;;  %v1363_v5 = vld [vmem:[%s1989_s2 + $0x44] ss:$16 sps:$4 sm:$0xff]   ;;  %v1365_v6 = vld [vmem:[%s1989_s2 + $0x40] ss:$16 sps:$4 sm:$0xff]   ;;  %v1328_v14 = vld [vmem:[%s1987_s0 + $0x18] sm:$0xff]   ;;  %v1316_v15 = vunpack.c.l.bf16 %v1326_v12  ;;  %v1317_v16 = vunpack.c.h.bf16 %v1326_v12 }
   0x4   :  { %230 = vmatprep.subr.bf16.mxu0 %v1360_v3  ;;  %v1366_v7 = vld [vmem:[%s1989_s2 + $0x64] ss:$16 sps:$4 sm:$0xff]   ;;  %v1374_v19 = vld [vmem:[%s1988_s1 + $0x8] ss:$16 sps:$4 sm:$0xff]   ;;  %v1368_v20 = vld [vmem:[%s1989_s2 + $0x60] ss:$16 sps:$4 sm:$0xff]   ;;  %v1324_v22 = vunpack.c.l.bf16 %v1328_v14  ;;  %v1325_v23 = vunpack.c.h.bf16 %v1328_v14 }
   0x5   :  { %v1311_v9 = vld [vmem:[%s1987_s0] sm:$0xff]   ;;  %v1327_v13 = vld [vmem:[%s1987_s0 + $0x10] sm:$0xff]   ;;  %v1371_v21 = vld [vmem:[%s1989_s2 + $0xc] ss:$16 sps:$4 sm:$0xff]   ;;  %v77_v27 = vsel %vm47_vm0, %v1316_v15, 0.0  ;;  %441 = vmatpush1.bf16.msra.mxu1 %v1374_v19  ;;  %v79_v29 = vsel %vm47_vm0, %v1317_v16, 0.0 }
   0x6   :  { %v1312_v10 = vunpack.c.l.bf16 %v1311_v9  ;;  %v1313_v11 = vunpack.c.h.bf16 %v1311_v9  ;;  %v1320_v17 = vunpack.c.l.bf16 %v1327_v13  ;;  %v1321_v18 = vunpack.c.h.bf16 %v1327_v13  ;;  %v1378_v32 = vld [vmem:[%s1988_s1 + $0x2c] ss:$16 sps:$4 sm:$0xff]   ;;  %v1380_v36 = vld [vmem:[%s1988_s1 + $0x28] ss:$16 sps:$4 sm:$0xff]  }
   0x7   :  { %231 = vmatpush1.bf16.msra.mxu0 %v1362_v4  ;;  %v90_v31 = vsel %vm47_vm0, %v1324_v22, 0.0  ;;  %v92_v35 = vsel %vm47_vm0, %v1325_v23, 0.0  ;;  %442 = vmatprep.subr.bf16.mxu1 %v1378_v32  ;;  %v1384_v37 = vld [vmem:[%s1988_s1 + $0x4c] ss:$16 sps:$4 sm:$0xff]   ;;  %v1386_v42 = vld [vmem:[%s1988_s1 + $0x48] ss:$16 sps:$4 sm:$0xff]  }
   0x8   :  { %232 = vmatprep.subr.bf16.mxu0 %v1363_v5  ;;  %v74_v24 = vsel %vm47_vm0, %v1312_v10, 0.0  ;;  %v75_v25 = vsel %vm47_vm0, %v1313_v11, 0.0  ;;  %v87_v28 = vsel %vm47_vm0, %v1320_v17, 0.0  ;;  %v88_v30 = vsel %vm47_vm0, %v1321_v18, 0.0  ;;  %v1390_v50 = vld [vmem:[%s1988_s1 + $0x6c] ss:$16 sps:$4 sm:$0xff]  }
   0x9   :  { %v76_v26 = vadd.f32 %v75_v25, %v74_v24  ;;  %v89_v34 = vadd.f32 %v88_v30, %v87_v28  ;;  %v48_v38 = vsel %vm47_vm0, %v1312_v10, -inf  ;;  %v49_v39 = vsel %vm47_vm0, %v1313_v11, -inf  ;;  %443 = vmatpush1.bf16.msra.mxu1 %v1380_v36  ;;  %v1392_v56 = vld [vmem:[%s1988_s1 + $0x68] ss:$16 sps:$4 sm:$0xff]   ;;  %v1377_v32 = vld [vmem:[%s1989_s2 + $0x2c] ss:$16 sps:$4 sm:$0xff]  }
   0xa   :  { %v50_v43 = vsel %vm47_vm0, %v1316_v15, -inf  ;;  %v52_v44 = vsel %vm47_vm0, %v1317_v16, -inf  ;;  %444 = vmatprep.subr.bf16.mxu1 %v1384_v37  ;;  %v61_v47 = vsel %vm47_vm0, %v1320_v17, -inf  ;;  %v62_v52 = vsel %vm47_vm0, %v1321_v18, -inf  ;;  %v1419_v18 = vld [vmem:[%s1991_s4 + $0x4] ss:$8 sps:$4 sm:$0xff]  }
   0xb   :  { %233 = vmatpush1.bf16.msra.mxu0 %v1365_v6  ;;  %v78_v33 = vadd.f32 %v77_v27, %v76_v26  ;;  %v91_v41 = vadd.f32 %v90_v31, %v89_v34  ;;  %v51_v45 = vmax.f32 %v48_v38, %v50_v43  ;;  %v53_v46 = vmax.f32 %v49_v39, %v52_v44  ;;  %v1375_v34 = vld [vmem:[%s1989_s2 + $0x28] ss:$16 sps:$4 sm:$0xff]   ;;  %v1425_v39 = vld [vmem:[%s1991_s4 + $0x14] ss:$8 sps:$4 sm:$0xff]  }
   0xc   :  { %234 = vmatprep.subr.bf16.mxu0 %v1366_v7  ;;  %v63_v53 = vsel %vm47_vm0, %v1324_v22, -inf  ;;  %v65_v58 = vsel %vm47_vm0, %v1325_v23, -inf  ;;  %v1417_v37 = vld [vmem:[%s1991_s4] ss:$8 sps:$4 sm:$0xff]   ;;  %v1389_v43 = vld [vmem:[%s1989_s2 + $0x6c] ss:$16 sps:$4 sm:$0xff]  }
   0xd   :  { %v80_v40 = vadd.f32 %v79_v29, %v78_v33  ;;  %v93_v49 = vadd.f32 %v92_v35, %v91_v41  ;;  %v54_v51 = vmax.f32 %v51_v45, %v53_v46  ;;  %445 = vmatpush1.bf16.msra.mxu1 %v1386_v42  ;;  %v64_v57 = vmax.f32 %v61_v47, %v63_v53  ;;  %v1369_v29 = vld [vmem:[%s1989_s2 + $0x8] ss:$16 sps:$4 sm:$0xff]   ;;  %v1383_v35 = vld [vmem:[%s1989_s2 + $0x4c] ss:$16 sps:$4 sm:$0xff]   ;;  %v1395_v47 = vld [vmem:[%s1988_s1 + $0x4] ss:$16 sps:$4 sm:$0xff]  }
   0xe   :  { %446 = vmatprep.subr.bf16.mxu1 %v1390_v50  ;;  %v66_v60 = vmax.f32 %v62_v52, %v65_v58  ;;  %v1381_v41 = vld [vmem:[%s1989_s2 + $0x48] ss:$16 sps:$4 sm:$0xff]   ;;  %v1431_v42 = vld [vmem:[%s1991_s4 + $0x24] ss:$8 sps:$4 sm:$0xff]   ;;  %v1437_v46 = vld [vmem:[%s1991_s4 + $0x34] ss:$8 sps:$4 sm:$0xff]  }
   0xf   :  { %235 = vmatpush1.bf16.msra.mxu0 %v1368_v20  ;;  %v81_v48 = vrot.slane %v80_v40, 4  ;;  %v94_v55 = vrot.slane %v93_v49, 4  ;;  %v55_v59 = vrot.slane %v54_v51, 4  ;;  %v1429_v44 = vld [vmem:[%s1991_s4 + $0x20] ss:$8 sps:$4 sm:$0xff]  }
  0x10   :  { %269 = vmatprep.subr.bf16.mxu0 %v1371_v21  ;;  %v67_v0 = vmax.f32 %v64_v57, %v66_v60  ;;  %v1387_v45 = vld [vmem:[%s1989_s2 + $0x68] ss:$16 sps:$4 sm:$0xff]   ;;  %v1398_v50 = vld [vmem:[%s1988_s1 + $0x24] ss:$16 sps:$4 sm:$0xff]   ;;  %v1396_v53 = vld [vmem:[%s1988_s1 + $0x20] ss:$16 sps:$4 sm:$0xff]  }
  0x11   :  { %v82_v54 = vadd.f32 %v81_v48, %v80_v40  ;;  %v95_v62 = vadd.f32 %v94_v55, %v93_v49  ;;  %v56_v63 = vmax.f32 %v54_v51, %v55_v59  ;;  %447 = vmatpush1.bf16.msra.mxu1 %v1392_v56  ;;  %v1423_v40 = vld [vmem:[%s1991_s4 + $0x10] ss:$8 sps:$4 sm:$0xff]   ;;  %v1443_v51 = vld [vmem:[%s1991_s4 + $0x44] ss:$8 sps:$4 sm:$0xff]   ;;  %v1441_v52 = vld [vmem:[%s1991_s4 + $0x40] ss:$8 sps:$4 sm:$0xff]  }
  0x12   :  { %v68_v5 = vrot.slane %v67_v0, 4  ;;  %915 = vmatprep.subr.bf16.mxu1 %v1419_v18  ;;  %v1435_v48 = vld [vmem:[%s1991_s4 + $0x30] ss:$8 sps:$4 sm:$0xff]   ;;  %v1404_v56 = vld [vmem:[%s1988_s1 + $0x64] ss:$16 sps:$4 sm:$0xff]  }
  0x13   :  { %v83_v61 = vrot.slane %v82_v54, 2  ;;  %v96_v3 = vrot.slane %v95_v62, 2  ;;  %v57_v4 = vrot.slane %v56_v63, 2  ;;  %v1393_v49 = vld [vmem:[%s1988_s1] ss:$16 sps:$4 sm:$0xff]  }
  0x14   :  { %v69_v9 = vmax.f32 %v67_v0, %v68_v5  ;;  %v1399_v55 = vld [vmem:[%s1988_s1 + $0x40] ss:$16 sps:$4 sm:$0xff]  }
  0x15   :  { %v84_v1 = vadd.f32 %v83_v61, %v82_v54  ;;  %v97_v7 = vadd.f32 %v96_v3, %v95_v62  ;;  %v58_v8 = vmax.f32 %v56_v63, %v57_v4  ;;  %v1401_v54 = vld [vmem:[%s1988_s1 + $0x44] ss:$16 sps:$4 sm:$0xff]   ;;  %v1402_v57 = vld [vmem:[%s1988_s1 + $0x60] ss:$16 sps:$4 sm:$0xff]  }
  0x16   :  { %v70_v13 = vrot.slane %v69_v9, 2 }
  0x17   :  { %v85_v6 = vrot.slane %v84_v1, 1  ;;  %v98_v11 = vrot.slane %v97_v7, 1  ;;  %v59_v12 = vrot.slane %v58_v8, 1 }
  0x18   :  { %v71_v17 = vmax.f32 %v69_v9, %v70_v13 }
  0x19   :  { %v86_v10 = vadd.f32 %v85_v6, %v84_v1  ;;  %v99_v14 = vadd.f32 %v98_v11, %v97_v7  ;;  %v60_v16 = vmax.f32 %v58_v8, %v59_v12 }
  0x1a   :  { %v72_v21 = vrot.slane %v71_v17, 1 }
  0x1b   :  { %v100_v15 = vmul.f32 0.03125, %v86_v10  ;;  %v101_v19 = vmul.f32 0.03125, %v99_v14  ;;  %v102_v22 = vpack.c.bf16 %v60_v16, %v60_v16 }
  0x1c   :  { %v73_v25 = vmax.f32 %v71_v17, %v72_v21 }
  0x1d   :  { %v120_v20 = vpack.c.bf16 %v100_v15, %v100_v15  ;;  %v121_v23 = vpack.c.bf16 %v101_v19, %v101_v19  ;;  %v312_v28 = vunpack.c.l.b16 %v102_v22 }
  0x1e   :  { %v103_v27 = vpack.c.bf16 %v73_v25, %v73_v25 }
  0x1f   :  { %v140_v24 = vunpack.c.l.b16 %v120_v20  ;;  %v141_v26 = vunpack.c.l.b16 %v121_v23 }
  0x20   :  { %v313_v33 = vunpack.c.l.b16 %v103_v27 }
  0x21   :  { %v143_v30 = vsel %vm142_vm1, %v141_v26, %v140_v24 }
  0x22   :  { %v144_v31 = vpack.c.b16 %v143_v30, %v143_v30  ;;  %v314_v36 = vsel %vm142_vm1, %v313_v33, %v312_v28 }
  0x23   :  { %v315_v38 = vpack.c.b16 %v314_v36, %v314_v36 }
  0x24   :  { %1209 = vmatmul.mubr.msk.bf16.vlgmr.msra.gmra.mrb[0].mxu0 %vm47_vm0, %v144_v31 }
  0x25   :  { %270 = vmatpush1.bf16.msra.mxu0 %v1369_v29  ;;  %301 = vmatprep.mubr.bf16.mxu0 %v1541_v2 }
  0x26   :  { %271 = vmatprep.subr.bf16.mxu0 %v1377_v32  ;;  %1228 = vmatmul.mubr.msk.bf16.vlgmr.msra.gmra.mrb[0].mxu1 %vm47_vm0, %v315_v38 }
  0x27   :  { %916 = vmatpush1.bf16.msra.mxu1 %v1417_v37 }
  0x28   :  { %917 = vmatprep.subr.bf16.mxu1 %v1425_v39 }
  0x29   :  { %272 = vmatpush1.bf16.msra.mxu0 %v1375_v34 }
  0x2a   :  { %273 = vmatprep.subr.bf16.mxu0 %v1383_v35 }
  0x2b   :  { %918 = vmatpush1.bf16.msra.mxu1 %v1423_v40 }
  0x2c   :  { %919 = vmatprep.subr.bf16.mxu1 %v1431_v42 }
  0x2d   :  { %274 = vmatpush1.bf16.msra.mxu0 %v1381_v41 }
  0x2e   :  { %275 = vmatprep.subr.bf16.mxu0 %v1389_v43 }
  0x2f   :  { %920 = vmatpush1.bf16.msra.mxu1 %v1429_v44 }
  0x30   :  { %921 = vmatprep.subr.bf16.mxu1 %v1437_v46 }
  0x31   :  { %276 = vmatpush1.bf16.msra.mxu0 %v1387_v45 }
  0x32   :  { %399 = vmatprep.subr.bf16.mxu0 %v1395_v47 }
  0x33   :  { %922 = vmatpush1.bf16.msra.mxu1 %v1435_v48 }
  0x34   :  { %1210 = vmatmul.mubr.msk.bf16.vlgmr.msra.gmra.mrb[4].mxu0 %vm47_vm0, %v144_v31  ;;  %923 = vmatprep.subr.bf16.mxu1 %v1443_v51 }
  0x35   :  { %400 = vmatpush1.bf16.msra.mxu0 %v1393_v49  ;;  %431 = vmatprep.mubr.bf16.mxu0 %v1541_v2 }
  0x36   :  { %401 = vmatprep.subr.bf16.mxu0 %v1398_v50 }
  0x37   :  { %924 = vmatpush1.bf16.msra.mxu1 %v1441_v52 }
  0x39   :  { %402 = vmatpush1.bf16.msra.mxu0 %v1396_v53 }
  0x3a   :  { %403 = vmatprep.subr.bf16.mxu0 %v1401_v54 }
  0x3d   :  { %404 = vmatpush1.bf16.msra.mxu0 %v1399_v55 }
  0x3e   :  { %13 = vsyncpa [#allocation3], 0  ;;  %405 = vmatprep.subr.bf16.mxu0 %v1404_v56  ;;  %v1407_v2 = vld [vmem:[%s1991_s4 + $0x104] ss:$8 sps:$4 sm:$0xff]   ;;  %v1405_v58 = vld [vmem:[%s1991_s4 + $0x100] ss:$8 sps:$4 sm:$0xff]   ;;  %v483_v54 = vlaneseq }
  0x3f   :  { %v1410_v59 = vld [vmem:[%s1991_s4 + $0x114] ss:$8 sps:$4 sm:$0xff]   ;;  %v1408_v60 = vld [vmem:[%s1991_s4 + $0x110] ss:$8 sps:$4 sm:$0xff]   ;;  %v1413_v61 = vld [vmem:[%s1991_s4 + $0x124] ss:$8 sps:$4 sm:$0xff]  }
  0x40   :  { %v1411_v62 = vld [vmem:[%s1991_s4 + $0x120] ss:$8 sps:$4 sm:$0xff]   ;;  %v1416_v63 = vld [vmem:[%s1991_s4 + $0x134] ss:$8 sps:$4 sm:$0xff]   ;;  %v1414_v0 = vld [vmem:[%s1991_s4 + $0x130] ss:$8 sps:$4 sm:$0xff]  }
  0x41   :  { %406 = vmatpush1.bf16.msra.mxu0 %v1402_v57  ;;  %v1422_v1 = vld [vmem:[%s1991_s4 + $0x144] ss:$8 sps:$4 sm:$0xff]   ;;  %v1420_v3 = vld [vmem:[%s1991_s4 + $0x140] ss:$8 sps:$4 sm:$0xff]   ;;  %v1428_v4 = vld [vmem:[%s1991_s4 + $0x154] ss:$8 sps:$4 sm:$0xff]  }
  0x42   :  { %956 = vmatprep.subr.bf16.mxu0 %v1407_v2  ;;  %v1426_v5 = vld [vmem:[%s1991_s4 + $0x150] ss:$8 sps:$4 sm:$0xff]   ;;  %v1434_v6 = vld [vmem:[%s1991_s4 + $0x164] ss:$8 sps:$4 sm:$0xff]   ;;  %v1432_v7 = vld [vmem:[%s1991_s4 + $0x160] ss:$8 sps:$4 sm:$0xff]  }
  0x43   :  { %v1440_v8 = vld [vmem:[%s1991_s4 + $0x174] ss:$8 sps:$4 sm:$0xff]   ;;  %v1438_v9 = vld [vmem:[%s1991_s4 + $0x170] ss:$8 sps:$4 sm:$0xff]   ;;  %v1446_v10 = vld [vmem:[%s1991_s4 + $0x184] ss:$8 sps:$4 sm:$0xff]  }
  0x44   :  { %1227 = vmatmul.mubr.msk.bf16.vlgmr.msra.gmra.mrb[8].mxu0 %vm47_vm0, %v315_v38  ;;  %v1444_v11 = vld [vmem:[%s1991_s4 + $0x180] ss:$8 sps:$4 sm:$0xff]   ;;  %v1449_v12 = vld [vmem:[%s1991_s4 + $0x54] ss:$8 sps:$4 sm:$0xff]   ;;  %v1447_v14 = vld [vmem:[%s1991_s4 + $0x50] ss:$8 sps:$4 sm:$0xff]  }
  0x45   :  { %957 = vmatpush1.bf16.msra.mxu0 %v1405_v58  ;;  %v1452_v13 = vld [vmem:[%s1991_s4 + $0x194] ss:$8 sps:$4 sm:$0xff]   ;;  %v1450_v15 = vld [vmem:[%s1991_s4 + $0x190] ss:$8 sps:$4 sm:$0xff]   ;;  %925 = vmatprep.subr.bf16.mxu1 %v1449_v12  ;;  %v1453_v16 = vld [vmem:[%s1991_s4 + $0x60] ss:$8 sps:$4 sm:$0xff]  }
  0x46   :  { %958 = vmatprep.subr.bf16.mxu0 %v1410_v59  ;;  %926 = vmatpush1.bf16.msra.mxu1 %v1447_v14  ;;  %v1455_v17 = vld [vmem:[%s1991_s4 + $0x64] ss:$8 sps:$4 sm:$0xff]   ;;  %v1456_v18 = vld [vmem:[%s1991_s4 + $0x1a0] ss:$8 sps:$4 sm:$0xff]   ;;  %v1461_v20 = vld [vmem:[%s1991_s4 + $0x74] ss:$8 sps:$4 sm:$0xff]  }
  0x47   :  { %v1458_v19 = vld [vmem:[%s1991_s4 + $0x1a4] ss:$8 sps:$4 sm:$0xff]   ;;  %927 = vmatprep.subr.bf16.mxu1 %v1455_v17  ;;  %v1464_v21 = vld [vmem:[%s1991_s4 + $0x1b4] ss:$8 sps:$4 sm:$0xff]   ;;  %v1459_v22 = vld [vmem:[%s1991_s4 + $0x70] ss:$8 sps:$4 sm:$0xff]  }
  0x48   :  { %v1462_v23 = vld [vmem:[%s1991_s4 + $0x1b0] ss:$8 sps:$4 sm:$0xff]   ;;  %v1467_v24 = vld [vmem:[%s1991_s4 + $0x84] ss:$8 sps:$4 sm:$0xff]   ;;  %v1465_v26 = vld [vmem:[%s1991_s4 + $0x80] ss:$8 sps:$4 sm:$0xff]  }
  0x49   :  { %959 = vmatpush1.bf16.msra.mxu0 %v1408_v60  ;;  %v1470_v25 = vld [vmem:[%s1991_s4 + $0x1c4] ss:$8 sps:$4 sm:$0xff]   ;;  %v1468_v27 = vld [vmem:[%s1991_s4 + $0x1c0] ss:$8 sps:$4 sm:$0xff]   ;;  %v1473_v28 = vld [vmem:[%s1991_s4 + $0x94] ss:$8 sps:$4 sm:$0xff]  }
  0x4a   :  { %960 = vmatprep.subr.bf16.mxu0 %v1413_v61  ;;  %928 = vmatpush1.bf16.msra.mxu1 %v1453_v16  ;;  %v1476_v29 = vld [vmem:[%s1991_s4 + $0x1d4] ss:$8 sps:$4 sm:$0xff]   ;;  %v1471_v30 = vld [vmem:[%s1991_s4 + $0x90] ss:$8 sps:$4 sm:$0xff]   ;;  %v1479_v32 = vld [vmem:[%s1991_s4 + $0xa4] ss:$8 sps:$4 sm:$0xff]  }
  0x4b   :  { %929 = vmatprep.subr.bf16.mxu1 %v1461_v20  ;;  %v1474_v31 = vld [vmem:[%s1991_s4 + $0x1d0] ss:$8 sps:$4 sm:$0xff]   ;;  %v1482_v33 = vld [vmem:[%s1991_s4 + $0x1e4] ss:$8 sps:$4 sm:$0xff]   ;;  %v1477_v34 = vld [vmem:[%s1991_s4 + $0xa0] ss:$8 sps:$4 sm:$0xff]  }
  0x4c   :  { %v1480_v35 = vld [vmem:[%s1991_s4 + $0x1e0] ss:$8 sps:$4 sm:$0xff]   ;;  %v1485_v36 = vld [vmem:[%s1991_s4 + $0xb4] ss:$8 sps:$4 sm:$0xff]   ;;  %v1483_v38 = vld [vmem:[%s1991_s4 + $0xb0] ss:$8 sps:$4 sm:$0xff]  }
  0x4d   :  { %961 = vmatpush1.bf16.msra.mxu0 %v1411_v62  ;;  %v1488_v37 = vld [vmem:[%s1991_s4 + $0x1f4] ss:$8 sps:$4 sm:$0xff]   ;;  %v1486_v39 = vld [vmem:[%s1991_s4 + $0x1f0] ss:$8 sps:$4 sm:$0xff]   ;;  %v1491_v40 = vld [vmem:[%s1991_s4 + $0xc4] ss:$8 sps:$4 sm:$0xff]  }
  0x4e   :  { %962 = vmatprep.subr.bf16.mxu0 %v1416_v63  ;;  %930 = vmatpush1.bf16.msra.mxu1 %v1459_v22  ;;  %v1489_v41 = vld [vmem:[%s1991_s4 + $0xc0] ss:$8 sps:$4 sm:$0xff]   ;;  %v1494_v42 = vld [vmem:[%s1991_s4 + $0xd4] ss:$8 sps:$4 sm:$0xff]   ;;  %v1492_v43 = vld [vmem:[%s1991_s4 + $0xd0] ss:$8 sps:$4 sm:$0xff]  }
  0x4f   :  { %931 = vmatprep.subr.bf16.mxu1 %v1467_v24  ;;  %v1497_v44 = vld [vmem:[%s1991_s4 + $0xe4] ss:$8 sps:$4 sm:$0xff]   ;;  %v1495_v45 = vld [vmem:[%s1991_s4 + $0xe0] ss:$8 sps:$4 sm:$0xff]   ;;  %v1500_v46 = vld [vmem:[%s1991_s4 + $0xf4] ss:$8 sps:$4 sm:$0xff]  }
  0x50   :  { %v1498_v47 = vld [vmem:[%s1991_s4 + $0xf0] ss:$8 sps:$4 sm:$0xff]   ;;  %v1501_v48 = vld [vmem:[%s1993_s6 + $0x40] sm:$0xff]   ;;  %v1915_v2 = vshrl.u32 %v483_v54, 7  ;;  %s1542_s17 = smov [#allocation2]  }
  0x51   :  { %963 = vmatpush1.bf16.msra.mxu0 %v1414_v0  ;;  %v481_v59 = vld [vmem:[%s1990_s3] sm:$0xf]  ;;  %s1185_s18 = sshll.u32 %s1542_s17, 4  ;;  %s1186_s18 = int_to_ptr.vmem [resolvable:$true] %s1185_s18 }
  0x52   :  { %964 = vmatprep.subr.bf16.mxu0 %v1422_v1  ;;  %932 = vmatpush1.bf16.msra.mxu1 %v1465_v26  ;;  %v493_v58 = vsub.s32 2, %v1915_v2  ;;  %v497_v60 = vsub.s32 3, %v1915_v2  ;;  %v485_v14 = vsub.s32 0, %v1915_v2  ;;  %s1517_s19 = scalar_lea.vmem %s1186_s18, 32  ;;  %p1522_p1 = scmp.lt.s32.totalorder %s1186_s18, %s1186_s18 }
  0x53   :  { %933 = vmatprep.subr.bf16.mxu1 %v1473_v28  ;;  %p1518_p0 = scmp.ne.s32.totalorder %s1186_s18, %s1517_s19  ;;  %p1523_p2 = scmp.lt.s32.totalorder %s1517_s19, %s1517_s19 }
  0x54   :  { %v494_v61 = vrot.slane %v481_v59, %v493_v58  ;;  %v498_v63 = vrot.slane %v481_v59, %v497_v60  ;;  %v486_v16 = vrot.slane %v481_v59, %v485_v14 }
  0x55   :  { %965 = vmatpush1.bf16.msra.mxu0 %v1420_v3  ;;  %p1524_p3 = por %p1523_p2, %p1522_p1 }
  0x56   :  { %966 = vmatprep.subr.bf16.mxu0 %v1428_v4  ;;  %934 = vmatpush1.bf16.msra.mxu1 %v1471_v30 }
  0x57   :  { %935 = vmatprep.subr.bf16.mxu1 %v1479_v32  ;;  %p1525_p4 = pnand %p1524_p3, %p1518_p0 }
  0x59   :  { %967 = vmatpush1.bf16.msra.mxu0 %v1426_v5 }
  0x5a   :  { %968 = vmatprep.subr.bf16.mxu0 %v1434_v6  ;;  %936 = vmatpush1.bf16.msra.mxu1 %v1477_v34  ;;  %v1504_v34 = vld [vmem:[%s1993_s6 + $0x8] sm:$0xff]  }
  0x5b   :  { %937 = vmatprep.subr.bf16.mxu1 %v1485_v36  ;;  %v1506_v36 = vld [vmem:[%s1993_s6 + $0x10] sm:$0xff]  }
  0x5d   :  { %969 = vmatpush1.bf16.msra.mxu0 %v1432_v7 }
  0x5e   :  { %970 = vmatprep.subr.bf16.mxu0 %v1440_v8  ;;  %938 = vmatpush1.bf16.msra.mxu1 %v1483_v38  ;;  %v1508_v38 = vld [vmem:[%s1993_s6 + $0x18] sm:$0xff]  }
  0x5f   :  { %939 = vmatprep.subr.bf16.mxu1 %v1491_v40  ;;  %v1510_v40 = vld [vmem:[%s1993_s6 + $0x20] sm:$0xff]  }
  0x61   :  { %971 = vmatpush1.bf16.msra.mxu0 %v1438_v9 }
  0x62   :  { %972 = vmatprep.subr.bf16.mxu0 %v1446_v10  ;;  %940 = vmatpush1.bf16.msra.mxu1 %v1489_v41  ;;  %v1511_v41 = vld [vmem:[%s1993_s6 + $0x68] sm:$0xff]  }
  0x63   :  { %941 = vmatprep.subr.bf16.mxu1 %v1494_v42  ;;  %v1512_v42 = vld [vmem:[%s1993_s6 + $0x28] sm:$0xff]  }
  0x65   :  { %973 = vmatpush1.bf16.msra.mxu0 %v1444_v11 }
  0x66   :  { %974 = vmatprep.subr.bf16.mxu0 %v1452_v13  ;;  %942 = vmatpush1.bf16.msra.mxu1 %v1492_v43  ;;  %v1513_v43 = vld [vmem:[%s1993_s6 + $0x70] sm:$0xff]  }
  0x67   :  { %943 = vmatprep.subr.bf16.mxu1 %v1497_v44  ;;  %v1514_v44 = vld [vmem:[%s1993_s6 + $0x30] sm:$0xff]  }
  0x69   :  { %975 = vmatpush1.bf16.msra.mxu0 %v1450_v15  ;;  %v489_v15 = vsub.s32 1, %v1915_v2 }
  0x6a   :  { %976 = vmatprep.subr.bf16.mxu0 %v1458_v19  ;;  %944 = vmatpush1.bf16.msra.mxu1 %v1495_v45  ;;  %v1515_v45 = vld [vmem:[%s1993_s6 + $0x78] sm:$0xff]  }
  0x6b   :  { %945 = vmatprep.subr.bf16.mxu1 %v1500_v46  ;;  %v1516_v46 = vld [vmem:[%s1993_s6 + $0x38] sm:$0xff]  }
  0x6d   :  { %977 = vmatpush1.bf16.msra.mxu0 %v1456_v18  ;;  %v490_v18 = vrot.slane %v481_v59, %v489_v15 }
  0x6e   :  { %978 = vmatprep.subr.bf16.mxu0 %v1464_v21  ;;  %946 = vmatpush1.bf16.msra.mxu1 %v1498_v47 }
  0x6f   :  { %1329 = vmatprep.subr.bf16.mxu1 %v1501_v48 }
  0x71   :  { %979 = vmatpush1.bf16.msra.mxu0 %v1462_v23 }
  0x72   :  { %980 = vmatprep.subr.bf16.mxu0 %v1470_v25 }
  0x75   :  { %981 = vmatpush1.bf16.msra.mxu0 %v1468_v27 }
  0x76   :  { %982 = vmatprep.subr.bf16.mxu0 %v1476_v29 }
  0x79   :  { %983 = vmatpush1.bf16.msra.mxu0 %v1474_v31  ;;  %v1502_v31 = vld [vmem:[%s1993_s6] sm:$0xff]  }
  0x7a   :  { %984 = vmatprep.subr.bf16.mxu0 %v1482_v33  ;;  %v1503_v33 = vld [vmem:[%s1993_s6 + $0x48] sm:$0xff]  }
  0x7d   :  { %985 = vmatpush1.bf16.msra.mxu0 %v1480_v35  ;;  %v1505_v35 = vld [vmem:[%s1993_s6 + $0x50] sm:$0xff]  }
  0x7e   :  { %986 = vmatprep.subr.bf16.mxu0 %v1488_v37  ;;  %v1507_v37 = vld [vmem:[%s1993_s6 + $0x58] sm:$0xff]  }
  0x81   :  { %987 = vmatpush1.bf16.msra.mxu0 %v1486_v39  ;;  %v1509_v39 = vld [vmem:[%s1993_s6 + $0x60] sm:$0xff]  }
  0xf7   :  { %v262_v49 = vpop.f32.mrb[0].mxu0 }
  0xf8   :  { %v264_v50 = vpop.f32.mrb[1].mxu0 }
  0xf9   :  { %v266_v51 = vpop.f32.mrb[2].mxu0  ;;  %v474_v53 = vpop.f32.mrb[0].mxu1 }
  0xfa   :  { %v267_v52 = vpop.f32.mrb[3].mxu0  ;;  %v476_v55 = vpop.f32.mrb[1].mxu1  ;;  %v583_v51 = vld [vmem:[%s1992_s5] sm:$0x3] }
  0xfb   :  { %v478_v56 = vpop.f32.mrb[2].mxu1  ;;  %v588_v52 = vrot.slane %v583_v51, %v485_v14 }
  0xfc   :  { %v479_v57 = vpop.f32.mrb[3].mxu1 }
 0x107   :  { %v303_v62 = vpop.f32.mrb[4].mxu0 }
 0x108   :  { %v475_v0 = vadd.f32 %v474_v53, %v303_v62  ;;  %v305_v1 = vpop.f32.mrb[5].mxu0  ;;  %v592_v53 = vrot.slane %v583_v51, %v489_v15 }
 0x109   :  { %v477_v3 = vadd.f32 %v476_v55, %v305_v1  ;;  %v307_v4 = vpop.f32.mrb[6].mxu0 }
 0x10a   :  { %v505_v5 = vadd.f32 %v494_v61, %v475_v0  ;;  %v308_v6 = vpop.f32.mrb[7].mxu0 }
 0x10b   :  { %v506_v7 = vadd.f32 %v498_v63, %v477_v3  ;;  %v1293_v6 = vld [vmem:[%s1994_s7] ss:$0 sm:$0xff] }
 0x10c   :  { %v509_v8 = vmul.f32 0.2, %v505_v5 }
 0x10d   :  { %v510_v9 = vmul.f32 0.2, %v506_v7 }
 0x10e   :  { %v513_v10 = vmax.f32 %v505_v5, %v509_v8 }
 0x10f   :  { %v514_v11 = vmax.f32 %v506_v7, %v510_v9 }
 0x110   :  { %v517_v13 = vpack.c.bf16 %v513_v10, %v513_v10 }
 0x111   :  { %v518_v12 = vpack.c.bf16 %v514_v11, %v514_v11 }
 0x113   :  { %988 = vmatprep.mubr.bf16.mxu0 %v518_v12 }
 0x114   :  { %989 = vmatmul.mubr.bf16.vlgmr.msra.gmra.mrb[12].mxu0 %v517_v13 }
 0x117   :  { %v433_v17 = vpop.f32.mrb[8].mxu0 }
 0x118   :  { %v434_v19 = vadd.f32 %v433_v17, %v262_v49  ;;  %v435_v20 = vpop.f32.mrb[9].mxu0 }
 0x119   :  { %v436_v21 = vadd.f32 %v435_v20, %v264_v50  ;;  %v437_v22 = vpop.f32.mrb[10].mxu0 }
 0x11a   :  { %v503_v23 = vadd.f32 %v486_v16, %v434_v19  ;;  %v438_v24 = vpop.f32.mrb[11].mxu0 }
 0x11b   :  { %v504_v25 = vadd.f32 %v490_v18, %v436_v21 }
 0x11c   :  { %v507_v26 = vmul.f32 0.2, %v503_v23 }
 0x11d   :  { %v508_v27 = vmul.f32 0.2, %v504_v25 }
 0x11e   :  { %v511_v28 = vmax.f32 %v503_v23, %v507_v26 }
 0x11f   :  { %v512_v29 = vmax.f32 %v504_v25, %v508_v27 }
 0x120   :  { %v515_v32 = vpack.c.bf16 %v511_v28, %v511_v28 }
 0x121   :  { %v516_v30 = vpack.c.bf16 %v512_v29, %v512_v29 }
 0x123   :  { %947 = vmatprep.mubr.bf16.mxu1 %v516_v30 }
 0x124   :  { %948 = vmatmul.mubr.bf16.vlgmr.msra.gmra.mrb[4].mxu1 %v515_v32 }
 0x125   :  { %1330 = vmatpush3.bf16.msra.mxu1 %v1502_v31 }
 0x126   :  { %1331 = vmatprep.subr.bf16.mxu1 %v1503_v33 }
 0x129   :  { %1332 = vmatpush3.bf16.msra.mxu1 %v1504_v34 }
 0x12a   :  { %1333 = vmatprep.subr.bf16.mxu1 %v1505_v35 }
 0x12d   :  { %1334 = vmatpush3.bf16.msra.mxu1 %v1506_v36 }
 0x12e   :  { %1335 = vmatprep.subr.bf16.mxu1 %v1507_v37 }
 0x131   :  { %1336 = vmatpush3.bf16.msra.mxu1 %v1508_v38 }
 0x132   :  { %1337 = vmatprep.subr.bf16.mxu1 %v1509_v39 }
 0x135   :  { %1338 = vmatpush3.bf16.msra.mxu1 %v1510_v40 }
 0x136   :  { %1339 = vmatprep.subr.bf16.mxu1 %v1511_v41 }
 0x139   :  { %1340 = vmatpush3.bf16.msra.mxu1 %v1512_v42 }
 0x13a   :  { %1341 = vmatprep.subr.bf16.mxu1 %v1513_v43 }
 0x13d   :  { %1342 = vmatpush3.bf16.msra.mxu1 %v1514_v44 }
 0x13e   :  { %1343 = vmatprep.subr.bf16.mxu1 %v1515_v45 }
 0x141   :  { %1344 = vmatpush3.bf16.msra.mxu1 %v1516_v46 }
 0x1e7   :  { %v990_v47 = vpop.f32.mrb[12].mxu0 }
 0x1e8   :  { %v992_v48 = vpop.f32.mrb[13].mxu0 }
 0x1e9   :  { %v994_v49 = vpop.f32.mrb[14].mxu0 }
 0x1ea   :  { %v995_v50 = vpop.f32.mrb[15].mxu0 }
 0x1f7   :  { %v949_v54 = vpop.f32.mrb[4].mxu1 }
 0x1f8   :  { %v950_v55 = vadd.f32 %v949_v54, %v588_v52  ;;  %v951_v56 = vpop.f32.mrb[5].mxu1 }
 0x1f9   :  { %v952_v57 = vadd.f32 %v951_v56, %v592_v53  ;;  %v953_v2 = vpop.f32.mrb[6].mxu1 }
 0x1fa   :  { %v991_v58 = vadd.f32 %v990_v47, %v950_v55  ;;  %v954_v59 = vpop.f32.mrb[7].mxu1 }
 0x1fb   :  { %v993_v60 = vadd.f32 %v992_v48, %v952_v57 }
 0x1fc   :  { %v997_v61 = vmul.f32 0.2, %v991_v58 }
 0x1fd   :  { %v998_v62 = vmul.f32 0.2, %v993_v60 }
 0x1fe   :  { %v999_v63 = vmax.f32 %v991_v58, %v997_v61 }
 0x1ff   :  { %v1000_v0 = vmax.f32 %v993_v60, %v998_v62 }
 0x200   :  { %v1001_v3 = vpack.c.bf16 %v999_v63, %v999_v63 }
 0x201   :  { %v1002_v1 = vpack.c.bf16 %v1000_v0, %v1000_v0 }
 0x203   :  { %1170 = vmatprep.mubr.bf16.mxu1 %v1002_v1 }
 0x204   :  { %1171 = vmatmul.mubr.bf16.vlgmr.msra.gmra.mrb[8].mxu1 %v1001_v3 }
 0x2d7   :  { %v1345_v4 = vpop.f32.mrb[8].mxu1 }
 0x2d8   :  { %v1346_v5 = vpop.f32.mrb[9].mxu1 }
 0x2d9   :  { %v1347_v7 = vadd.f32 %v1346_v5, %v1345_v4  ;;  %v1348_v8 = vpop.f32.mrb[10].mxu1 }
 0x2da   :  { %v1349_v9 = vpop.f32.mrb[11].mxu1 }
 0x2db   :  { %v1173_v10 = vadd.f32 %v1347_v7, %v1293_v6 }
 0x2dd   :  { %1178 = vst [vmem:[#allocation2] sm:$0x3] %v1173_v10 }
 0x2de   :  { %1528 = shalt.err (!%p1525_p4)
}
 0x2df   :  { %s1529_s22 = scalar_lea.hbm %s1995_s8, 32 }
 0x2e0   :  { %p1530_p5 = scmp.ne.s32.totalorder %s1995_s8, %s1529_s22  ;;  %p1533_p6 = scmp.lt.u32.totalorder %s1529_s22, %s1995_s8 }
 0x2e2   :  { %p1535_p7 = pnand %p1533_p6, %p1530_p5 }
 0x2e4   :  { %1538 = shalt.err (!%p1535_p7)
}
 0x2e5   :  { %1188 = dma.vmem_to_hbm [thread:$0]  %s1186_s18, 32, %s1995_s8, [#allocation3]  }
 0x2e6   :  { %1539 = dma.done.wait [#allocation3], 32  }
 0x2e7   :  { %1540 = vsyncadd [#allocation3], 4294967264 }
 0x2e8   :  { %1192 = vsyncpa [#allocation3], 1 }

</bundles_post_ra>
